<compile_context>
chip_gen: v5e
topology: v5e:2x2
jax: 0.10.0
libtpu: 0.0.40
codegen_flags: <defaults>
</compile_context>

<pallas_src>
import functools

import jax
import jax.numpy as jnp
from jax.experimental import pallas as pl
from jax.experimental.pallas import tpu as pltpu


def _round_up(x, m):
    return ((x + m - 1) // m) * m


def _ceil_div(a, b):
    return -(-a // b)


def _vae_kernel(
    x_ref, eps_ref,
    w1_ref, b1_ref, w2_ref, b2_ref, w3_ref, b3_ref,
    wml_ref, bml_ref,
    wd1_ref, bd1_ref, wd2_ref, bd2_ref, wd3_ref, bd3_ref, wd4_ref, bd4_ref,
    recon_ref, mu_ref, logvar_ref,
    *, latent_dim,
):
    def linear(h_bf16, w_ref, b_ref):
        # bf16 operands on the MXU, f32 accumulation, f32 bias add.
        return (
            jnp.dot(h_bf16, w_ref[...], preferred_element_type=jnp.float32)
            + b_ref[...]
        )

    def relu_bf16(a_f32):
        # ReLU in f32 (exact), then one cast so the next MXU op consumes bf16.
        return jnp.maximum(a_f32, 0.0).astype(jnp.bfloat16)

    # --- EEG encoder: Linear(512) ReLU [Dropout] Linear(256) ReLU [Dropout] Linear(128) ReLU
    # TODO(synk): Dropout(0.3) is identity here (eval-mode semantics).
    h = relu_bf16(linear(x_ref[...], w1_ref, b1_ref))
    h = relu_bf16(linear(h, w2_ref, b2_ref))
    h = relu_bf16(linear(h, w3_ref, b3_ref))

    # --- fused latent heads: one [tb,128] @ [128, 2*latent] matmul, then split.
    ml = linear(h, wml_ref, bml_ref)            # f32
    mu = ml[:, :latent_dim]
    logvar = ml[:, latent_dim:]
    mu_ref[...] = mu
    logvar_ref[...] = logvar

    # --- reparameterize: z = mu + eps * exp(0.5 * logvar)   (f32 -> bf16)
    z = (mu + eps_ref[...] * jnp.exp(0.5 * logvar)).astype(jnp.bfloat16)

    # --- image decoder: Linear(128) ReLU Linear(256) ReLU Linear(512) ReLU Linear(H*W) Sigmoid
    d = relu_bf16(linear(z, wd1_ref, bd1_ref))
    d = relu_bf16(linear(d, wd2_ref, bd2_ref))
    d = relu_bf16(linear(d, wd3_ref, bd3_ref))
    recon_ref[...] = jax.nn.sigmoid(linear(d, wd4_ref, bd4_ref)).astype(recon_ref.dtype)


def init_params(key, eeg_features_dim, image_size=32, latent_dim=128):
    """Deterministic parameter init (PyTorch-Linear-style uniform).

    Weights stored as [in, out] (f32); biases as [1, out] so the kernel can
    broadcast-add them directly.
    """
    dims = [
        (eeg_features_dim, 512),          # encoder 1
        (512, 256),                        # encoder 2
        (256, 128),                        # encoder 3
        (128, latent_dim),                 # fc_mu
        (128, latent_dim),                 # fc_logvar
        (latent_dim, 128),                 # decoder 1
        (128, 256),                        # decoder 2
        (256, 512),                        # decoder 3
        (512, image_size * image_size),    # decoder 4
    ]
    params = []
    for (din, dout) in dims:
        key, kw, kb = jax.random.split(key, 3)
        scale = 1.0 / jnp.sqrt(jnp.float32(din))
        w = jax.random.uniform(kw, (din, dout), jnp.float32, -scale, scale)
        b = jax.random.uniform(kb, (1, dout), jnp.float32, -scale, scale)
        params += [w, b]
    return params


def prepare_params(params):
    """One-time weight preparation (hoisted out of the per-call path).

    - Zero-pads encoder-1 rows so the EEG feature (contraction) dim is a
      multiple of 128.
    - Fuses the fc_mu / fc_logvar heads into one [128, 2*latent] matmul.
    - Casts all weights to bf16 (biases stay f32 for the f32 epilogue).
    """
    (w1, b1, w2, b2, w3, b3,
     wmu, bmu, wlv, blv,
     wd1, bd1, wd2, bd2, wd3, bd3, wd4, bd4) = params

    feat = w1.shape[0]
    feat_pad = _round_up(max(feat, 128), 128)
    w1p = jnp.pad(w1, ((0, feat_pad - feat), (0, 0)))
    wml = jnp.concatenate([wmu, wlv], axis=1)
    bml = jnp.concatenate([bmu, blv], axis=1)

    def bf(w):
        return w.astype(jnp.bfloat16)

    prepared = (
        bf(w1p), b1, bf(w2), b2, bf(w3), b3,
        bf(wml), bml,
        bf(wd1), bd1, bf(wd2), bd2, bf(wd3), bd3, bf(wd4), bd4,
    )
    return jax.tree_util.tree_map(jnp.asarray, prepared)


@functools.partial(
    jax.jit,
    static_argnames=("image_size", "latent_dim", "batch_tile", "recon_dtype"))
def eeg_to_image_vae_forward(eeg_features, eps, prepared_params, *,
                             image_size=32, latent_dim=128, batch_tile=512,
                             recon_dtype=jnp.bfloat16):
    batch, feat = eeg_features.shape
    img_flat = image_size * image_size
    feat_pad = prepared_params[0].shape[0]          # padded K of encoder-1

    # NOTE: latent_dim that is a multiple of 128 keeps the fused-head split and
    # the (tb, latent_dim) output tiles lane-aligned (unmasked vst). Other
    # values are still correct, just slower.

    # --- adaptive batch tiling: minimal tail padding; >=2 grid steps when the
    #     batch is big enough so v7x's two TensorCores both get work.
    n_tiles = max(1, _ceil_div(batch, batch_tile))
    if n_tiles == 1 and batch >= 16:
        n_tiles = 2
    tb = _round_up(_ceil_div(batch, n_tiles), 8)
    b_pad = tb * n_tiles
    grid = (n_tiles,)

    # --- layout glue: pad batch/features, cast the EEG input to bf16 once.
    x_p = jnp.pad(eeg_features,
                  ((0, b_pad - batch), (0, feat_pad - feat))).astype(jnp.bfloat16)
    eps_p = jnp.pad(eps, ((0, b_pad - batch), (0, 0)))

    # --- BlockSpecs: batch-tiled activations/outputs; weights/biases use a
    #     constant index_map so they are DMA'd once and stay VMEM-resident
    #     across batch tiles (double-buffered by default: ~3.8 MiB, fine).
    in_specs = [
        pl.BlockSpec((tb, feat_pad), lambda i: (i, 0)),      # x tile (bf16)
        pl.BlockSpec((tb, latent_dim), lambda i: (i, 0)),    # eps tile (f32)
    ] + [pl.BlockSpec(p.shape, lambda i: (0, 0)) for p in prepared_params]

    out_specs = (
        pl.BlockSpec((tb, img_flat), lambda i: (i, 0)),      # recon (bf16, lane-dense)
        pl.BlockSpec((tb, latent_dim), lambda i: (i, 0)),    # mu (f32)
        pl.BlockSpec((tb, latent_dim), lambda i: (i, 0)),    # logvar (f32)
    )

    out_shape = (
        jax.ShapeDtypeStruct((b_pad, img_flat), recon_dtype),
        jax.ShapeDtypeStruct((b_pad, latent_dim), jnp.float32),
        jax.ShapeDtypeStruct((b_pad, latent_dim), jnp.float32),
    )

    # Advisory cost estimate so XLA schedules the weight fetch early.
    recon_itemsize = jax.ShapeDtypeStruct((1,), recon_dtype).dtype.itemsize
    layer_dims = [
        (feat_pad, 512), (512, 256), (256, 128), (128, 2 * latent_dim),
        (latent_dim, 128), (128, 256), (256, 512), (512, img_flat),
    ]
    flops = 2 * b_pad * sum(din * dout for din, dout in layer_dims)
    weight_bytes = sum(int(p.size) * p.dtype.itemsize for p in prepared_params)
    io_bytes = (weight_bytes
                + b_pad * feat_pad * 2                 # x (bf16)
                + b_pad * latent_dim * 4               # eps (f32)
                + b_pad * img_flat * recon_itemsize    # recon
                + b_pad * 2 * latent_dim * 4)          # mu + logvar
    cost = pl.CostEstimate(
        flops=flops,
        transcendentals=b_pad * (latent_dim + img_flat),
        bytes_accessed=io_bytes,
    )

    recon_flat, mu, logvar = pl.pallas_call(
        functools.partial(_vae_kernel, latent_dim=latent_dim),
        grid=grid,
        out_shape=out_shape,
        in_specs=in_specs,
        out_specs=out_specs,
        compiler_params=pltpu.CompilerParams(
            dimension_semantics=("parallel",),
            vmem_limit_bytes=32 << 20,
        ),
        cost_estimate=cost,
    )(x_p, eps_p, *prepared_params)

    # recon stays in the kernel's output dtype (bf16 by default) to keep the
    # HBM write half-width; callers needing f32 can cast.
    reconstructed = recon_flat[:batch].reshape(batch, 1, image_size, image_size)
    return reconstructed, mu[:batch], logvar[:batch]


if __name__ == "__main__":
    eeg_features_dim = 64
    image_size = 32
    latent_dim = 128
    batch = 2

    key = jax.random.PRNGKey(0)
    k_params, k_x, k_eps = jax.random.split(key, 3)

    params = init_params(k_params, eeg_features_dim, image_size, latent_dim)
    prepared = prepare_params(params)      # one-time weight prep (bf16 / pad / fuse)

    x = jax.random.normal(k_x, (batch, eeg_features_dim), jnp.float32)
    eps = jax.random.normal(k_eps, (batch, latent_dim), jnp.float32)

    recon, mu, logvar = eeg_to_image_vae_forward(
        x, eps, prepared, image_size=image_size, latent_dim=latent_dim)
    jax.block_until_ready((recon, mu, logvar))

    assert recon.shape == (batch, 1, image_size, image_size)
    assert mu.shape == (batch, latent_dim)
    assert logvar.shape == (batch, latent_dim)
    assert bool(jnp.all(jnp.isfinite(recon.astype(jnp.float32))))
    assert bool(jnp.all(jnp.isfinite(mu)))
    assert bool(jnp.all(jnp.isfinite(logvar)))
    assert bool(jnp.all((recon >= 0.0) & (recon <= 1.0)))
    print("KERNEL_OK")
</pallas_src>

<mosaic_0001>
module attributes {stable_mosaic.version = 11 : i64} {
  func.func @_vae_kernel(%arg0: i32, %arg1: memref<8x128xbf16, #tpu.memory_space<vmem>>, %arg2: memref<8x128xf32, #tpu.memory_space<vmem>>, %arg3: memref<128x512xbf16, #tpu.memory_space<vmem>>, %arg4: memref<1x512xf32, #tpu.memory_space<vmem>>, %arg5: memref<512x256xbf16, #tpu.memory_space<vmem>>, %arg6: memref<1x256xf32, #tpu.memory_space<vmem>>, %arg7: memref<256x128xbf16, #tpu.memory_space<vmem>>, %arg8: memref<1x128xf32, #tpu.memory_space<vmem>>, %arg9: memref<128x256xbf16, #tpu.memory_space<vmem>>, %arg10: memref<1x256xf32, #tpu.memory_space<vmem>>, %arg11: memref<128x128xbf16, #tpu.memory_space<vmem>>, %arg12: memref<1x128xf32, #tpu.memory_space<vmem>>, %arg13: memref<128x256xbf16, #tpu.memory_space<vmem>>, %arg14: memref<1x256xf32, #tpu.memory_space<vmem>>, %arg15: memref<256x512xbf16, #tpu.memory_space<vmem>>, %arg16: memref<1x512xf32, #tpu.memory_space<vmem>>, %arg17: memref<512x1024xbf16, #tpu.memory_space<vmem>>, %arg18: memref<1x1024xf32, #tpu.memory_space<vmem>>, %arg19: memref<8x1024xbf16, #tpu.memory_space<vmem>>, %arg20: memref<8x128xf32, #tpu.memory_space<vmem>>, %arg21: memref<8x128xf32, #tpu.memory_space<vmem>>) attributes {dimension_semantics = [#tpu.dimension_semantics<parallel>], iteration_bounds = array<i64: 1>, scalar_prefetch = 0 : i64, scratch_operands = 0 : i64, tpu.core_type = #tpu.core_type<tc>, window_params = [{transform_indices = @transform_0, window_bounds = array<i64: 8, 128>}, {transform_indices = @transform_1, window_bounds = array<i64: 8, 128>}, {pipeline_mode = #tpu.pipeline_mode<synchronous>, transform_indices = @transform_2, window_bounds = array<i64: 128, 512>}, {pipeline_mode = #tpu.pipeline_mode<synchronous>, transform_indices = @transform_3, window_bounds = array<i64: 1, 512>}, {pipeline_mode = #tpu.pipeline_mode<synchronous>, transform_indices = @transform_4, window_bounds = array<i64: 512, 256>}, {pipeline_mode = #tpu.pipeline_mode<synchronous>, transform_indices = @transform_5, window_bounds = array<i64: 1, 256>}, {pipeline_mode = #tpu.pipeline_mode<synchronous>, transform_indices = @transform_6, window_bounds = array<i64: 256, 128>}, {pipeline_mode = #tpu.pipeline_mode<synchronous>, transform_indices = @transform_7, window_bounds = array<i64: 1, 128>}, {pipeline_mode = #tpu.pipeline_mode<synchronous>, transform_indices = @transform_8, window_bounds = array<i64: 128, 256>}, {pipeline_mode = #tpu.pipeline_mode<synchronous>, transform_indices = @transform_9, window_bounds = array<i64: 1, 256>}, {pipeline_mode = #tpu.pipeline_mode<synchronous>, transform_indices = @transform_10, window_bounds = array<i64: 128, 128>}, {pipeline_mode = #tpu.pipeline_mode<synchronous>, transform_indices = @transform_11, window_bounds = array<i64: 1, 128>}, {pipeline_mode = #tpu.pipeline_mode<synchronous>, transform_indices = @transform_12, window_bounds = array<i64: 128, 256>}, {pipeline_mode = #tpu.pipeline_mode<synchronous>, transform_indices = @transform_13, window_bounds = array<i64: 1, 256>}, {pipeline_mode = #tpu.pipeline_mode<synchronous>, transform_indices = @transform_14, window_bounds = array<i64: 256, 512>}, {pipeline_mode = #tpu.pipeline_mode<synchronous>, transform_indices = @transform_15, window_bounds = array<i64: 1, 512>}, {pipeline_mode = #tpu.pipeline_mode<synchronous>, transform_indices = @transform_16, window_bounds = array<i64: 512, 1024>}, {pipeline_mode = #tpu.pipeline_mode<synchronous>, transform_indices = @transform_17, window_bounds = array<i64: 1, 1024>}, {transform_indices = @transform_18, window_bounds = array<i64: 8, 1024>}, {transform_indices = @transform_19, window_bounds = array<i64: 8, 128>}, {transform_indices = @transform_20, window_bounds = array<i64: 8, 128>}]} {
    %c0 = arith.constant 0 : index
    %c0_0 = arith.constant 0 : index
    %0 = vector.load %arg1[%c0, %c0_0] : memref<8x128xbf16, #tpu.memory_space<vmem>>, vector<8x128xbf16>
    %c0_1 = arith.constant 0 : index
    %c0_2 = arith.constant 0 : index
    %1 = vector.load %arg3[%c0_1, %c0_2] : memref<128x512xbf16, #tpu.memory_space<vmem>>, vector<128x512xbf16>
    %cst = arith.constant dense<0.000000e+00> : vector<8x512xf32>
    %2 = tpu.matmul %0, %1, %cst {dimension_numbers = #tpu.dot_dimension_numbers<[1], [0], [0], [1], [0, 0, 1, 1], [], []>} : vector<8x128xbf16>, vector<128x512xbf16>, vector<8x512xf32> -> vector<8x512xf32>
    %c0_3 = arith.constant 0 : index
    %c0_4 = arith.constant 0 : index
    %3 = vector.load %arg4[%c0_3, %c0_4] : memref<1x512xf32, #tpu.memory_space<vmem>>, vector<1x512xf32>
    %4 = vector.broadcast %3 : vector<1x512xf32> to vector<8x512xf32>
    %5 = arith.addf %2, %4 : vector<8x512xf32>
    %cst_5 = arith.constant 0.000000e+00 : f32
    %6 = vector.broadcast %cst_5 : f32 to vector<8x512xf32>
    %7 = arith.maximumf %5, %6 : vector<8x512xf32>
    %8 = arith.truncf %7 : vector<8x512xf32> to vector<8x512xbf16>
    %c0_6 = arith.constant 0 : index
    %c0_7 = arith.constant 0 : index
    %9 = vector.load %arg5[%c0_6, %c0_7] : memref<512x256xbf16, #tpu.memory_space<vmem>>, vector<512x256xbf16>
    %cst_8 = arith.constant dense<0.000000e+00> : vector<8x256xf32>
    %10 = tpu.matmul %8, %9, %cst_8 {dimension_numbers = #tpu.dot_dimension_numbers<[1], [0], [0], [1], [0, 0, 1, 1], [], []>} : vector<8x512xbf16>, vector<512x256xbf16>, vector<8x256xf32> -> vector<8x256xf32>
    %c0_9 = arith.constant 0 : index
    %c0_10 = arith.constant 0 : index
    %11 = vector.load %arg6[%c0_9, %c0_10] : memref<1x256xf32, #tpu.memory_space<vmem>>, vector<1x256xf32>
    %12 = vector.broadcast %11 : vector<1x256xf32> to vector<8x256xf32>
    %13 = arith.addf %10, %12 : vector<8x256xf32>
    %cst_11 = arith.constant 0.000000e+00 : f32
    %14 = vector.broadcast %cst_11 : f32 to vector<8x256xf32>
    %15 = arith.maximumf %13, %14 : vector<8x256xf32>
    %16 = arith.truncf %15 : vector<8x256xf32> to vector<8x256xbf16>
    %c0_12 = arith.constant 0 : index
    %c0_13 = arith.constant 0 : index
    %17 = vector.load %arg7[%c0_12, %c0_13] : memref<256x128xbf16, #tpu.memory_space<vmem>>, vector<256x128xbf16>
    %cst_14 = arith.constant dense<0.000000e+00> : vector<8x128xf32>
    %18 = tpu.matmul %16, %17, %cst_14 {dimension_numbers = #tpu.dot_dimension_numbers<[1], [0], [0], [1], [0, 0, 1, 1], [], []>} : vector<8x256xbf16>, vector<256x128xbf16>, vector<8x128xf32> -> vector<8x128xf32>
    %c0_15 = arith.constant 0 : index
    %c0_16 = arith.constant 0 : index
    %19 = vector.load %arg8[%c0_15, %c0_16] : memref<1x128xf32, #tpu.memory_space<vmem>>, vector<1x128xf32>
    %20 = vector.broadcast %19 : vector<1x128xf32> to vector<8x128xf32>
    %21 = arith.addf %18, %20 : vector<8x128xf32>
    %cst_17 = arith.constant 0.000000e+00 : f32
    %22 = vector.broadcast %cst_17 : f32 to vector<8x128xf32>
    %23 = arith.maximumf %21, %22 : vector<8x128xf32>
    %24 = arith.truncf %23 : vector<8x128xf32> to vector<8x128xbf16>
    %c0_18 = arith.constant 0 : index
    %c0_19 = arith.constant 0 : index
    %25 = vector.load %arg9[%c0_18, %c0_19] : memref<128x256xbf16, #tpu.memory_space<vmem>>, vector<128x256xbf16>
    %cst_20 = arith.constant dense<0.000000e+00> : vector<8x256xf32>
    %26 = tpu.matmul %24, %25, %cst_20 {dimension_numbers = #tpu.dot_dimension_numbers<[1], [0], [0], [1], [0, 0, 1, 1], [], []>} : vector<8x128xbf16>, vector<128x256xbf16>, vector<8x256xf32> -> vector<8x256xf32>
    %c0_21 = arith.constant 0 : index
    %c0_22 = arith.constant 0 : index
    %27 = vector.load %arg10[%c0_21, %c0_22] : memref<1x256xf32, #tpu.memory_space<vmem>>, vector<1x256xf32>
    %28 = vector.broadcast %27 : vector<1x256xf32> to vector<8x256xf32>
    %29 = arith.addf %26, %28 : vector<8x256xf32>
    %30 = vector.extract_strided_slice %29 {offsets = [0, 0], sizes = [8, 128], strides = [1, 1]} : vector<8x256xf32> to vector<8x128xf32>
    %31 = vector.extract_strided_slice %29 {offsets = [0, 128], sizes = [8, 128], strides = [1, 1]} : vector<8x256xf32> to vector<8x128xf32>
    %c0_23 = arith.constant 0 : index
    %c0_24 = arith.constant 0 : index
    %32 = vector.load %arg20[%c0_23, %c0_24] : memref<8x128xf32, #tpu.memory_space<vmem>>, vector<8x128xf32>
    tpu.vector_store %arg20[%c0_23, %c0_24], %30 {strides = array<i32>} : memref<8x128xf32, #tpu.memory_space<vmem>>, vector<8x128xf32>,
    %c0_25 = arith.constant 0 : index
    %c0_26 = arith.constant 0 : index
    %33 = vector.load %arg21[%c0_25, %c0_26] : memref<8x128xf32, #tpu.memory_space<vmem>>, vector<8x128xf32>
    tpu.vector_store %arg21[%c0_25, %c0_26], %31 {strides = array<i32>} : memref<8x128xf32, #tpu.memory_space<vmem>>, vector<8x128xf32>,
    %c0_27 = arith.constant 0 : index
    %c0_28 = arith.constant 0 : index
    %34 = vector.load %arg2[%c0_27, %c0_28] : memref<8x128xf32, #tpu.memory_space<vmem>>, vector<8x128xf32>
    %cst_29 = arith.constant 5.000000e-01 : f32
    %35 = vector.broadcast %cst_29 : f32 to vector<8x128xf32>
    %36 = arith.mulf %35, %31 : vector<8x128xf32>
    %37 = math.exp %36 : vector<8x128xf32>
    %38 = arith.mulf %34, %37 : vector<8x128xf32>
    %39 = arith.addf %30, %38 : vector<8x128xf32>
    %40 = arith.truncf %39 : vector<8x128xf32> to vector<8x128xbf16>
    %c0_30 = arith.constant 0 : index
    %c0_31 = arith.constant 0 : index
    %41 = vector.load %arg11[%c0_30, %c0_31] : memref<128x128xbf16, #tpu.memory_space<vmem>>, vector<128x128xbf16>
    %cst_32 = arith.constant dense<0.000000e+00> : vector<8x128xf32>
    %42 = tpu.matmul %40, %41, %cst_32 {dimension_numbers = #tpu.dot_dimension_numbers<[1], [0], [0], [1], [0, 0, 1, 1], [], []>} : vector<8x128xbf16>, vector<128x128xbf16>, vector<8x128xf32> -> vector<8x128xf32>
    %c0_33 = arith.constant 0 : index
    %c0_34 = arith.constant 0 : index
    %43 = vector.load %arg12[%c0_33, %c0_34] : memref<1x128xf32, #tpu.memory_space<vmem>>, vector<1x128xf32>
    %44 = vector.broadcast %43 : vector<1x128xf32> to vector<8x128xf32>
    %45 = arith.addf %42, %44 : vector<8x128xf32>
    %cst_35 = arith.constant 0.000000e+00 : f32
    %46 = vector.broadcast %cst_35 : f32 to vector<8x128xf32>
    %47 = arith.maximumf %45, %46 : vector<8x128xf32>
    %48 = arith.truncf %47 : vector<8x128xf32> to vector<8x128xbf16>
    %c0_36 = arith.constant 0 : index
    %c0_37 = arith.constant 0 : index
    %49 = vector.load %arg13[%c0_36, %c0_37] : memref<128x256xbf16, #tpu.memory_space<vmem>>, vector<128x256xbf16>
    %cst_38 = arith.constant dense<0.000000e+00> : vector<8x256xf32>
    %50 = tpu.matmul %48, %49, %cst_38 {dimension_numbers = #tpu.dot_dimension_numbers<[1], [0], [0], [1], [0, 0, 1, 1], [], []>} : vector<8x128xbf16>, vector<128x256xbf16>, vector<8x256xf32> -> vector<8x256xf32>
    %c0_39 = arith.constant 0 : index
    %c0_40 = arith.constant 0 : index
    %51 = vector.load %arg14[%c0_39, %c0_40] : memref<1x256xf32, #tpu.memory_space<vmem>>, vector<1x256xf32>
    %52 = vector.broadcast %51 : vector<1x256xf32> to vector<8x256xf32>
    %53 = arith.addf %50, %52 : vector<8x256xf32>
    %cst_41 = arith.constant 0.000000e+00 : f32
    %54 = vector.broadcast %cst_41 : f32 to vector<8x256xf32>
    %55 = arith.maximumf %53, %54 : vector<8x256xf32>
    %56 = arith.truncf %55 : vector<8x256xf32> to vector<8x256xbf16>
    %c0_42 = arith.constant 0 : index
    %c0_43 = arith.constant 0 : index
    %57 = vector.load %arg15[%c0_42, %c0_43] : memref<256x512xbf16, #tpu.memory_space<vmem>>, vector<256x512xbf16>
    %cst_44 = arith.constant dense<0.000000e+00> : vector<8x512xf32>
    %58 = tpu.matmul %56, %57, %cst_44 {dimension_numbers = #tpu.dot_dimension_numbers<[1], [0], [0], [1], [0, 0, 1, 1], [], []>} : vector<8x256xbf16>, vector<256x512xbf16>, vector<8x512xf32> -> vector<8x512xf32>
    %c0_45 = arith.constant 0 : index
    %c0_46 = arith.constant 0 : index
    %59 = vector.load %arg16[%c0_45, %c0_46] : memref<1x512xf32, #tpu.memory_space<vmem>>, vector<1x512xf32>
    %60 = vector.broadcast %59 : vector<1x512xf32> to vector<8x512xf32>
    %61 = arith.addf %58, %60 : vector<8x512xf32>
    %cst_47 = arith.constant 0.000000e+00 : f32
    %62 = vector.broadcast %cst_47 : f32 to vector<8x512xf32>
    %63 = arith.maximumf %61, %62 : vector<8x512xf32>
    %64 = arith.truncf %63 : vector<8x512xf32> to vector<8x512xbf16>
    %c0_48 = arith.constant 0 : index
    %c0_49 = arith.constant 0 : index
    %65 = vector.load %arg17[%c0_48, %c0_49] : memref<512x1024xbf16, #tpu.memory_space<vmem>>, vector<512x1024xbf16>
    %cst_50 = arith.constant dense<0.000000e+00> : vector<8x1024xf32>
    %66 = tpu.matmul %64, %65, %cst_50 {dimension_numbers = #tpu.dot_dimension_numbers<[1], [0], [0], [1], [0, 0, 1, 1], [], []>} : vector<8x512xbf16>, vector<512x1024xbf16>, vector<8x1024xf32> -> vector<8x1024xf32>
    %c0_51 = arith.constant 0 : index
    %c0_52 = arith.constant 0 : index
    %67 = vector.load %arg18[%c0_51, %c0_52] : memref<1x1024xf32, #tpu.memory_space<vmem>>, vector<1x1024xf32>
    %68 = vector.broadcast %67 : vector<1x1024xf32> to vector<8x1024xf32>
    %69 = arith.addf %66, %68 : vector<8x1024xf32>
    %70 = arith.negf %69 : vector<8x1024xf32>
    %71 = math.exp %70 : vector<8x1024xf32>
    %cst_53 = arith.constant 1.000000e+00 : f32
    %72 = vector.broadcast %cst_53 : f32 to vector<8x1024xf32>
    %73 = arith.addf %72, %71 : vector<8x1024xf32>
    %74 = arith.divf %72, %73 : vector<8x1024xf32>
    %75 = arith.truncf %74 : vector<8x1024xf32> to vector<8x1024xbf16>
    %c0_54 = arith.constant 0 : index
    %c0_55 = arith.constant 0 : index
    %76 = vector.load %arg19[%c0_54, %c0_55] : memref<8x1024xbf16, #tpu.memory_space<vmem>>, vector<8x1024xbf16>
    tpu.vector_store %arg19[%c0_54, %c0_55], %75 {strides = array<i32>} : memref<8x1024xbf16, #tpu.memory_space<vmem>>, vector<8x1024xbf16>,
    return
  }
  func.func @transform_0(%arg0: i32) -> (i32, i32) {
    %c0_i32 = arith.constant 0 : i32
    %c0_i32_0 = arith.constant 0 : i32
    return %arg0, %c0_i32 : i32, i32
  }
  func.func @transform_1(%arg0: i32) -> (i32, i32) {
    %c0_i32 = arith.constant 0 : i32
    %c0_i32_0 = arith.constant 0 : i32
    return %arg0, %c0_i32 : i32, i32
  }
  func.func @transform_2(%arg0: i32) -> (i32, i32) {
    %c0_i32 = arith.constant 0 : i32
    %c0_i32_0 = arith.constant 0 : i32
    %c0_i32_1 = arith.constant 0 : i32
    return %c0_i32, %c0_i32_0 : i32, i32
  }
  func.func @transform_3(%arg0: i32) -> (i32, i32) {
    %c0_i32 = arith.constant 0 : i32
    %c0_i32_0 = arith.constant 0 : i32
    %c0_i32_1 = arith.constant 0 : i32
    return %c0_i32, %c0_i32_0 : i32, i32
  }
  func.func @transform_4(%arg0: i32) -> (i32, i32) {
    %c0_i32 = arith.constant 0 : i32
    %c0_i32_0 = arith.constant 0 : i32
    %c0_i32_1 = arith.constant 0 : i32
    return %c0_i32, %c0_i32_0 : i32, i32
  }
  func.func @transform_5(%arg0: i32) -> (i32, i32) {
    %c0_i32 = arith.constant 0 : i32
    %c0_i32_0 = arith.constant 0 : i32
    %c0_i32_1 = arith.constant 0 : i32
    return %c0_i32, %c0_i32_0 : i32, i32
  }
  func.func @transform_6(%arg0: i32) -> (i32, i32) {
    %c0_i32 = arith.constant 0 : i32
    %c0_i32_0 = arith.constant 0 : i32
    %c0_i32_1 = arith.constant 0 : i32
    return %c0_i32, %c0_i32_0 : i32, i32
  }
  func.func @transform_7(%arg0: i32) -> (i32, i32) {
    %c0_i32 = arith.constant 0 : i32
    %c0_i32_0 = arith.constant 0 : i32
    %c0_i32_1 = arith.constant 0 : i32
    return %c0_i32, %c0_i32_0 : i32, i32
  }
  func.func @transform_8(%arg0: i32) -> (i32, i32) {
    %c0_i32 = arith.constant 0 : i32
    %c0_i32_0 = arith.constant 0 : i32
    %c0_i32_1 = arith.constant 0 : i32
    return %c0_i32, %c0_i32_0 : i32, i32
  }
  func.func @transform_9(%arg0: i32) -> (i32, i32) {
    %c0_i32 = arith.constant 0 : i32
    %c0_i32_0 = arith.constant 0 : i32
    %c0_i32_1 = arith.constant 0 : i32
    return %c0_i32, %c0_i32_0 : i32, i32
  }
  func.func @transform_10(%arg0: i32) -> (i32, i32) {
    %c0_i32 = arith.constant 0 : i32
    %c0_i32_0 = arith.constant 0 : i32
    %c0_i32_1 = arith.constant 0 : i32
    return %c0_i32, %c0_i32_0 : i32, i32
  }
  func.func @transform_11(%arg0: i32) -> (i32, i32) {
    %c0_i32 = arith.constant 0 : i32
    %c0_i32_0 = arith.constant 0 : i32
    %c0_i32_1 = arith.constant 0 : i32
    return %c0_i32, %c0_i32_0 : i32, i32
  }
  func.func @transform_12(%arg0: i32) -> (i32, i32) {
    %c0_i32 = arith.constant 0 : i32
    %c0_i32_0 = arith.constant 0 : i32
    %c0_i32_1 = arith.constant 0 : i32
    return %c0_i32, %c0_i32_0 : i32, i32
  }
  func.func @transform_13(%arg0: i32) -> (i32, i32) {
    %c0_i32 = arith.constant 0 : i32
    %c0_i32_0 = arith.constant 0 : i32
    %c0_i32_1 = arith.constant 0 : i32
    return %c0_i32, %c0_i32_0 : i32, i32
  }
  func.func @transform_14(%arg0: i32) -> (i32, i32) {
    %c0_i32 = arith.constant 0 : i32
    %c0_i32_0 = arith.constant 0 : i32
    %c0_i32_1 = arith.constant 0 : i32
    return %c0_i32, %c0_i32_0 : i32, i32
  }
  func.func @transform_15(%arg0: i32) -> (i32, i32) {
    %c0_i32 = arith.constant 0 : i32
    %c0_i32_0 = arith.constant 0 : i32
    %c0_i32_1 = arith.constant 0 : i32
    return %c0_i32, %c0_i32_0 : i32, i32
  }
  func.func @transform_16(%arg0: i32) -> (i32, i32) {
    %c0_i32 = arith.constant 0 : i32
    %c0_i32_0 = arith.constant 0 : i32
    %c0_i32_1 = arith.constant 0 : i32
    return %c0_i32, %c0_i32_0 : i32, i32
  }
  func.func @transform_17(%arg0: i32) -> (i32, i32) {
    %c0_i32 = arith.constant 0 : i32
    %c0_i32_0 = arith.constant 0 : i32
    %c0_i32_1 = arith.constant 0 : i32
    return %c0_i32, %c0_i32_0 : i32, i32
  }
  func.func @transform_18(%arg0: i32) -> (i32, i32) {
    %c0_i32 = arith.constant 0 : i32
    %c0_i32_0 = arith.constant 0 : i32
    return %arg0, %c0_i32 : i32, i32
  }
  func.func @transform_19(%arg0: i32) -> (i32, i32) {
    %c0_i32 = arith.constant 0 : i32
    %c0_i32_0 = arith.constant 0 : i32
    return %arg0, %c0_i32 : i32, i32
  }
  func.func @transform_20(%arg0: i32) -> (i32, i32) {
    %c0_i32 = arith.constant 0 : i32
    %c0_i32_0 = arith.constant 0 : i32
    return %arg0, %c0_i32 : i32, i32
  }
}

</mosaic_0001>

<bundles_post_ra>
// kernel: eeg_to_image_vae_forward.1
= control target key start
LH: loop header
LB: loop body
LE: loop exit
PB: predicated region body
PF: predicated region fallthrough
CT: control target
= control target key end

     0   :  { %s7046_s0 = inlined_call_operand.vmem [shape: bf16[8,128], index: 0, kind: input, shape index: {}]   ;;  %s7047_s1 = inlined_call_operand.vmem [shape: f32[8,128], index: 1, kind: input, shape index: {}]   ;;  %s7048_s2 = inlined_call_operand.hbm [shape: bf16[128,512], index: 2, kind: input, shape index: {}]   ;;  %s7049_s3 = inlined_call_operand.vmem [shape: f32[1,512], index: 3, kind: input, shape index: {}]   ;;  %s7050_s4 = inlined_call_operand.hbm [shape: bf16[512,256], index: 4, kind: input, shape index: {}]   ;;  %s7051_s5 = inlined_call_operand.vmem [shape: f32[1,256], index: 5, kind: input, shape index: {}]   ;;  %s7052_s6 = inlined_call_operand.hbm [shape: bf16[256,128], index: 6, kind: input, shape index: {}]   ;;  %s7053_s7 = inlined_call_operand.vmem [shape: f32[1,128], index: 7, kind: input, shape index: {}]   ;;  %s7054_s8 = inlined_call_operand.hbm [shape: bf16[128,256], index: 8, kind: input, shape index: {}]   ;;  %s7055_s9 = inlined_call_operand.vmem [shape: f32[1,256], index: 9, kind: input, shape index: {}]   ;;  %s7056_s10 = inlined_call_operand.hbm [shape: bf16[128,128], index: 10, kind: input, shape index: {}]   ;;  %s7057_s11 = inlined_call_operand.vmem [shape: f32[1,128], index: 11, kind: input, shape index: {}]   ;;  %s7058_s12 = inlined_call_operand.hbm [shape: bf16[128,256], index: 12, kind: input, shape index: {}]   ;;  %s7059_s13 = inlined_call_operand.vmem [shape: f32[1,256], index: 13, kind: input, shape index: {}]   ;;  %s7060_s14 = inlined_call_operand.hbm [shape: bf16[256,512], index: 14, kind: input, shape index: {}]   ;;  %s7061_s15 = inlined_call_operand.vmem [shape: f32[1,512], index: 15, kind: input, shape index: {}]   ;;  %s7062_s16 = inlined_call_operand.hbm [shape: bf16[512,1024], index: 16, kind: input, shape index: {}]   ;;  %s7063_s17 = inlined_call_operand.vmem [shape: f32[1,1024], index: 17, kind: input, shape index: {}]   ;;  %s7064_s18 = inlined_call_operand.vmem [shape: bf16[8,1024], index: 18, kind: output, shape index: {0}]   ;;  %s7065_s19 = inlined_call_operand.vmem [shape: f32[8,128], index: 19, kind: output, shape index: {1}]   ;;  %s7066_s20 = inlined_call_operand.vmem [shape: f32[8,128], index: 20, kind: output, shape index: {2}]  }
   0x1   :  { %7068 = sst [smem:[#allocation20_spill]] %s7046_s0 }
   0x2   :  { %7069 = sst [smem:[#allocation21_spill]] %s7047_s1 }
   0x3   :  { %7070 = sst [smem:[#allocation22_spill]] %s7048_s2 }
   0x4   :  { %7071 = sst [smem:[#allocation23_spill]] %s7049_s3 }
   0x5   :  { %7072 = sst [smem:[#allocation24_spill]] %s7050_s4 }
   0x6   :  { %7073 = sst [smem:[#allocation25_spill]] %s7063_s17 }
   0x7   :  { %7074 = sst [smem:[#allocation26_spill]] %s7064_s18 }
   0x8   :  { %26 = vsyncpa [#allocation3], 0 }
   0x9   :  { %27 = vsyncpa [#allocation5], 0 }
   0xa   :  { %28 = vsyncpa [#allocation8], 0 }
   0xb   :  { %29 = vsyncpa [#allocation11], 0  ;;  %s7075_s23 = sld [smem:[#allocation24_spill]] }
  0x11   :  { %s54_s24 = sshll.u32 %s7075_s23, 4  ;;  %s55_s24 = int_to_ptr.hbm [resolvable:$true] %s54_s24 }
  0x12   :  { %30 = vsyncpa [#allocation14], 0  ;;  %s6735_s2 = smov [#allocation4]   ;;  %s84_s27 = sshll.u32 %s7054_s8, 4  ;;  %s85_s27 = int_to_ptr.hbm [resolvable:$true] %s84_s27 }
  0x13   :  { %s56_s25 = sshll.u32 %s6735_s2, 4  ;;  %s6736_s28 = smov 128   ;;  %s57_s25 = int_to_ptr.vmem [resolvable:$true] %s56_s25 }
  0x14   :  { %s6737_s4 = smov 8   ;;  %s6738_s29 = smov [#allocation7]  }
  0x15   :  { %62 = dma.hbm_to_vmem [thread:$0]  %s55_s24, 8192, %s57_s25, [#allocation5], %s6736_s28, %s6736_s28, %s6737_s4  }
  0x16   :  { %s86_s30 = sshll.u32 %s6738_s29, 4  ;;  %s114_s1 = sshll.u32 %s7058_s12, 4  ;;  %s87_s30 = int_to_ptr.vmem [resolvable:$true] %s86_s30  ;;  %s115_s1 = int_to_ptr.hbm [resolvable:$true] %s114_s1 }
  0x17   :  { %92 = dma.hbm_to_vmem [thread:$0]  %s85_s27, 2048, %s87_s30, [#allocation8], %s6736_s28, %s6736_s28, %s6737_s4  }
  0x18   :  { %s7076_s2 = sld [smem:[#allocation22_spill]]  ;;  %s6739_s17 = smov [#allocation10]  }
  0x19   :  { %s116_s3 = sshll.u32 %s6739_s17, 4  ;;  %s6740_s8 = smov [#allocation2]   ;;  %s117_s3 = int_to_ptr.vmem [resolvable:$true] %s116_s3 }
  0x1a   :  { %122 = dma.hbm_to_vmem [thread:$0]  %s115_s1, 2048, %s117_s3, [#allocation11], %s6736_s28, %s6736_s28, %s6737_s4  }
  0x1b   :  { %s41_s24 = sshll.u32 %s6740_s8, 4  ;;  %s6741_s25 = smov 256   ;;  %s42_s24 = int_to_ptr.vmem [resolvable:$true] %s41_s24 }
  0x1c   :  { %s6742_s26 = smov 16   ;;  %s69_s0 = sshll.u32 %s7052_s6, 4  ;;  %s70_s0 = int_to_ptr.hbm [resolvable:$true] %s69_s0 }
  0x1d   :  { %s6743_s27 = smov [#allocation6]   ;;  %s99_s17 = sshll.u32 %s7056_s10, 4  ;;  %s100_s17 = int_to_ptr.hbm [resolvable:$true] %s99_s17 }
  0x1e   :  { %s39_s18 = sshll.u32 %s7076_s2, 4  ;;  %s71_s30 = sshll.u32 %s6743_s27, 4  ;;  %s40_s18 = int_to_ptr.hbm [resolvable:$true] %s39_s18  ;;  %s72_s30 = int_to_ptr.vmem [resolvable:$true] %s71_s30 }
  0x1f   :  { %47 = dma.hbm_to_vmem [thread:$0]  %s40_s18, 4096, %s42_s24, [#allocation3], %s6741_s25, %s6741_s25, %s6742_s26  }
  0x20   :  { %s6744_s23 = smov 64   ;;  %s6745_s28 = smov 4  }
  0x21   :  { %77 = dma.hbm_to_vmem [thread:$0]  %s70_s0, 2048, %s72_s30, [#allocation5], %s6744_s23, %s6744_s23, %s6745_s28  }
  0x22   :  { %s6746_s4 = smov [#allocation9]   ;;  %s129_s3 = sshll.u32 %s7060_s14, 4  ;;  %s130_s3 = int_to_ptr.hbm [resolvable:$true] %s129_s3 }
  0x23   :  { %s101_s1 = sshll.u32 %s6746_s4, 4  ;;  %s144_s24 = sshll.u32 %s7062_s16, 4  ;;  %s102_s1 = int_to_ptr.vmem [resolvable:$true] %s101_s1  ;;  %s145_s24 = int_to_ptr.hbm [resolvable:$true] %s144_s24 }
  0x24   :  { %107 = dma.hbm_to_vmem [thread:$0]  %s100_s17, 1024, %s102_s1, [#allocation8], %s6744_s23, %s6744_s23, %s6745_s28  }
  0x25   :  { %s6747_s29 = smov [#allocation12]   ;;  %s6748_s10 = smov [#allocation13]  }
  0x26   :  { %s131_s12 = sshll.u32 %s6747_s29, 4  ;;  %s146_s0 = sshll.u32 %s6748_s10, 4  ;;  %s132_s12 = int_to_ptr.vmem [resolvable:$true] %s131_s12  ;;  %s147_s0 = int_to_ptr.vmem [resolvable:$true] %s146_s0 }
  0x27   :  { %137 = dma.hbm_to_vmem [thread:$0]  %s130_s3, 8192, %s132_s12, [#allocation11], %s6741_s25, %s6741_s25, %s6742_s26  }
  0x28   :  { %s6749_s27 = smov 512   ;;  %s6750_s30 = smov 32  }
  0x29   :  { %152 = dma.hbm_to_vmem [thread:$0]  %s145_s24, 32768, %s147_s0, [#allocation14], %s6749_s27, %s6749_s27, %s6750_s30  }
  0x2a   :  { %6725 = dma.done.wait [#allocation3], 4096  }
  0x2b   :  { %6726 = vsyncadd [#allocation3], 4294963200 }
  0x2c   :  { %6727 = dma.done.wait [#allocation5], 10240  }
  0x2d   :  { %6728 = vsyncadd [#allocation5], 4294957056 }
  0x2e   :  { %6729 = dma.done.wait [#allocation8], 3072  }
  0x2f   :  { %6730 = vsyncadd [#allocation8], 4294964224 }
  0x30   :  { %6731 = dma.done.wait [#allocation11], 10240  }
  0x31   :  { %6732 = vsyncadd [#allocation11], 4294957056 }
  0x32   :  { %6733 = dma.done.wait [#allocation14], 32768  }
  0x33   :  { %6734 = vsyncadd [#allocation14], 4294934528  ;;  %v4227_v0 = vld [vmem:[#allocation2 + $0xe0] sm:$0xf]  ;;  %v6039_v1 = vld [vmem:[#allocation2 + $0xec] sm:$0xf0] }
  0x34   :  { %v6037_v2 = vld [vmem:[#allocation2 + $0xe4] sm:$0xf]  ;;  %v4228_v3 = vor.u32 %v6039_v1, %v4227_v0  ;;  %v4229_v4 = vld [vmem:[#allocation2 + $0xf0] sm:$0xf0]  ;;  %v4235_v5 = vld [vmem:[#allocation2 + $0xe8] sm:$0xf] }
  0x35   :  { %v6040_v6 = vld [vmem:[#allocation2 + $0xf4] sm:$0xf0]  ;;  %v4232_v7 = vor.u32 %v6037_v2, %v4229_v4  ;;  %v6038_v9 = vld [vmem:[#allocation2 + $0xec] sm:$0xf]  ;;  %v4237_v10 = vld [vmem:[#allocation2 + $0xf8] sm:$0xf0] }
  0x36   :  { %v4236_v8 = vor.u32 %v6040_v6, %v4235_v5  ;;  %v4211_v11 = vld [vmem:[#allocation2 + $0xc0] sm:$0xf]  ;;  %390 = vmatpush.bf16.msra.mxu0 %v4228_v3  ;;  %v4240_v12 = vor.u32 %v6038_v9, %v4237_v10  ;;  %v6035_v13 = vld [vmem:[#allocation2 + $0xcc] sm:$0xf0]  ;;  %v6033_v14 = vld [vmem:[#allocation2 + $0xc4] sm:$0xf] }
  0x37   :  { %v4213_v15 = vld [vmem:[#allocation2 + $0xd0] sm:$0xf0]  ;;  %403 = vmatpush.bf16.msra.mxu1 %v4232_v7  ;;  %v4212_v16 = vor.u32 %v6035_v13, %v4211_v11  ;;  %v4219_v18 = vld [vmem:[#allocation2 + $0xc8] sm:$0xf]  ;;  %v6036_v19 = vld [vmem:[#allocation2 + $0xd4] sm:$0xf0] }
  0x38   :  { %416 = vmatpush.bf16.msra.mxu2 %v4236_v8  ;;  %v4216_v17 = vor.u32 %v6033_v14, %v4213_v15  ;;  %v6034_v20 = vld [vmem:[#allocation2 + $0xcc] sm:$0xf]  ;;  %429 = vmatpush.bf16.msra.mxu3 %v4240_v12  ;;  %v4220_v21 = vor.u32 %v6036_v19, %v4219_v18  ;;  %v4221_v22 = vld [vmem:[#allocation2 + $0xd8] sm:$0xf0]  ;;  %v4195_v23 = vld [vmem:[#allocation2 + $0xa0] sm:$0xf] }
  0x39   :  { %v6031_v24 = vld [vmem:[#allocation2 + $0xac] sm:$0xf0]  ;;  %v4224_v25 = vor.u32 %v6034_v20, %v4221_v22  ;;  %v6029_v26 = vld [vmem:[#allocation2 + $0xa4] sm:$0xf]  ;;  %v4197_v27 = vld [vmem:[#allocation2 + $0xb0] sm:$0xf0] }
  0x3a   :  { %v4203_v28 = vld [vmem:[#allocation2 + $0xa8] sm:$0xf]  ;;  %391 = vmatpush.bf16.msra.mxu0 %v4212_v16  ;;  %v4196_v29 = vor.u32 %v6031_v24, %v4195_v23  ;;  %v6032_v30 = vld [vmem:[#allocation2 + $0xb4] sm:$0xf0]  ;;  %v6030_v31 = vld [vmem:[#allocation2 + $0xac] sm:$0xf]  ;;  %v4200_v33 = vor.u32 %v6029_v26, %v4197_v27 }
  0x3b   :  { %v4205_v32 = vld [vmem:[#allocation2 + $0xb8] sm:$0xf0]  ;;  %404 = vmatpush.bf16.msra.mxu1 %v4216_v17  ;;  %v4204_v34 = vor.u32 %v6032_v30, %v4203_v28  ;;  %v4179_v35 = vld [vmem:[#allocation2 + $0x80] sm:$0xf]  ;;  %v6027_v36 = vld [vmem:[#allocation2 + $0x8c] sm:$0xf0] }
  0x3c   :  { %417 = vmatpush.bf16.msra.mxu2 %v4220_v21  ;;  %v6025_v37 = vld [vmem:[#allocation2 + $0x84] sm:$0xf]  ;;  %430 = vmatpush.bf16.msra.mxu3 %v4224_v25  ;;  %v4208_v38 = vor.u32 %v6030_v31, %v4205_v32  ;;  %v4181_v39 = vld [vmem:[#allocation2 + $0x90] sm:$0xf0]  ;;  %v4187_v40 = vld [vmem:[#allocation2 + $0x88] sm:$0xf]  ;;  %v4180_v44 = vor.u32 %v6027_v36, %v4179_v35 }
  0x3d   :  { %v6028_v41 = vld [vmem:[#allocation2 + $0x94] sm:$0xf0]  ;;  %v6026_v42 = vld [vmem:[#allocation2 + $0x8c] sm:$0xf]  ;;  %v4189_v43 = vld [vmem:[#allocation2 + $0x98] sm:$0xf0]  ;;  %v4184_v45 = vor.u32 %v6025_v37, %v4181_v39 }
  0x3e   :  { %392 = vmatpush.bf16.msra.mxu0 %v4196_v29  ;;  %v4188_v46 = vor.u32 %v6028_v41, %v4187_v40  ;;  %v4163_v47 = vld [vmem:[#allocation2 + $0x60] sm:$0xf]  ;;  %v6023_v48 = vld [vmem:[#allocation2 + $0x6c] sm:$0xf0]  ;;  %v6021_v49 = vld [vmem:[#allocation2 + $0x64] sm:$0xf]  ;;  %v4192_v50 = vor.u32 %v6026_v42, %v4189_v43 }
  0x3f   :  { %405 = vmatpush.bf16.msra.mxu1 %v4200_v33  ;;  %v4165_v51 = vld [vmem:[#allocation2 + $0x70] sm:$0xf0]  ;;  %v4171_v52 = vld [vmem:[#allocation2 + $0x68] sm:$0xf]  ;;  %v6024_v53 = vld [vmem:[#allocation2 + $0x74] sm:$0xf0]  ;;  %v4164_v56 = vor.u32 %v6023_v48, %v4163_v47 }
  0x40   :  { %418 = vmatpush.bf16.msra.mxu2 %v4204_v34  ;;  %431 = vmatpush.bf16.msra.mxu3 %v4208_v38  ;;  %v6022_v54 = vld [vmem:[#allocation2 + $0x6c] sm:$0xf]  ;;  %v4173_v55 = vld [vmem:[#allocation2 + $0x78] sm:$0xf0]  ;;  %v4168_v57 = vor.u32 %v6021_v49, %v4165_v51  ;;  %v4172_v58 = vor.u32 %v6024_v53, %v4171_v52  ;;  %v4147_v59 = vld [vmem:[#allocation2 + $0x40] sm:$0xf] }
  0x41   :  { %v6019_v60 = vld [vmem:[#allocation2 + $0x4c] sm:$0xf0]  ;;  %v6017_v61 = vld [vmem:[#allocation2 + $0x44] sm:$0xf]  ;;  %v4176_v62 = vor.u32 %v6022_v54, %v4173_v55  ;;  %v4149_v63 = vld [vmem:[#allocation2 + $0x50] sm:$0xf0] }
  0x42   :  { %393 = vmatpush.bf16.msra.mxu0 %v4180_v44  ;;  %v4155_v0 = vld [vmem:[#allocation2 + $0x48] sm:$0xf]  ;;  %v6020_v1 = vld [vmem:[#allocation2 + $0x54] sm:$0xf0]  ;;  %v6018_v2 = vld [vmem:[#allocation2 + $0x4c] sm:$0xf]  ;;  %v4148_v4 = vor.u32 %v6019_v60, %v4147_v59  ;;  %v4152_v5 = vor.u32 %v6017_v61, %v4149_v63 }
  0x43   :  { %406 = vmatpush.bf16.msra.mxu1 %v4184_v45  ;;  %v4157_v3 = vld [vmem:[#allocation2 + $0x58] sm:$0xf0]  ;;  %v4156_v6 = vor.u32 %v6020_v1, %v4155_v0  ;;  %v4131_v7 = vld [vmem:[#allocation2 + $0x20] sm:$0xf]  ;;  %v6015_v8 = vld [vmem:[#allocation2 + $0x2c] sm:$0xf0] }
  0x44   :  { %419 = vmatpush.bf16.msra.mxu2 %v4188_v46  ;;  %432 = vmatpush.bf16.msra.mxu3 %v4192_v50  ;;  %v6013_v9 = vld [vmem:[#allocation2 + $0x24] sm:$0xf]  ;;  %v4160_v10 = vor.u32 %v6018_v2, %v4157_v3  ;;  %v4133_v11 = vld [vmem:[#allocation2 + $0x30] sm:$0xf0]  ;;  %v4139_v12 = vld [vmem:[#allocation2 + $0x28] sm:$0xf]  ;;  %v4132_v16 = vor.u32 %v6015_v8, %v4131_v7 }
  0x45   :  { %v6016_v13 = vld [vmem:[#allocation2 + $0x34] sm:$0xf0]  ;;  %v6014_v14 = vld [vmem:[#allocation2 + $0x2c] sm:$0xf]  ;;  %v4141_v15 = vld [vmem:[#allocation2 + $0x38] sm:$0xf0]  ;;  %v4136_v18 = vor.u32 %v6013_v9, %v4133_v11 }
  0x46   :  { %394 = vmatpush.bf16.msra.mxu0 %v4164_v56  ;;  %v4115_v17 = vld [vmem:[#allocation2] sm:$0xf]  ;;  %v4140_v19 = vor.u32 %v6016_v13, %v4139_v12  ;;  %v6011_v20 = vld [vmem:[#allocation2 + $0xc] sm:$0xf0]  ;;  %v6009_v21 = vld [vmem:[#allocation2 + $0x4] sm:$0xf]  ;;  %v4144_v23 = vor.u32 %v6014_v14, %v4141_v15 }
  0x47   :  { %407 = vmatpush.bf16.msra.mxu1 %v4168_v57  ;;  %v4117_v22 = vld [vmem:[#allocation2 + $0x10] sm:$0xf0]  ;;  %v4123_v24 = vld [vmem:[#allocation2 + $0x8] sm:$0xf]  ;;  %v6012_v25 = vld [vmem:[#allocation2 + $0x14] sm:$0xf0]  ;;  %v4116_v30 = vor.u32 %v6011_v20, %v4115_v17 }
  0x48   :  { %420 = vmatpush.bf16.msra.mxu2 %v4172_v58  ;;  %433 = vmatpush.bf16.msra.mxu3 %v4176_v62  ;;  %v6010_v26 = vld [vmem:[#allocation2 + $0xc] sm:$0xf]  ;;  %v4125_v27 = vld [vmem:[#allocation2 + $0x18] sm:$0xf0]  ;;  %v4299_v28 = vld [vmem:[#allocation4 + $0x70] sm:$0xf]  ;;  %v4120_v33 = vor.u32 %v6009_v21, %v4117_v22  ;;  %v4124_v34 = vor.u32 %v6012_v25, %v4123_v24 }
  0x49   :  { %v6056_v29 = vld [vmem:[#allocation4 + $0x74] sm:$0xf0]  ;;  %v4363_v31 = vld [vmem:[#allocation4 + $0xf0] sm:$0xf]  ;;  %v4128_v35 = vor.u32 %v6010_v26, %v4125_v27  ;;  %v4291_v37 = vld [vmem:[#allocation4 + $0x60] sm:$0xf] }
  0x4a   :  { %395 = vmatpush.bf16.msra.mxu0 %v4148_v4  ;;  %v6072_v32 = vld [vmem:[#allocation4 + $0xf4] sm:$0xf0]  ;;  %v4300_v36 = vor.u32 %v6056_v29, %v4299_v28  ;;  %v4427_v38 = vld [vmem:[#allocation4 + $0x170] sm:$0xf]  ;;  %v6054_v41 = vld [vmem:[#allocation4 + $0x64] sm:$0xf0] }
  0x4b   :  { %408 = vmatpush.bf16.msra.mxu1 %v4152_v5  ;;  %v6088_v39 = vld [vmem:[#allocation4 + $0x174] sm:$0xf0]  ;;  %v4364_v40 = vor.u32 %v6072_v32, %v4363_v31  ;;  %v4491_v42 = vld [vmem:[#allocation4 + $0x1f0] sm:$0xf]  ;;  %s7077_s25 = sld [smem:[#allocation20_spill]]  ;;  %v4292_v48 = vor.u32 %v6054_v41, %v4291_v37 }
  0x4c   :  { %421 = vmatpush.bf16.msra.mxu2 %v4156_v6  ;;  %434 = vmatpush.bf16.msra.mxu3 %v4160_v10  ;;  %v6104_v43 = vld [vmem:[#allocation4 + $0x1f4] sm:$0xf0]  ;;  %v4355_v45 = vld [vmem:[#allocation4 + $0xe0] sm:$0xf]  ;;  %v6070_v46 = vld [vmem:[#allocation4 + $0xe4] sm:$0xf0]  ;;  %v4428_v47 = vor.u32 %v6088_v39, %v4427_v38 }
  0x4d   :  { %v4492_v49 = vor.u32 %v6104_v43, %v4491_v42  ;;  %v4283_v50 = vld [vmem:[#allocation4 + $0x50] sm:$0xf]  ;;  %v4419_v51 = vld [vmem:[#allocation4 + $0x160] sm:$0xf]  ;;  %v6086_v52 = vld [vmem:[#allocation4 + $0x164] sm:$0xf0]  ;;  %v4356_v53 = vor.u32 %v6070_v46, %v4355_v45 }
  0x4e   :  { %396 = vmatpush.bf16.msra.mxu0 %v4132_v16  ;;  %v6052_v54 = vld [vmem:[#allocation4 + $0x54] sm:$0xf0]  ;;  %v4483_v55 = vld [vmem:[#allocation4 + $0x1e0] sm:$0xf]  ;;  %v6102_v56 = vld [vmem:[#allocation4 + $0x1e4] sm:$0xf0]  ;;  %v4420_v59 = vor.u32 %v6086_v52, %v4419_v51 }
  0x4f   :  { %409 = vmatpush.bf16.msra.mxu1 %v4136_v18  ;;  %v4347_v57 = vld [vmem:[#allocation4 + $0xd0] sm:$0xf]  ;;  %v6068_v58 = vld [vmem:[#allocation4 + $0xd4] sm:$0xf0]  ;;  %v4284_v60 = vor.u32 %v6052_v54, %v4283_v50  ;;  %v4484_v61 = vor.u32 %v6102_v56, %v4483_v55  ;;  %v4275_v62 = vld [vmem:[#allocation4 + $0x40] sm:$0xf] }
  0x50   :  { %422 = vmatpush.bf16.msra.mxu2 %v4140_v19  ;;  %435 = vmatpush.bf16.msra.mxu3 %v4144_v23  ;;  %v4411_v63 = vld [vmem:[#allocation4 + $0x150] sm:$0xf]  ;;  %v6084_v0 = vld [vmem:[#allocation4 + $0x154] sm:$0xf0]  ;;  %v4348_v1 = vor.u32 %v6068_v58, %v4347_v57  ;;  %v6050_v2 = vld [vmem:[#allocation4 + $0x44] sm:$0xf0] }
  0x51   :  { %v187_v44 = vld [vmem:[%s7077_s25] sm:$0xf]  ;;  %v4475_v3 = vld [vmem:[#allocation4 + $0x1d0] sm:$0xf]  ;;  %v6100_v4 = vld [vmem:[#allocation4 + $0x1d4] sm:$0xf0]  ;;  %v4412_v7 = vor.u32 %v6084_v0, %v4411_v63  ;;  %v4276_v8 = vor.u32 %v6050_v2, %v4275_v62 }
  0x52   :  { %397 = vmatpush.bf16.msra.mxu0 %v4116_v30  ;;  %v4339_v5 = vld [vmem:[#allocation4 + $0xc0] sm:$0xf]  ;;  %v6066_v6 = vld [vmem:[#allocation4 + $0xc4] sm:$0xf0]  ;;  %v4476_v9 = vor.u32 %v6100_v4, %v4475_v3  ;;  %v4267_v10 = vld [vmem:[#allocation4 + $0x30] sm:$0xf] }
  0x53   :  { %410 = vmatpush.bf16.msra.mxu1 %v4120_v33  ;;  %v4403_v11 = vld [vmem:[#allocation4 + $0x140] sm:$0xf]  ;;  %v6082_v12 = vld [vmem:[#allocation4 + $0x144] sm:$0xf0]  ;;  %v4340_v13 = vor.u32 %v6066_v6, %v4339_v5  ;;  %v6048_v14 = vld [vmem:[#allocation4 + $0x34] sm:$0xf0] }
  0x54   :  { %423 = vmatpush.bf16.msra.mxu2 %v4124_v34  ;;  %436 = vmatpush.bf16.msra.mxu3 %v4128_v35  ;;  %v4467_v15 = vld [vmem:[#allocation4 + $0x1c0] sm:$0xf]  ;;  %v6098_v16 = vld [vmem:[#allocation4 + $0x1c4] sm:$0xf0]  ;;  %v4331_v17 = vld [vmem:[#allocation4 + $0xb0] sm:$0xf]  ;;  %v4404_v19 = vor.u32 %v6082_v12, %v4403_v11  ;;  %v4268_v21 = vor.u32 %v6048_v14, %v4267_v10 }
  0x55   :  { %398 = vmatmul.bf16.vlgmr.msra.gmra.mxu0 %v187_v44  ;;  %v6064_v18 = vld [vmem:[#allocation4 + $0xb4] sm:$0xf0]  ;;  %v4259_v20 = vld [vmem:[#allocation4 + $0x20] sm:$0xf]  ;;  %v4468_v22 = vor.u32 %v6098_v16, %v4467_v15  ;;  %v6046_v23 = vld [vmem:[#allocation4 + $0x24] sm:$0xf0] }
  0x56   :  { %840 = vmatpush.bf16.msrb.mxu0 %v4300_v36  ;;  %411 = vmatmul.bf16.vlgmr.msra.gmra.mxu1 %v187_v44  ;;  %v4395_v24 = vld [vmem:[#allocation4 + $0x130] sm:$0xf]  ;;  %v6080_v25 = vld [vmem:[#allocation4 + $0x134] sm:$0xf0]  ;;  %v4332_v26 = vor.u32 %v6064_v18, %v4331_v17  ;;  %v4323_v27 = vld [vmem:[#allocation4 + $0xa0] sm:$0xf]  ;;  %v4260_v32 = vor.u32 %v6046_v23, %v4259_v20 }
  0x57   :  { %853 = vmatpush.bf16.msrb.mxu1 %v4364_v40  ;;  %424 = vmatmul.bf16.vlgmr.msra.gmra.mxu2 %v187_v44  ;;  %v4459_v28 = vld [vmem:[#allocation4 + $0x1b0] sm:$0xf]  ;;  %v6096_v29 = vld [vmem:[#allocation4 + $0x1b4] sm:$0xf0]  ;;  %v6062_v30 = vld [vmem:[#allocation4 + $0xa4] sm:$0xf0]  ;;  %v4396_v31 = vor.u32 %v6080_v25, %v4395_v24 }
  0x58   :  { %437 = vmatmul.bf16.vlgmr.msra.gmra.mxu3 %v187_v44  ;;  %866 = vmatpush.bf16.msrb.mxu2 %v4428_v47  ;;  %v4460_v33 = vor.u32 %v6096_v29, %v4459_v28  ;;  %v4251_v34 = vld [vmem:[#allocation4 + $0x10] sm:$0xf]  ;;  %v4387_v35 = vld [vmem:[#allocation4 + $0x120] sm:$0xf]  ;;  %v6078_v36 = vld [vmem:[#allocation4 + $0x124] sm:$0xf0]  ;;  %v4324_v37 = vor.u32 %v6062_v30, %v4323_v27 }
  0x59   :  { %879 = vmatpush.bf16.msrb.mxu3 %v4492_v49  ;;  %v6044_v38 = vld [vmem:[#allocation4 + $0x14] sm:$0xf0]  ;;  %v4451_v39 = vld [vmem:[#allocation4 + $0x1a0] sm:$0xf]  ;;  %v6094_v40 = vld [vmem:[#allocation4 + $0x1a4] sm:$0xf0]  ;;  %v4388_v43 = vor.u32 %v6078_v36, %v4387_v35 }
  0x5a   :  { %841 = vmatpush.bf16.msrb.mxu0 %v4292_v48  ;;  %v4315_v41 = vld [vmem:[#allocation4 + $0x90] sm:$0xf]  ;;  %v6060_v42 = vld [vmem:[#allocation4 + $0x94] sm:$0xf0]  ;;  %v4243_v44 = vld [vmem:[#allocation4] sm:$0xf]  ;;  %v4252_v45 = vor.u32 %v6044_v38, %v4251_v34  ;;  %v4452_v46 = vor.u32 %v6094_v40, %v4451_v39 }
  0x5b   :  { %854 = vmatpush.bf16.msrb.mxu1 %v4356_v53  ;;  %v6042_v47 = vld [vmem:[#allocation4 + $0x4] sm:$0xf0]  ;;  %v4379_v48 = vld [vmem:[#allocation4 + $0x110] sm:$0xf]  ;;  %v6076_v49 = vld [vmem:[#allocation4 + $0x114] sm:$0xf0]  ;;  %v4316_v50 = vor.u32 %v6060_v42, %v4315_v41 }
  0x5c   :  { %867 = vmatpush.bf16.msrb.mxu2 %v4420_v59  ;;  %v4307_v51 = vld [vmem:[#allocation4 + $0x80] sm:$0xf]  ;;  %v4443_v52 = vld [vmem:[#allocation4 + $0x190] sm:$0xf]  ;;  %v6092_v53 = vld [vmem:[#allocation4 + $0x194] sm:$0xf0]  ;;  %v4380_v59 = vor.u32 %v6076_v49, %v4379_v48 }
  0x5d   :  { %880 = vmatpush.bf16.msrb.mxu3 %v4484_v61  ;;  %v6058_v54 = vld [vmem:[#allocation4 + $0x84] sm:$0xf0]  ;;  %v6055_v55 = vld [vmem:[#allocation4 + $0x74] sm:$0xf]  ;;  %v4301_v56 = vld [vmem:[#allocation4 + $0x78] sm:$0xf0]  ;;  %v4444_v61 = vor.u32 %v6092_v53, %v4443_v52 }
  0x5e   :  { %842 = vmatpush.bf16.msrb.mxu0 %v4284_v60  ;;  %v6071_v57 = vld [vmem:[#allocation4 + $0xf4] sm:$0xf]  ;;  %v4365_v58 = vld [vmem:[#allocation4 + $0xf8] sm:$0xf0]  ;;  %v4244_v60 = vor.u32 %v6042_v47, %v4243_v44  ;;  %v6053_v62 = vld [vmem:[#allocation4 + $0x64] sm:$0xf]  ;;  %v4308_v2 = vor.u32 %v6058_v54, %v4307_v51  ;;  %v4304_v3 = vor.u32 %v6055_v55, %v4301_v56 }
  0x5f   :  { %855 = vmatpush.bf16.msrb.mxu1 %v4348_v1  ;;  %v4371_v63 = vld [vmem:[#allocation4 + $0x100] sm:$0xf]  ;;  %v6074_v0 = vld [vmem:[#allocation4 + $0x104] sm:$0xf0]  ;;  %v6087_v5 = vld [vmem:[#allocation4 + $0x174] sm:$0xf] }
  0x60   :  { %868 = vmatpush.bf16.msrb.mxu2 %v4412_v7  ;;  %v4435_v1 = vld [vmem:[#allocation4 + $0x180] sm:$0xf]  ;;  %v6090_v4 = vld [vmem:[#allocation4 + $0x184] sm:$0xf0]  ;;  %v4429_v6 = vld [vmem:[#allocation4 + $0x178] sm:$0xf0]  ;;  %v4368_v7 = vor.u32 %v6071_v57, %v4365_v58 }
  0x61   :  { %881 = vmatpush.bf16.msrb.mxu3 %v4476_v9  ;;  %v6103_v9 = vld [vmem:[#allocation4 + $0x1f4] sm:$0xf]  ;;  %v4493_v10 = vld [vmem:[#allocation4 + $0x1f8] sm:$0xf0]  ;;  %v6069_v11 = vld [vmem:[#allocation4 + $0xe4] sm:$0xf]  ;;  %v4436_v14 = vor.u32 %v6090_v4, %v4435_v1  ;;  %v4432_v15 = vor.u32 %v6087_v5, %v4429_v6 }
  0x62   :  { %843 = vmatpush.bf16.msrb.mxu0 %v4276_v8  ;;  %v4293_v8 = vld [vmem:[#allocation4 + $0x68] sm:$0xf0]  ;;  %v4496_v17 = vor.u32 %v6103_v9, %v4493_v10  ;;  %v4285_v20 = vld [vmem:[#allocation4 + $0x58] sm:$0xf0]  ;;  %v6085_v25 = vld [vmem:[#allocation4 + $0x164] sm:$0xf] }
  0x63   :  { %856 = vmatpush.bf16.msrb.mxu1 %v4340_v13  ;;  %v4357_v12 = vld [vmem:[#allocation4 + $0xe8] sm:$0xf0]  ;;  %v4372_v13 = vor.u32 %v6074_v0, %v4371_v63  ;;  %v4296_v16 = vor.u32 %v6053_v62, %v4293_v8  ;;  %v4349_v23 = vld [vmem:[#allocation4 + $0xd8] sm:$0xf0]  ;;  %v6101_v28 = vld [vmem:[#allocation4 + $0x1e4] sm:$0xf] }
  0x64   :  { %869 = vmatpush.bf16.msrb.mxu2 %v4404_v19  ;;  %v4360_v18 = vor.u32 %v6069_v11, %v4357_v12  ;;  %v6051_v19 = vld [vmem:[#allocation4 + $0x54] sm:$0xf]  ;;  %v4485_v29 = vld [vmem:[#allocation4 + $0x1e8] sm:$0xf0]  ;;  %v4413_v38 = vld [vmem:[#allocation4 + $0x158] sm:$0xf0] }
  0x65   :  { %882 = vmatpush.bf16.msrb.mxu3 %v4468_v22  ;;  %v4288_v22 = vor.u32 %v6051_v19, %v4285_v20  ;;  %v4488_v30 = vor.u32 %v6101_v28, %v4485_v29  ;;  %v4341_v35 = vld [vmem:[#allocation4 + $0xc8] sm:$0xf0]  ;;  %v6099_v39 = vld [vmem:[#allocation4 + $0x1d4] sm:$0xf]  ;;  %v4477_v41 = vld [vmem:[#allocation4 + $0x1d8] sm:$0xf0] }
  0x66   :  { %844 = vmatpush.bf16.msrb.mxu0 %v4268_v21  ;;  %v6067_v21 = vld [vmem:[#allocation4 + $0xd4] sm:$0xf]  ;;  %v4480_v42 = vor.u32 %v6099_v39, %v4477_v41  ;;  %v4269_v44 = vld [vmem:[#allocation4 + $0x38] sm:$0xf0]  ;;  %v6081_v49 = vld [vmem:[#allocation4 + $0x144] sm:$0xf] }
  0x67   :  { %857 = vmatpush.bf16.msrb.mxu1 %v4332_v26  ;;  %v4352_v24 = vor.u32 %v6067_v21, %v4349_v23  ;;  %v4421_v26 = vld [vmem:[#allocation4 + $0x168] sm:$0xf0]  ;;  %v4333_v47 = vld [vmem:[#allocation4 + $0xb8] sm:$0xf0]  ;;  %v6097_v51 = vld [vmem:[#allocation4 + $0x1c4] sm:$0xf] }
  0x68   :  { %870 = vmatpush.bf16.msrb.mxu2 %v4396_v31  ;;  %v4424_v27 = vor.u32 %v6085_v25, %v4421_v26  ;;  %v6049_v31 = vld [vmem:[#allocation4 + $0x44] sm:$0xf]  ;;  %v4469_v53 = vld [vmem:[#allocation4 + $0x1c8] sm:$0xf0]  ;;  %v4397_v62 = vld [vmem:[#allocation4 + $0x138] sm:$0xf0] }
  0x69   :  { %883 = vmatpush.bf16.msrb.mxu3 %v4460_v33  ;;  %v6065_v33 = vld [vmem:[#allocation4 + $0xc4] sm:$0xf]  ;;  %v4472_v54 = vor.u32 %v6097_v51, %v4469_v53  ;;  %v4261_v56 = vld [vmem:[#allocation4 + $0x28] sm:$0xf0]  ;;  %v6095_v63 = vld [vmem:[#allocation4 + $0x1b4] sm:$0xf] }
  0x6a   :  { %845 = vmatpush.bf16.msrb.mxu0 %v4260_v32  ;;  %v4277_v32 = vld [vmem:[#allocation4 + $0x48] sm:$0xf0]  ;;  %v4344_v36 = vor.u32 %v6065_v33, %v4341_v35  ;;  %v6045_v55 = vld [vmem:[#allocation4 + $0x24] sm:$0xf]  ;;  %v4461_v1 = vld [vmem:[#allocation4 + $0x1b8] sm:$0xf0] }
  0x6b   :  { %858 = vmatpush.bf16.msrb.mxu1 %v4324_v37  ;;  %v4280_v34 = vor.u32 %v6049_v31, %v4277_v32  ;;  %v6083_v37 = vld [vmem:[#allocation4 + $0x154] sm:$0xf]  ;;  %v6061_v57 = vld [vmem:[#allocation4 + $0xa4] sm:$0xf]  ;;  %v4264_v58 = vor.u32 %v6045_v55, %v4261_v56  ;;  %v4253_v4 = vld [vmem:[#allocation4 + $0x18] sm:$0xf0] }
  0x6c   :  { %871 = vmatpush.bf16.msrb.mxu2 %v4388_v43  ;;  %v4416_v40 = vor.u32 %v6083_v37, %v4413_v38  ;;  %v6047_v43 = vld [vmem:[#allocation4 + $0x34] sm:$0xf]  ;;  %v6077_v8 = vld [vmem:[#allocation4 + $0x124] sm:$0xf]  ;;  %v4389_v9 = vld [vmem:[#allocation4 + $0x128] sm:$0xf0] }
  0x6d   :  { %884 = vmatpush.bf16.msrb.mxu3 %v4452_v46  ;;  %v6063_v46 = vld [vmem:[#allocation4 + $0xb4] sm:$0xf]  ;;  %v4392_v11 = vor.u32 %v6077_v8, %v4389_v9  ;;  %v6093_v12 = vld [vmem:[#allocation4 + $0x1a4] sm:$0xf]  ;;  %v4445_v25 = vld [vmem:[#allocation4 + $0x198] sm:$0xf0] }
  0x6e   :  { %846 = vmatpush.bf16.msrb.mxu0 %v4252_v45  ;;  %v4272_v45 = vor.u32 %v6047_v43, %v4269_v44  ;;  %v4336_v48 = vor.u32 %v6063_v46, %v4333_v47  ;;  %v6059_v5 = vld [vmem:[#allocation4 + $0x94] sm:$0xf]  ;;  %v4373_v28 = vld [vmem:[#allocation4 + $0x108] sm:$0xf0]  ;;  %v6089_v29 = vld [vmem:[#allocation4 + $0x184] sm:$0xf] }
  0x6f   :  { %859 = vmatpush.bf16.msrb.mxu1 %v4316_v50  ;;  %v4405_v50 = vld [vmem:[#allocation4 + $0x148] sm:$0xf0]  ;;  %v6075_v21 = vld [vmem:[#allocation4 + $0x114] sm:$0xf]  ;;  %s7078_s22 = sld [smem:[#allocation23_spill]]  ;;  %v6112_v43 = vld [vmem:[#allocation6 + $0x38] sm:$0xff] }
  0x70   :  { %872 = vmatpush.bf16.msrb.mxu2 %v4380_v59  ;;  %v4408_v52 = vor.u32 %v6081_v49, %v4405_v50  ;;  %v4325_v59 = vld [vmem:[#allocation4 + $0xa8] sm:$0xf0]  ;;  %v6091_v23 = vld [vmem:[#allocation4 + $0x194] sm:$0xf]  ;;  %v514_v9 = vld [vmem:[%s7051_s5] sm:$0x3] }
  0x71   :  { %885 = vmatpush.bf16.msrb.mxu3 %v4444_v61  ;;  %v6079_v61 = vld [vmem:[#allocation4 + $0x134] sm:$0xf]  ;;  %v4448_v26 = vor.u32 %v6091_v23, %v4445_v25  ;;  %v4437_v31 = vld [vmem:[#allocation4 + $0x188] sm:$0xf0]  ;;  %s7079_s6 = sld [smem:[#allocation21_spill]] }
  0x72   :  { %847 = vmatpush.bf16.msrb.mxu0 %v4244_v60  ;;  %v4328_v60 = vor.u32 %v6061_v57, %v4325_v59  ;;  %v4400_v0 = vor.u32 %v6079_v61, %v4397_v62  ;;  %v4440_v33 = vor.u32 %v6089_v29, %v4437_v31  ;;  %v6111_v51 = vld [vmem:[#allocation6 + $0x30] sm:$0xff]  ;;  %v6110_v57 = vld [vmem:[#allocation6 + $0x28] sm:$0xff]  ;;  %v6109_v61 = vld [vmem:[#allocation6 + $0x20] sm:$0xff]  ;;  %s7080_s10 = sld [smem:[#allocation25_spill]] }
  0x73   :  { %860 = vmatpush.bf16.msrb.mxu1 %v4308_v2  ;;  %v4464_v2 = vor.u32 %v6095_v63, %v4461_v1  ;;  %v6120_v62 = vld [vmem:[#allocation6 + $0x78] sm:$0xff]  ;;  %v6119_v1 = vld [vmem:[#allocation6 + $0x70] sm:$0xff]  ;;  %v6114_v8 = vld [vmem:[#allocation6 + $0x48] sm:$0xff]  ;;  %s7083_s30 = sld [smem:[#allocation26_spill]] }
  0x74   :  { %873 = vmatpush.bf16.msrb.mxu2 %v4372_v13  ;;  %v4453_v13 = vld [vmem:[#allocation4 + $0x1a8] sm:$0xf0]  ;;  %v6108_v63 = vld [vmem:[#allocation6 + $0x18] sm:$0xff] }
  0x75   :  { %886 = vmatpush.bf16.msrb.mxu3 %v4436_v14  ;;  %v6041_v14 = vld [vmem:[#allocation4 + $0x4] sm:$0xf]  ;;  %v220_v32 = vld [vmem:[%s7078_s22] sm:$0xf]  ;;  %v4613_v25 = vld [vmem:[#allocation7 + $0x68] sm:$0xf0] }
  0x76   :  { %892 = vmatpush.bf16.msra.mxu0 %v4304_v3  ;;  %v6043_v3 = vld [vmem:[#allocation4 + $0x14] sm:$0xf]  ;;  %v223_v35 = vperm.slane %v220_v32, 1 }
  0x77   :  { %905 = vmatpush.bf16.msra.mxu1 %v4368_v7  ;;  %v4256_v6 = vor.u32 %v6043_v3, %v4253_v4  ;;  %v4317_v7 = vld [vmem:[#allocation4 + $0x98] sm:$0xf0]  ;;  %v6118_v3 = vld [vmem:[#allocation6 + $0x68] sm:$0xff]  ;;  %v6105_v4 = vld [vmem:[#allocation6] sm:$0xff] }
  0x78   :  { %918 = vmatpush.bf16.msra.mxu2 %v4432_v15  ;;  %v4320_v10 = vor.u32 %v6059_v5, %v4317_v7  ;;  %v4456_v15 = vor.u32 %v6093_v12, %v4453_v13  ;;  %v6117_v5 = vld [vmem:[#allocation6 + $0x60] sm:$0xff]  ;;  %v6115_v7 = vld [vmem:[#allocation6 + $0x50] sm:$0xff]  ;;  %v516_v12 = vperm.slane %v514_v9, 0 }
  0x79   :  { %931 = vmatpush.bf16.msra.mxu3 %v4496_v17  ;;  %v6057_v17 = vld [vmem:[#allocation4 + $0x84] sm:$0xf] }
  0x7a   :  { %893 = vmatpush.bf16.msra.mxu0 %v4296_v16  ;;  %v4245_v16 = vld [vmem:[#allocation4 + $0x8] sm:$0xf0]  ;;  %v6113_v13 = vld [vmem:[#allocation6 + $0x40] sm:$0xff] }
  0x7b   :  { %906 = vmatpush.bf16.msra.mxu1 %v4360_v18  ;;  %v4309_v18 = vld [vmem:[#allocation4 + $0x88] sm:$0xf0]  ;;  %v4248_v19 = vor.u32 %v6041_v14, %v4245_v16  ;;  %v6136_v16 = vld [vmem:[#allocation7 + $0x74] sm:$0xf0] }
  0x7c   :  { %919 = vmatpush.bf16.msra.mxu2 %v4424_v27  ;;  %v4312_v20 = vor.u32 %v6057_v17, %v4309_v18  ;;  %v6073_v27 = vld [vmem:[#allocation4 + $0x104] sm:$0xf]  ;;  %v6135_v17 = vld [vmem:[#allocation7 + $0x74] sm:$0xf] }
  0x7d   :  { %932 = vmatpush.bf16.msra.mxu3 %v4488_v30  ;;  %v4376_v30 = vor.u32 %v6073_v27, %v4373_v28 }
  0x7e   :  { %894 = vmatpush.bf16.msra.mxu0 %v4288_v22  ;;  %v4381_v22 = vld [vmem:[#allocation4 + $0x118] sm:$0xf0] }
  0x7f   :  { %907 = vmatpush.bf16.msra.mxu1 %v4352_v24  ;;  %v4384_v24 = vor.u32 %v6075_v21, %v4381_v22  ;;  %v6134_v21 = vld [vmem:[#allocation7 + $0x64] sm:$0xf0] }
  0x80   :  { %920 = vmatpush.bf16.msra.mxu2 %v4416_v40 }
  0x81   :  { %933 = vmatpush.bf16.msra.mxu3 %v4480_v42  ;;  %v224_v42 = vperm.slane %v220_v32, 2 }
  0x82   :  { %895 = vmatpush.bf16.msra.mxu0 %v4280_v34  ;;  %v222_v34 = vperm.slane %v220_v32, 0 }
  0x83   :  { %908 = vmatpush.bf16.msra.mxu1 %v4344_v36 }
  0x84   :  { %921 = vmatpush.bf16.msra.mxu2 %v4408_v52 }
  0x85   :  { %934 = vmatpush.bf16.msra.mxu3 %v4472_v54 }
  0x86   :  { %896 = vmatpush.bf16.msra.mxu0 %v4272_v45  ;;  %v225_v45 = vperm.slane %v220_v32, 3 }
  0x87   :  { %909 = vmatpush.bf16.msra.mxu1 %v4336_v48 }
  0x88   :  { %922 = vmatpush.bf16.msra.mxu2 %v4400_v0  ;;  %v6107_v0 = vld [vmem:[#allocation6 + $0x10] sm:$0xff] }
  0x89   :  { %935 = vmatpush.bf16.msra.mxu3 %v4464_v2  ;;  %v6106_v2 = vld [vmem:[#allocation6 + $0x8] sm:$0xff] }
  0x8a   :  { %897 = vmatpush.bf16.msra.mxu0 %v4264_v58 }
  0x8b   :  { %910 = vmatpush.bf16.msra.mxu1 %v4328_v60 }
  0x8c   :  { %923 = vmatpush.bf16.msra.mxu2 %v4392_v11 }
  0x8d   :  { %936 = vmatpush.bf16.msra.mxu3 %v4456_v15  ;;  %v4619_v15 = vld [vmem:[#allocation7 + $0x70] sm:$0xf] }
  0x8e   :  { %898 = vmatpush.bf16.msra.mxu0 %v4256_v6  ;;  %v6116_v6 = vld [vmem:[#allocation6 + $0x58] sm:$0xff]  ;;  %v4620_v18 = vor.u32 %v6136_v16, %v4619_v15  ;;  %v6123_v15 = vld [vmem:[#allocation7 + $0x14] sm:$0xf] }
  0x8f   :  { %911 = vmatpush.bf16.msra.mxu1 %v4320_v10 }
  0x90   :  { %924 = vmatpush.bf16.msra.mxu2 %v4384_v24  ;;  %v6133_v24 = vld [vmem:[#allocation7 + $0x64] sm:$0xf] }
  0x91   :  { %937 = vmatpush.bf16.msra.mxu3 %v4448_v26  ;;  %v4616_v29 = vor.u32 %v6133_v24, %v4613_v25  ;;  %v6144_v25 = vld [vmem:[#allocation9 + $0x38] sm:$0xff] }
  0x92   :  { %899 = vmatpush.bf16.msra.mxu0 %v4248_v19  ;;  %v4621_v19 = vld [vmem:[#allocation7 + $0x78] sm:$0xf0] }
  0x93   :  { %912 = vmatpush.bf16.msra.mxu1 %v4312_v20  ;;  %v4611_v20 = vld [vmem:[#allocation7 + $0x60] sm:$0xf]  ;;  %v4624_v23 = vor.u32 %v6135_v17, %v4621_v19  ;;  %v4573_v17 = vld [vmem:[#allocation7 + $0x18] sm:$0xf0] }
  0x94   :  { %925 = vmatpush.bf16.msra.mxu2 %v4376_v30  ;;  %v4612_v27 = vor.u32 %v6134_v21, %v4611_v20  ;;  %v4563_v19 = vld [vmem:[#allocation7] sm:$0xf]  ;;  %v6122_v20 = vld [vmem:[#allocation7 + $0x4] sm:$0xf0]  ;;  %v6121_v21 = vld [vmem:[#allocation7 + $0x4] sm:$0xf] }
  0x95   :  { %938 = vmatpush.bf16.msra.mxu3 %v4440_v33 }
  0xd2   :  { %v399_v36 = vpop.f32.mrf.mxu0 }
  0xd3   :  { %v400_v37 = vadd.f32 %v399_v36, %v222_v34  ;;  %v412_v38 = vpop.f32.mrf.mxu1 }
  0xd4   :  { %v413_v39 = vadd.f32 %v412_v38, %v223_v35  ;;  %v517_v38 = vperm.slane %v514_v9, 1  ;;  %v6125_v9 = vld [vmem:[#allocation7 + $0x24] sm:$0xf] }
  0xd5   :  { %v442_v40 = vmax.f32 %v400_v37, 0.0 }
  0xd6   :  { %v443_v41 = vmax.f32 %v413_v39, 0.0 }
  0xd7   :  { %v446_v44 = vpack.c.bf16 %v442_v40, %v442_v40 }
  0xd8   :  { %v447_v46 = vpack.c.bf16 %v443_v41, %v443_v41 }
  0xd9   :  { %848 = vmatmul.bf16.vlgmr.msrb.gmra.mxu0 %v446_v44 }
  0xda   :  { %v425_v47 = vpop.f32.mrf.mxu2  ;;  %861 = vmatmul.bf16.vlgmr.msrb.gmra.mxu1 %v447_v46  ;;  %v401_v50 = vpop.f32.mrf.mxu0  ;;  %1080 = vmatpush.bf16.msrb.mxu0 %v6112_v43 }
  0xdb   :  { %v426_v48 = vadd.f32 %v425_v47, %v224_v42  ;;  %v438_v49 = vpop.f32.mrf.mxu3  ;;  %v414_v53 = vpop.f32.mrf.mxu1  ;;  %1093 = vmatpush.bf16.msrb.mxu1 %v6120_v62 }
  0xdc   :  { %v439_v52 = vadd.f32 %v438_v49, %v225_v45  ;;  %v4603_v53 = vld [vmem:[#allocation7 + $0x50] sm:$0xf] }
  0xdd   :  { %v444_v54 = vmax.f32 %v426_v48, 0.0 }
  0xde   :  { %v445_v55 = vmax.f32 %v439_v52, 0.0  ;;  %1081 = vmatpush.bf16.msrb.mxu0 %v6111_v51 }
  0xdf   :  { %v448_v56 = vpack.c.bf16 %v444_v54, %v444_v54  ;;  %1094 = vmatpush.bf16.msrb.mxu1 %v6119_v1  ;;  %v6132_v54 = vld [vmem:[#allocation7 + $0x54] sm:$0xf0]  ;;  %v4587_v1 = vld [vmem:[#allocation7 + $0x30] sm:$0xf] }
  0xe0   :  { %v449_v58 = vpack.c.bf16 %v445_v55, %v445_v55  ;;  %v6131_v55 = vld [vmem:[#allocation7 + $0x54] sm:$0xf] }
  0xe1   :  { %874 = vmatmul.bf16.vlgmr.msrb.gmra.mxu2 %v448_v56 }
  0xe2   :  { %887 = vmatmul.bf16.vlgmr.msrb.gmra.mxu3 %v449_v58  ;;  %v427_v59 = vpop.f32.mrf.mxu2  ;;  %1082 = vmatpush.bf16.msrb.mxu0 %v6110_v57  ;;  %v4605_v57 = vld [vmem:[#allocation7 + $0x58] sm:$0xf0] }
  0xe3   :  { %v440_v60 = vpop.f32.mrf.mxu3  ;;  %1095 = vmatpush.bf16.msrb.mxu1 %v6118_v3  ;;  %1210 = vmatpush.bf16.msrb.mxu2 %v4620_v18  ;;  %v4595_v59 = vld [vmem:[#allocation7 + $0x40] sm:$0xf]  ;;  %v6127_v3 = vld [vmem:[#allocation7 + $0x34] sm:$0xf]  ;;  %v4576_v18 = vor.u32 %v6123_v15, %v4573_v17  ;;  %v6150_v17 = vld [vmem:[#allocation10 + $0x24] sm:$0xf0] }
  0xe4   :  { %1223 = vmatpush.bf16.msrb.mxu3 %v4624_v23  ;;  %v6130_v60 = vld [vmem:[#allocation7 + $0x44] sm:$0xf0]  ;;  %v4565_v23 = vld [vmem:[#allocation7 + $0x8] sm:$0xf0] }
  0xe5   :  { %v4596_v62 = vor.u32 %v6130_v60, %v4595_v59  ;;  %v4568_v24 = vor.u32 %v6121_v21, %v4565_v23 }
  0xe6   :  { %1083 = vmatpush.bf16.msrb.mxu0 %v6109_v61  ;;  %v6129_v61 = vld [vmem:[#allocation7 + $0x44] sm:$0xf] }
  0xe7   :  { %1096 = vmatpush.bf16.msrb.mxu1 %v6117_v5  ;;  %1211 = vmatpush.bf16.msrb.mxu2 %v4612_v27  ;;  %v4589_v5 = vld [vmem:[#allocation7 + $0x38] sm:$0xf0]  ;;  %v6142_v27 = vld [vmem:[#allocation9 + $0x28] sm:$0xff] }
  0xe8   :  { %1224 = vmatpush.bf16.msrb.mxu3 %v4616_v29 }
  0xe9   :  { %900 = vmatmul.bf16.vlgmr.msra.gmra.mxu0 %v446_v44 }
  0xea   :  { %913 = vmatmul.bf16.vlgmr.msra.gmra.mxu1 %v447_v46  ;;  %1084 = vmatpush.bf16.msrb.mxu0 %v6108_v63  ;;  %v4597_v63 = vld [vmem:[#allocation7 + $0x48] sm:$0xf0] }
  0xeb   :  { %1097 = vmatpush.bf16.msrb.mxu1 %v6116_v6  ;;  %v4592_v6 = vor.u32 %v6127_v3, %v4589_v5 }
  0xee   :  { %1085 = vmatpush.bf16.msrb.mxu0 %v6107_v0  ;;  %v4600_v0 = vor.u32 %v6129_v61, %v4597_v63  ;;  %v4691_v61 = vld [vmem:[#allocation10 + $0x40] sm:$0xf] }
  0xef   :  { %1098 = vmatpush.bf16.msrb.mxu1 %v6115_v7  ;;  %v4579_v7 = vld [vmem:[#allocation7 + $0x20] sm:$0xf] }
  0xf1   :  { %926 = vmatmul.bf16.vlgmr.msra.gmra.mxu2 %v448_v56  ;;  %v4604_v56 = vor.u32 %v6132_v54, %v4603_v53  ;;  %v4699_v54 = vld [vmem:[#allocation10 + $0x50] sm:$0xf] }
  0xf2   :  { %939 = vmatmul.bf16.vlgmr.msra.gmra.mxu3 %v449_v58  ;;  %1086 = vmatpush.bf16.msrb.mxu0 %v6106_v2  ;;  %v4608_v58 = vor.u32 %v6131_v55, %v4605_v57  ;;  %v6128_v2 = vld [vmem:[#allocation7 + $0x34] sm:$0xf0]  ;;  %v4701_v57 = vld [vmem:[#allocation10 + $0x58] sm:$0xf0] }
  0xf3   :  { %1099 = vmatpush.bf16.msrb.mxu1 %v6114_v8  ;;  %1212 = vmatpush.bf16.msrb.mxu2 %v4604_v56  ;;  %v6126_v8 = vld [vmem:[#allocation7 + $0x24] sm:$0xf0]  ;;  %v6156_v55 = vld [vmem:[#allocation10 + $0x54] sm:$0xf0]  ;;  %v6155_v56 = vld [vmem:[#allocation10 + $0x54] sm:$0xf] }
  0xf4   :  { %1225 = vmatpush.bf16.msrb.mxu3 %v4608_v58  ;;  %v1124_v58 = vld [vmem:[%s7055_s9] sm:$0x3]  ;;  %v4700_v59 = vor.u32 %v6156_v55, %v4699_v54  ;;  %v4704_v60 = vor.u32 %v6155_v56, %v4701_v57  ;;  %v6223_v54 = vld [vmem:[#allocation12 + $0x1ec] sm:$0xf0]  ;;  %v6221_v55 = vld [vmem:[#allocation12 + $0x1e4] sm:$0xf] }
  0xf5   :  { %v1126_v63 = vperm.slane %v1124_v58, 0  ;;  %v4965_v56 = vld [vmem:[#allocation12 + $0x1f0] sm:$0xf0] }
  0xf6   :  { %1087 = vmatpush.bf16.msrb.mxu0 %v6105_v4  ;;  %v4588_v4 = vor.u32 %v6128_v2, %v4587_v1  ;;  %v6153_v1 = vld [vmem:[#allocation10 + $0x44] sm:$0xf]  ;;  %v4693_v2 = vld [vmem:[#allocation10 + $0x48] sm:$0xf0] }
  0xf7   :  { %1100 = vmatpush.bf16.msrb.mxu1 %v6113_v13  ;;  %1213 = vmatpush.bf16.msrb.mxu2 %v4596_v62  ;;  %v4571_v13 = vld [vmem:[#allocation7 + $0x10] sm:$0xf]  ;;  %v6154_v62 = vld [vmem:[#allocation10 + $0x44] sm:$0xf0] }
  0xf8   :  { %1226 = vmatpush.bf16.msrb.mxu3 %v4600_v0  ;;  %v1127_v0 = vperm.slane %v1124_v58, 1  ;;  %v4692_v3 = vor.u32 %v6154_v62, %v4691_v61  ;;  %v6183_v61 = vld [vmem:[#allocation12 + $0xac] sm:$0xf0]  ;;  %v6181_v62 = vld [vmem:[#allocation12 + $0xa4] sm:$0xf] }
  0xfa   :  { %1313 = vmatpush.bf16.msra.mxu0 %v6144_v25  ;;  %v1238_v25 = vld [vmem:[%s7079_s6] sm:$0xff] }
  0xfb   :  { %1214 = vmatpush.bf16.msrb.mxu2 %v4588_v4 }
  0xfc   :  { %1227 = vmatpush.bf16.msrb.mxu3 %v4592_v6  ;;  %v4696_v6 = vor.u32 %v6153_v1, %v4693_v2  ;;  %v6219_v1 = vld [vmem:[#allocation12 + $0x1cc] sm:$0xf0] }
 0x156   :  { %v849_v10 = vpop.f32.mrf.mxu0 }
 0x157   :  { %v862_v11 = vpop.f32.mrf.mxu1  ;;  %v850_v14 = vadd.f32 %v849_v10, %v516_v12  ;;  %v4580_v10 = vor.u32 %v6126_v8, %v4579_v7  ;;  %v4683_v7 = vld [vmem:[#allocation10 + $0x30] sm:$0xf]  ;;  %v6152_v8 = vld [vmem:[#allocation10 + $0x34] sm:$0xf0] }
 0x159   :  { %v863_v28 = vadd.f32 %v862_v11, %v850_v14  ;;  %v4581_v11 = vld [vmem:[#allocation7 + $0x28] sm:$0xf0]  ;;  %1215 = vmatpush.bf16.msrb.mxu2 %v4580_v10  ;;  %v6124_v14 = vld [vmem:[#allocation7 + $0x14] sm:$0xf0] }
 0x15a   :  { %v4584_v12 = vor.u32 %v6125_v9, %v4581_v11  ;;  %v4572_v16 = vor.u32 %v6124_v14, %v4571_v13  ;;  %v6151_v11 = vld [vmem:[#allocation10 + $0x34] sm:$0xf]  ;;  %v4684_v14 = vor.u32 %v6152_v8, %v4683_v7  ;;  %v4787_v7 = vld [vmem:[#allocation12 + $0x80] sm:$0xf]  ;;  %v6179_v8 = vld [vmem:[#allocation12 + $0x8c] sm:$0xf0] }
 0x15c   :  { %1228 = vmatpush.bf16.msrb.mxu3 %v4584_v12  ;;  %v4685_v12 = vld [vmem:[#allocation10 + $0x38] sm:$0xf0] }
 0x15d   :  { %1216 = vmatpush.bf16.msrb.mxu2 %v4572_v16  ;;  %v4688_v15 = vor.u32 %v6151_v11, %v4685_v12  ;;  %v4675_v16 = vld [vmem:[#allocation10 + $0x20] sm:$0xf]  ;;  %v6215_v11 = vld [vmem:[#allocation12 + $0x1ac] sm:$0xf0]  ;;  %v6213_v12 = vld [vmem:[#allocation12 + $0x1a4] sm:$0xf] }
 0x15e   :  { %v851_v22 = vpop.f32.mrf.mxu0  ;;  %v4676_v21 = vor.u32 %v6150_v17, %v4675_v16 }
 0x15f   :  { %v864_v26 = vpop.f32.mrf.mxu1  ;;  %v4564_v22 = vor.u32 %v6122_v20, %v4563_v19  ;;  %v6149_v19 = vld [vmem:[#allocation10 + $0x24] sm:$0xf]  ;;  %v4677_v20 = vld [vmem:[#allocation10 + $0x28] sm:$0xf0] }
 0x160   :  { %1229 = vmatpush.bf16.msrb.mxu3 %v4576_v18  ;;  %v6143_v26 = vld [vmem:[#allocation9 + $0x30] sm:$0xff] }
 0x161   :  { %1217 = vmatpush.bf16.msrb.mxu2 %v4564_v22  ;;  %1314 = vmatpush.bf16.msra.mxu0 %v6143_v26 }
 0x164   :  { %v875_v30 = vpop.f32.mrf.mxu2  ;;  %1230 = vmatpush.bf16.msrb.mxu3 %v4568_v24  ;;  %v4680_v24 = vor.u32 %v6149_v19, %v4677_v20  ;;  %v4788_v19 = vor.u32 %v6179_v8, %v4787_v7  ;;  %v6211_v20 = vld [vmem:[#allocation12 + $0x18c] sm:$0xf0] }
 0x165   :  { %v876_v31 = vadd.f32 %v875_v30, %v863_v28  ;;  %v888_v32 = vpop.f32.mrf.mxu3  ;;  %1315 = vmatpush.bf16.msra.mxu0 %v6142_v27  ;;  %v6497_v30 = vld [vmem:[%s7053_s7] ss:$0 sm:$0xff] }
 0x166   :  { %v901_v34 = vpop.f32.mrf.mxu0 }
 0x167   :  { %v889_v33 = vadd.f32 %v888_v32, %v876_v31  ;;  %v914_v35 = vpop.f32.mrf.mxu1  ;;  %v902_v41 = vadd.f32 %v901_v34, %v517_v38  ;;  %v6140_v38 = vld [vmem:[#allocation9 + $0x18] sm:$0xff] }
 0x169   :  { %v944_v36 = vmax.f32 %v889_v33, 0.0  ;;  %v915_v44 = vadd.f32 %v914_v35, %v902_v41  ;;  %v6137_v41 = vld [vmem:[#allocation9] sm:$0xff] }
 0x16b   :  { %v946_v37 = vpack.c.bf16 %v944_v36, %v944_v36 }
 0x16c   :  { %v877_v39 = vpop.f32.mrf.mxu2 }
 0x16d   :  { %v890_v40 = vpop.f32.mrf.mxu3  ;;  %1088 = vmatmul.bf16.vlgmr.msrb.gmra.mxu0 %v946_v37  ;;  %v6141_v37 = vld [vmem:[#allocation9 + $0x20] sm:$0xff]  ;;  %v6139_v39 = vld [vmem:[#allocation9 + $0x10] sm:$0xff] }
 0x16e   :  { %v903_v42 = vpop.f32.mrf.mxu0  ;;  %1316 = vmatpush.bf16.msra.mxu0 %v6141_v37  ;;  %v6138_v40 = vld [vmem:[#allocation9 + $0x8] sm:$0xff] }
 0x16f   :  { %v916_v43 = vpop.f32.mrf.mxu1  ;;  %v4715_v42 = vld [vmem:[#allocation10 + $0x70] sm:$0xf]  ;;  %v6146_v37 = vld [vmem:[#allocation10 + $0x4] sm:$0xf0] }
 0x170   :  { %v6160_v43 = vld [vmem:[#allocation10 + $0x74] sm:$0xf0] }
 0x172   :  { %1317 = vmatpush.bf16.msra.mxu0 %v6140_v38  ;;  %v6145_v38 = vld [vmem:[#allocation10 + $0x4] sm:$0xf] }
 0x174   :  { %v927_v45 = vpop.f32.mrf.mxu2 }
 0x175   :  { %v928_v46 = vadd.f32 %v927_v45, %v915_v44  ;;  %v940_v47 = vpop.f32.mrf.mxu3  ;;  %v6159_v44 = vld [vmem:[#allocation10 + $0x74] sm:$0xf]  ;;  %v4716_v45 = vor.u32 %v6160_v43, %v4715_v42  ;;  %v4835_v42 = vld [vmem:[#allocation12 + $0xe0] sm:$0xf]  ;;  %v6191_v43 = vld [vmem:[#allocation12 + $0xec] sm:$0xf0] }
 0x176   :  { %1318 = vmatpush.bf16.msra.mxu0 %v6139_v39 }
 0x177   :  { %v941_v48 = vadd.f32 %v940_v47, %v928_v46  ;;  %v4717_v46 = vld [vmem:[#allocation10 + $0x78] sm:$0xf0]  ;;  %v4707_v47 = vld [vmem:[#allocation10 + $0x60] sm:$0xf]  ;;  %1430 = vmatpush.bf16.msra.mxu1 %v4716_v45  ;;  %v4836_v45 = vor.u32 %v6191_v43, %v4835_v42 }
 0x178   :  { %v4883_v42 = vld [vmem:[#allocation12 + $0x140] sm:$0xf] }
 0x179   :  { %v945_v49 = vmax.f32 %v941_v48, 0.0  ;;  %v6158_v48 = vld [vmem:[#allocation10 + $0x64] sm:$0xf0]  ;;  %1854 = vmatpush.bf16.msra.mxu3 %v4836_v45  ;;  %v6201_v45 = vld [vmem:[#allocation12 + $0x144] sm:$0xf] }
 0x17a   :  { %1319 = vmatpush.bf16.msra.mxu0 %v6138_v40  ;;  %v4661_v40 = vld [vmem:[#allocation10 + $0x8] sm:$0xf0] }
 0x17b   :  { %v947_v50 = vpack.c.bf16 %v945_v49, %v945_v49  ;;  %v4720_v49 = vor.u32 %v6159_v44, %v4717_v46  ;;  %v6189_v44 = vld [vmem:[#allocation12 + $0xe4] sm:$0xf]  ;;  %v4837_v46 = vld [vmem:[#allocation12 + $0xf0] sm:$0xf0] }
 0x17c   :  { %v929_v51 = vpop.f32.mrf.mxu2 }
 0x17d   :  { %v942_v52 = vpop.f32.mrf.mxu3  ;;  %1101 = vmatmul.bf16.vlgmr.msrb.gmra.mxu1 %v947_v50  ;;  %v6157_v50 = vld [vmem:[#allocation10 + $0x64] sm:$0xf]  ;;  %v4709_v51 = vld [vmem:[#allocation10 + $0x68] sm:$0xf0]  ;;  %1443 = vmatpush.bf16.msra.mxu2 %v4720_v49  ;;  %v4840_v49 = vor.u32 %v6189_v44, %v4837_v46  ;;  %v6203_v44 = vld [vmem:[#allocation12 + $0x14c] sm:$0xf0] }
 0x17e   :  { %1320 = vmatpush.bf16.msra.mxu0 %v6137_v41  ;;  %v4708_v52 = vor.u32 %v6158_v48, %v4707_v47  ;;  %v4712_v53 = vor.u32 %v6157_v50, %v4709_v51  ;;  %v4664_v41 = vor.u32 %v6145_v38, %v4661_v40  ;;  %v4819_v47 = vld [vmem:[#allocation12 + $0xc0] sm:$0xf]  ;;  %v6187_v48 = vld [vmem:[#allocation12 + $0xcc] sm:$0xf0]  ;;  %v6185_v50 = vld [vmem:[#allocation12 + $0xc4] sm:$0xf] }
 0x17f   :  { %v4821_v51 = vld [vmem:[#allocation12 + $0xd0] sm:$0xf0]  ;;  %v6169_v38 = vld [vmem:[#allocation12 + $0x44] sm:$0xf] }
 0x180   :  { %1431 = vmatpush.bf16.msra.mxu1 %v4708_v52  ;;  %v4963_v52 = vld [vmem:[#allocation12 + $0x1e0] sm:$0xf]  ;;  %v4824_v57 = vor.u32 %v6185_v50, %v4821_v51  ;;  %v4885_v46 = vld [vmem:[#allocation12 + $0x150] sm:$0xf0]  ;;  %v6165_v51 = vld [vmem:[#allocation12 + $0x24] sm:$0xf] }
 0x181   :  { %1444 = vmatpush.bf16.msra.mxu2 %v4712_v53  ;;  %v4820_v53 = vor.u32 %v6187_v48, %v4819_v47  ;;  %v4964_v58 = vor.u32 %v6223_v54, %v4963_v52  ;;  %v4739_v48 = vld [vmem:[#allocation12 + $0x20] sm:$0xf]  ;;  %v4741_v52 = vld [vmem:[#allocation12 + $0x30] sm:$0xf0]  ;;  %v4888_v54 = vor.u32 %v6201_v45, %v4885_v46  ;;  %v4795_v46 = vld [vmem:[#allocation12 + $0x88] sm:$0xf] }
 0x182   :  { %v6498_v50 = vld [vmem:[%s7057_s11] ss:$0 sm:$0xff] }
 0x183   :  { %1867 = vmatpush.bf16.msrb.mxu0 %v4964_v58  ;;  %1855 = vmatpush.bf16.msra.mxu3 %v4820_v53  ;;  %v4884_v53 = vor.u32 %v6203_v44, %v4883_v42  ;;  %v6163_v58 = vld [vmem:[#allocation12 + $0xc] sm:$0xf0]  ;;  %v6218_v42 = vld [vmem:[#allocation12 + $0x1cc] sm:$0xf]  ;;  %v4957_v44 = vld [vmem:[#allocation12 + $0x1d8] sm:$0xf0] }
 0x184   :  { %1432 = vmatpush.bf16.msra.mxu1 %v4700_v59  ;;  %v4968_v59 = vor.u32 %v6221_v55, %v4965_v56  ;;  %v4867_v55 = vld [vmem:[#allocation12 + $0x120] sm:$0xf]  ;;  %v4960_v45 = vor.u32 %v6218_v42, %v4957_v44  ;;  %v4859_v42 = vld [vmem:[#allocation12 + $0x108] sm:$0xf]  ;;  %v6194_v44 = vld [vmem:[#allocation12 + $0x10c] sm:$0xf] }
 0x185   :  { %1445 = vmatpush.bf16.msra.mxu2 %v4704_v60  ;;  %v4803_v60 = vld [vmem:[#allocation12 + $0xa0] sm:$0xf] }
 0x188   :  { %1433 = vmatpush.bf16.msra.mxu1 %v4692_v3  ;;  %v6217_v3 = vld [vmem:[#allocation12 + $0x1c4] sm:$0xf] }
 0x189   :  { %1446 = vmatpush.bf16.msra.mxu2 %v4696_v6 }
 0x18c   :  { %1434 = vmatpush.bf16.msra.mxu1 %v4684_v14  ;;  %v4789_v14 = vld [vmem:[#allocation12 + $0x90] sm:$0xf0] }
 0x18d   :  { %1447 = vmatpush.bf16.msra.mxu2 %v4688_v15  ;;  %v4933_v15 = vld [vmem:[#allocation12 + $0x1b0] sm:$0xf0] }
 0x18e   :  { %v4936_v17 = vor.u32 %v6213_v12, %v4933_v15 }
 0x190   :  { %1435 = vmatpush.bf16.msra.mxu1 %v4676_v21  ;;  %v6209_v21 = vld [vmem:[#allocation12 + $0x184] sm:$0xf] }
 0x191   :  { %1448 = vmatpush.bf16.msra.mxu2 %v4680_v24  ;;  %v4771_v24 = vld [vmem:[#allocation12 + $0x60] sm:$0xf] }
 0x1ea   :  { %v1089_v28 = vpop.f32.mrf.mxu0 }
 0x1eb   :  { %v1090_v31 = vadd.f32 %v6497_v30, %v1089_v28  ;;  %v4667_v30 = vld [vmem:[#allocation10 + $0x10] sm:$0xf] }
 0x1f2   :  { %v1091_v29 = vpop.f32.mrf.mxu0 }
 0x1fa   :  { %v1102_v32 = vpop.f32.mrf.mxu1 }
 0x1fb   :  { %v1103_v33 = vadd.f32 %v1102_v32, %v1090_v31  ;;  %v6148_v31 = vld [vmem:[#allocation10 + $0x14] sm:$0xf0]  ;;  %v6147_v32 = vld [vmem:[#allocation10 + $0x14] sm:$0xf] }
 0x1fd   :  { %v1106_v34 = vmax.f32 %v1103_v33, 0.0  ;;  %v4668_v33 = vor.u32 %v6148_v31, %v4667_v30  ;;  %v4899_v30 = vld [vmem:[#allocation12 + $0x160] sm:$0xf] }
 0x1ff   :  { %v1107_v35 = vpack.c.bf16 %v1106_v34, %v1106_v34  ;;  %v4669_v34 = vld [vmem:[#allocation10 + $0x18] sm:$0xf0]  ;;  %1436 = vmatpush.bf16.msra.mxu1 %v4668_v33  ;;  %v6205_v33 = vld [vmem:[#allocation12 + $0x164] sm:$0xf] }
 0x201   :  { %1218 = vmatmul.bf16.vlgmr.msrb.gmra.mxu2 %v1107_v35  ;;  %1231 = vmatmul.bf16.vlgmr.msrb.gmra.mxu3 %v1107_v35  ;;  %v4672_v35 = vor.u32 %v6147_v32, %v4669_v34  ;;  %v6207_v32 = vld [vmem:[#allocation12 + $0x16c] sm:$0xf0]  ;;  %v4901_v34 = vld [vmem:[#allocation12 + $0x170] sm:$0xf0] }
 0x202   :  { %v1104_v36 = vpop.f32.mrf.mxu1  ;;  %v4900_v40 = vor.u32 %v6207_v32, %v4899_v30 }
 0x203   :  { %1449 = vmatpush.bf16.msra.mxu2 %v4672_v35  ;;  %v4659_v36 = vld [vmem:[#allocation10] sm:$0xf] }
 0x204   :  { %v4660_v39 = vor.u32 %v6146_v37, %v4659_v36  ;;  %v4755_v36 = vld [vmem:[#allocation12 + $0x40] sm:$0xf]  ;;  %v6171_v37 = vld [vmem:[#allocation12 + $0x4c] sm:$0xf0] }
 0x205   :  { %v4756_v43 = vor.u32 %v6171_v37, %v4755_v36  ;;  %v6182_v36 = vld [vmem:[#allocation12 + $0xac] sm:$0xf] }
 0x206   :  { %1437 = vmatpush.bf16.msra.mxu1 %v4660_v39  ;;  %v4757_v39 = vld [vmem:[#allocation12 + $0x50] sm:$0xf0] }
 0x207   :  { %1450 = vmatpush.bf16.msra.mxu2 %v4664_v41  ;;  %v4904_v41 = vor.u32 %v6205_v33, %v4901_v34  ;;  %v4760_v47 = vor.u32 %v6169_v38, %v4757_v39  ;;  %v4811_v34 = vld [vmem:[#allocation12 + $0xa8] sm:$0xf]  ;;  %v4813_v38 = vld [vmem:[#allocation12 + $0xb8] sm:$0xf0] }
 0x208   :  { %v4816_v39 = vor.u32 %v6182_v36, %v4813_v38  ;;  %v4875_v36 = vld [vmem:[#allocation12 + $0x128] sm:$0xf]  ;;  %v6198_v38 = vld [vmem:[#allocation12 + $0x12c] sm:$0xf] }
 0x20a   :  { %1880 = vmatpush.bf16.msrb.mxu1 %v4840_v49  ;;  %v6167_v49 = vld [vmem:[#allocation12 + $0x2c] sm:$0xf0] }
 0x20b   :  { %1893 = vmatpush.bf16.msrb.mxu2 %v4968_v59  ;;  %v4740_v56 = vor.u32 %v6167_v49, %v4739_v48  ;;  %v6199_v59 = vld [vmem:[#allocation12 + $0x12c] sm:$0xf0]  ;;  %v6178_v48 = vld [vmem:[#allocation12 + $0x8c] sm:$0xf] }
 0x20c   :  { %v4868_v7 = vor.u32 %v6199_v59, %v4867_v55  ;;  %v6176_v59 = vld [vmem:[#allocation12 + $0x74] sm:$0xf0] }
 0x20e   :  { %1881 = vmatpush.bf16.msrb.mxu1 %v4824_v57  ;;  %v4723_v57 = vld [vmem:[#allocation12] sm:$0xf] }
 0x20f   :  { %v4724_v15 = vor.u32 %v6163_v58, %v4723_v57  ;;  %v4779_v58 = vld [vmem:[#allocation12 + $0x68] sm:$0xf] }
 0x284   :  { %v1219_v4 = vpop.f32.mrf.mxu2  ;;  %v1232_v5 = vpop.f32.mrf.mxu3 }
 0x285   :  { %v1220_v9 = vadd.f32 %v1219_v4, %v1126_v63  ;;  %v1233_v10 = vadd.f32 %v1232_v5, %v1127_v0  ;;  %v4805_v63 = vld [vmem:[#allocation12 + $0xb0] sm:$0xf0]  ;;  %v4947_v0 = vld [vmem:[#allocation12 + $0x1c0] sm:$0xf]  ;;  %v4804_v5 = vor.u32 %v6183_v61, %v4803_v60  ;;  %v6197_v60 = vld [vmem:[#allocation12 + $0x124] sm:$0xf] }
 0x286   :  { %v4948_v2 = vor.u32 %v6219_v1, %v4947_v0  ;;  %v4949_v4 = vld [vmem:[#allocation12 + $0x1d0] sm:$0xf0]  ;;  %v6161_v0 = vld [vmem:[#allocation12 + $0x4] sm:$0xf] }
 0x287   :  { %1236 = vst [vmem:[%s7065_s19] sm:$0xff] %v1220_v9  ;;  %v1239_v13 = vmul.f32 0.5, %v1233_v10  ;;  %v4952_v6 = vor.u32 %v6217_v3, %v4949_v4  ;;  %1856 = vmatpush.bf16.msra.mxu3 %v4804_v5  ;;  %v4869_v61 = vld [vmem:[#allocation12 + $0x130] sm:$0xf0]  ;;  %v6192_v4 = vld [vmem:[#allocation12 + $0xf4] sm:$0xf0] }
 0x288   :  { %1237 = vst [vmem:[%s7066_s20] sm:$0xff] %v1233_v10  ;;  %v4931_v10 = vld [vmem:[#allocation12 + $0x1a0] sm:$0xf]  ;;  %1868 = vmatpush.bf16.msrb.mxu0 %v4948_v2  ;;  %v4725_v1 = vld [vmem:[#allocation12 + $0x10] sm:$0xf0]  ;;  %v4843_v2 = vld [vmem:[#allocation12 + $0xe8] sm:$0xf]  ;;  %v4872_v8 = vor.u32 %v6197_v60, %v4869_v61  ;;  %v4780_v61 = vor.u32 %v6176_v59, %v4779_v58 }
 0x289   :  { %v1240_v18 = vmul.f32 1.442695, %v1239_v13  ;;  %v6177_v13 = vld [vmem:[#allocation12 + $0x84] sm:$0xf]  ;;  %1894 = vmatpush.bf16.msrb.mxu2 %v4952_v6  ;;  %v4932_v16 = vor.u32 %v6215_v11, %v4931_v10  ;;  %v6190_v5 = vld [vmem:[#allocation12 + $0xec] sm:$0xf] }
 0x28a   :  { %v4845_v6 = vld [vmem:[#allocation12 + $0xf8] sm:$0xf0]  ;;  %v6195_v10 = vld [vmem:[#allocation12 + $0x10c] sm:$0xf0]  ;;  %v6193_v11 = vld [vmem:[#allocation12 + $0x104] sm:$0xf] }
 0x28b   :  { %6499 = vpow2.f32 %v1240_v18  ;;  %v4915_v18 = vld [vmem:[#allocation12 + $0x180] sm:$0xf]  ;;  %1857 = vmatpush.bf16.msra.mxu3 %v4788_v19  ;;  %v4973_v19 = vld [vmem:[#allocation12 + $0x1f8] sm:$0xf0]  ;;  %v6174_v60 = vld [vmem:[#allocation12 + $0x6c] sm:$0xf] }
 0x28c   :  { %v1221_v22 = vpop.f32.mrf.mxu2  ;;  %v1234_v23 = vpop.f32.mrf.mxu3  ;;  %1869 = vmatpush.bf16.msrb.mxu0 %v4932_v16  ;;  %v4728_v16 = vor.u32 %v6161_v0, %v4725_v1  ;;  %v4923_v0 = vld [vmem:[#allocation12 + $0x188] sm:$0xf]  ;;  %v6212_v1 = vld [vmem:[#allocation12 + $0x194] sm:$0xf0]  ;;  %v5171_v59 = vld [vmem:[#allocation13 + $0x180] sm:$0xf] }
 0x28d   :  { %v4917_v22 = vld [vmem:[#allocation12 + $0x190] sm:$0xf0]  ;;  %v4792_v23 = vor.u32 %v6177_v13, %v4789_v14  ;;  %1895 = vmatpush.bf16.msrb.mxu2 %v4936_v17  ;;  %v4971_v14 = vld [vmem:[#allocation12 + $0x1e8] sm:$0xf]  ;;  %v6224_v17 = vld [vmem:[#allocation12 + $0x1f4] sm:$0xf0] }
 0x28e   :  { %v4853_v13 = vld [vmem:[#allocation12 + $0x110] sm:$0xf0] }
 0x291   :  { %v6500_v26 = vpop.eup %6499 }
 0x292   :  { %v1242_v27 = vmul.f32 %v6500_v26, %v1238_v25  ;;  %v6175_v25 = vld [vmem:[#allocation12 + $0x6c] sm:$0xf0]  ;;  %v6173_v26 = vld [vmem:[#allocation12 + $0x64] sm:$0xf] }
 0x293   :  { %v4772_v31 = vor.u32 %v6175_v25, %v4771_v24  ;;  %v6188_v24 = vld [vmem:[#allocation12 + $0xd4] sm:$0xf0]  ;;  %v6186_v25 = vld [vmem:[#allocation12 + $0xcc] sm:$0xf] }
 0x294   :  { %v1243_v28 = vadd.f32 %v1242_v27, %v1220_v9  ;;  %v4808_v9 = vor.u32 %v6181_v62, %v4805_v63  ;;  %v4773_v27 = vld [vmem:[#allocation12 + $0x70] sm:$0xf0]  ;;  %v4744_v63 = vor.u32 %v6165_v51, %v4741_v52  ;;  %v4939_v52 = vld [vmem:[#allocation12 + $0x1a8] sm:$0xf] }
 0x295   :  { %v4776_v35 = vor.u32 %v6173_v26, %v4773_v27  ;;  %1858 = vmatpush.bf16.msra.mxu3 %v4772_v31  ;;  %v4829_v26 = vld [vmem:[#allocation12 + $0xd8] sm:$0xf0] }
 0x296   :  { %v1244_v29 = vpack.c.bf16 %v1243_v28, %v1243_v28  ;;  %1882 = vmatpush.bf16.msrb.mxu1 %v4808_v9  ;;  %v4916_v28 = vor.u32 %v6211_v20, %v4915_v18  ;;  %v4851_v9 = vld [vmem:[#allocation12 + $0x100] sm:$0xf]  ;;  %v6222_v18 = vld [vmem:[#allocation12 + $0x1ec] sm:$0xf]  ;;  %v4832_v33 = vor.u32 %v6186_v25, %v4829_v26 }
 0x297   :  { %v4852_v27 = vor.u32 %v6195_v10, %v4851_v9  ;;  %v4976_v30 = vor.u32 %v6222_v18, %v4973_v19  ;;  %v4765_v10 = vld [vmem:[#allocation12 + $0x58] sm:$0xf0]  ;;  %v4747_v18 = vld [vmem:[#allocation12 + $0x28] sm:$0xf]  ;;  %v6168_v19 = vld [vmem:[#allocation12 + $0x34] sm:$0xf0] }
 0x298   :  { %1321 = vmatmul.bf16.vlgmr.msra.gmra.mxu0 %v1244_v29  ;;  %v4920_v29 = vor.u32 %v6209_v21, %v4917_v22  ;;  %v4844_v21 = vor.u32 %v6192_v4, %v4843_v2  ;;  %v4848_v22 = vor.u32 %v6190_v5, %v4845_v6  ;;  %v6210_v2 = vld [vmem:[#allocation12 + $0x18c] sm:$0xf]  ;;  %v4925_v4 = vld [vmem:[#allocation12 + $0x198] sm:$0xf0]  ;;  %v4763_v6 = vld [vmem:[#allocation12 + $0x48] sm:$0xf] }
 0x299   :  { %1870 = vmatpush.bf16.msrb.mxu0 %v4916_v28  ;;  %1859 = vmatpush.bf16.msra.mxu3 %v4756_v43  ;;  %v4856_v28 = vor.u32 %v6193_v11, %v4853_v13  ;;  %v4928_v5 = vor.u32 %v6210_v2, %v4925_v4  ;;  %v6208_v13 = vld [vmem:[#allocation12 + $0x174] sm:$0xf0]  ;;  %v5459_v2 = vld [vmem:[#allocation13 + $0x3c0] sm:$0xf] }
 0x29a   :  { %1883 = vmatpush.bf16.msrb.mxu1 %v4792_v23  ;;  %1896 = vmatpush.bf16.msrb.mxu2 %v4920_v29  ;;  %v4827_v23 = vld [vmem:[#allocation12 + $0xc8] sm:$0xf]  ;;  %v4972_v29 = vor.u32 %v6224_v17, %v4971_v14  ;;  %v6206_v14 = vld [vmem:[#allocation12 + $0x16c] sm:$0xf]  ;;  %v6349_v4 = vld [vmem:[#allocation13 + $0x3dc] sm:$0xf0] }
 0x29b   :  { %v4828_v32 = vor.u32 %v6188_v24, %v4827_v23  ;;  %v4891_v23 = vld [vmem:[#allocation12 + $0x148] sm:$0xf]  ;;  %v6204_v24 = vld [vmem:[#allocation12 + $0x154] sm:$0xf0] }
 0x29c   :  { %v4892_v26 = vor.u32 %v6204_v24, %v4891_v23  ;;  %v5107_v23 = vld [vmem:[#allocation13 + $0x100] sm:$0xf] }
 0x29d   :  { %1871 = vmatpush.bf16.msrb.mxu0 %v4900_v40  ;;  %1860 = vmatpush.bf16.msra.mxu3 %v4740_v56  ;;  %v4955_v40 = vld [vmem:[#allocation12 + $0x1c8] sm:$0xf]  ;;  %v4941_v56 = vld [vmem:[#allocation12 + $0x1b8] sm:$0xf0] }
 0x29e   :  { %1884 = vmatpush.bf16.msrb.mxu1 %v4776_v35  ;;  %1897 = vmatpush.bf16.msrb.mxu2 %v4904_v41  ;;  %v6184_v35 = vld [vmem:[#allocation12 + $0xb4] sm:$0xf0] }
 0x29f   :  { %v4812_v37 = vor.u32 %v6184_v35, %v4811_v34  ;;  %v6220_v41 = vld [vmem:[#allocation12 + $0x1d4] sm:$0xf0] }
 0x2a0   :  { %v4956_v43 = vor.u32 %v6220_v41, %v4955_v40  ;;  %v4877_v40 = vld [vmem:[#allocation12 + $0x138] sm:$0xf0] }
 0x2a1   :  { %1872 = vmatpush.bf16.msrb.mxu0 %v4884_v53  ;;  %1861 = vmatpush.bf16.msra.mxu3 %v4724_v15  ;;  %v6216_v53 = vld [vmem:[#allocation12 + $0x1b4] sm:$0xf0]  ;;  %v4880_v41 = vor.u32 %v6198_v38, %v4877_v40  ;;  %v6253_v38 = vld [vmem:[#allocation13 + $0xdc] sm:$0xf0] }
 0x2a2   :  { %1885 = vmatpush.bf16.msrb.mxu1 %v4760_v47  ;;  %1898 = vmatpush.bf16.msrb.mxu2 %v4888_v54  ;;  %v6180_v47 = vld [vmem:[#allocation12 + $0x94] sm:$0xf0]  ;;  %v6214_v54 = vld [vmem:[#allocation12 + $0x1ac] sm:$0xf]  ;;  %v4940_v55 = vor.u32 %v6216_v53, %v4939_v52  ;;  %v5203_v52 = vld [vmem:[#allocation13 + $0x1c0] sm:$0xf] }
 0x2a3   :  { %v4796_v49 = vor.u32 %v6180_v47, %v4795_v46  ;;  %v4944_v57 = vor.u32 %v6214_v54, %v4941_v56  ;;  %v4861_v46 = vld [vmem:[#allocation12 + $0x118] sm:$0xf0]  ;;  %v6285_v53 = vld [vmem:[#allocation13 + $0x1dc] sm:$0xf0] }
 0x2a4   :  { %v4864_v47 = vor.u32 %v6194_v44, %v4861_v46  ;;  %v5715_v56 = vld [vmem:[#allocation13 + $0x5c0] sm:$0xf]  ;;  %v5204_v58 = vor.u32 %v6285_v53, %v5203_v52 }
 0x2a5   :  { %1873 = vmatpush.bf16.msrb.mxu0 %v4868_v7  ;;  %1906 = vmatpush.bf16.msrb.mxu3 %v4844_v21  ;;  %v6172_v7 = vld [vmem:[#allocation12 + $0x54] sm:$0xf0]  ;;  %v4748_v21 = vor.u32 %v6168_v19, %v4747_v18  ;;  %v6341_v19 = vld [vmem:[#allocation13 + $0x39c] sm:$0xf0] }
 0x2a6   :  { %1886 = vmatpush.bf16.msrb.mxu1 %v4744_v63  ;;  %1899 = vmatpush.bf16.msrb.mxu2 %v4872_v8  ;;  %v6170_v8 = vld [vmem:[#allocation12 + $0x4c] sm:$0xf]  ;;  %v4764_v9 = vor.u32 %v6172_v7, %v4763_v6  ;;  %v6477_v6 = vld [vmem:[#allocation13 + $0x7dc] sm:$0xf0] }
 0x2a7   :  { %v4768_v11 = vor.u32 %v6170_v8, %v4765_v10  ;;  %v6269_v10 = vld [vmem:[#allocation13 + $0x15c] sm:$0xf0] }
 0x2a8   :  { %v6381_v40 = vld [vmem:[#allocation13 + $0x4dc] sm:$0xf0] }
 0x2a9   :  { %1874 = vmatpush.bf16.msrb.mxu0 %v4852_v27  ;;  %1907 = vmatpush.bf16.msrb.mxu3 %v4828_v32  ;;  %v6202_v27 = vld [vmem:[#allocation12 + $0x14c] sm:$0xf]  ;;  %v6325_v44 = vld [vmem:[#allocation13 + $0x31c] sm:$0xf0] }
 0x2aa   :  { %1887 = vmatpush.bf16.msrb.mxu1 %v4728_v16  ;;  %1900 = vmatpush.bf16.msrb.mxu2 %v4856_v28  ;;  %v4909_v16 = vld [vmem:[#allocation12 + $0x178] sm:$0xf0]  ;;  %v6162_v32 = vld [vmem:[#allocation12 + $0xc] sm:$0xf]  ;;  %v6453_v46 = vld [vmem:[#allocation13 + $0x71c] sm:$0xf0] }
 0x2ab   :  { %v4912_v17 = vor.u32 %v6206_v14, %v4909_v16  ;;  %v4893_v28 = vld [vmem:[#allocation12 + $0x158] sm:$0xf0]  ;;  %v6397_v14 = vld [vmem:[#allocation13 + $0x55c] sm:$0xf0] }
 0x2ac   :  { %v5427_v16 = vld [vmem:[#allocation13 + $0x380] sm:$0xf] }
 0x2ad   :  { %1919 = vmatpush.bf16.msra.mxu0 %v4972_v29  ;;  %1908 = vmatpush.bf16.msrb.mxu3 %v4812_v37  ;;  %v4731_v29 = vld [vmem:[#allocation12 + $0x8] sm:$0xf]  ;;  %v6200_v37 = vld [vmem:[#allocation12 + $0x134] sm:$0xf0]  ;;  %v6373_v52 = vld [vmem:[#allocation13 + $0x49c] sm:$0xf0] }
 0x2b1   :  { %1920 = vmatpush.bf16.msra.mxu0 %v4956_v43  ;;  %1909 = vmatpush.bf16.msrb.mxu3 %v4796_v49  ;;  %v6196_v43 = vld [vmem:[#allocation12 + $0x114] sm:$0xf0] }
 0x2b5   :  { %1921 = vmatpush.bf16.msra.mxu0 %v4940_v55  ;;  %1910 = vmatpush.bf16.msrb.mxu3 %v4780_v61 }
 0x2b9   :  { %1911 = vmatpush.bf16.msrb.mxu3 %v4764_v9  ;;  %v5139_v9 = vld [vmem:[#allocation13 + $0x140] sm:$0xf] }
 0x2bd   :  { %1912 = vmatpush.bf16.msrb.mxu3 %v4748_v21  ;;  %v6469_v21 = vld [vmem:[#allocation13 + $0x79c] sm:$0xf0] }
 0x315   :  { %v1322_v62 = vpop.f32.mrf.mxu0 }
 0x316   :  { %v1323_v3 = vadd.f32 %v6498_v50, %v1322_v62  ;;  %v4797_v50 = vld [vmem:[#allocation12 + $0x98] sm:$0xf0] }
 0x317   :  { %v4800_v51 = vor.u32 %v6178_v48, %v4797_v50  ;;  %v4781_v62 = vld [vmem:[#allocation12 + $0x78] sm:$0xf0]  ;;  %v1344_v48 = vld [vmem:[%s7059_s13] sm:$0x3] }
 0x318   :  { %v1326_v12 = vmax.f32 %v1323_v3, 0.0  ;;  %v4784_v63 = vor.u32 %v6174_v60, %v4781_v62  ;;  %v4924_v3 = vor.u32 %v6212_v1, %v4923_v0  ;;  %v1346_v49 = vperm.slane %v1344_v48, 0  ;;  %v6277_v62 = vld [vmem:[#allocation13 + $0x19c] sm:$0xf0] }
 0x319   :  { %v1347_v55 = vperm.slane %v1344_v48, 1  ;;  %v6405_v0 = vld [vmem:[#allocation13 + $0x59c] sm:$0xf0]  ;;  %v5172_v8 = vor.u32 %v6277_v62, %v5171_v59 }
 0x31a   :  { %v1327_v20 = vpack.c.bf16 %v1326_v12, %v1326_v12  ;;  %1922 = vmatpush.bf16.msra.mxu0 %v4924_v3  ;;  %v4907_v12 = vld [vmem:[#allocation12 + $0x168] sm:$0xf]  ;;  %v5043_v48 = vld [vmem:[#allocation13 + $0x80] sm:$0xf] }
 0x31b   :  { %v4908_v15 = vor.u32 %v6208_v13, %v4907_v12  ;;  %v5651_v13 = vld [vmem:[#allocation13 + $0x540] sm:$0xf] }
 0x31c   :  { %1438 = vmatmul.bf16.vlgmr.msra.gmra.mxu1 %v1327_v20  ;;  %1451 = vmatmul.bf16.vlgmr.msra.gmra.mxu2 %v1327_v20  ;;  %v6166_v20 = vld [vmem:[#allocation12 + $0x2c] sm:$0xf]  ;;  %v5652_v24 = vor.u32 %v6397_v14, %v5651_v13  ;;  %v5205_v13 = vld [vmem:[#allocation13 + $0x1e0] sm:$0xf0] }
 0x31d   :  { %v1324_v31 = vpop.f32.mrf.mxu0  ;;  %1932 = vmatpush.bf16.msra.mxu1 %v4848_v22  ;;  %1945 = vmatpush.bf16.msra.mxu2 %v4976_v30  ;;  %v4749_v22 = vld [vmem:[#allocation12 + $0x38] sm:$0xf0]  ;;  %v4896_v30 = vor.u32 %v6202_v27, %v4893_v28  ;;  %v6389_v27 = vld [vmem:[#allocation13 + $0x51c] sm:$0xf0] }
 0x31e   :  { %1923 = vmatpush.bf16.msra.mxu0 %v4908_v15  ;;  %v4752_v25 = vor.u32 %v6166_v20, %v4749_v22  ;;  %v6164_v31 = vld [vmem:[#allocation12 + $0x14] sm:$0xf0]  ;;  %v5460_v15 = vor.u32 %v6349_v4, %v5459_v2  ;;  %v5939_v20 = vld [vmem:[#allocation13 + $0x780] sm:$0xf]  ;;  %v5140_v22 = vor.u32 %v6269_v10, %v5139_v9 }
 0x31f   :  { %v4732_v34 = vor.u32 %v6164_v31, %v4731_v29  ;;  %v5428_v29 = vor.u32 %v6341_v19, %v5427_v16  ;;  %v5940_v31 = vor.u32 %v6469_v21, %v5939_v20  ;;  %v4979_v9 = vld [vmem:[#allocation13] sm:$0xf]  ;;  %v6273_v21 = vld [vmem:[#allocation13 + $0x184] sm:$0xf] }
 0x320   :  { %v6229_v10 = vld [vmem:[#allocation13 + $0x1c] sm:$0xf0] }
 0x321   :  { %1933 = vmatpush.bf16.msra.mxu1 %v4832_v33  ;;  %1946 = vmatpush.bf16.msra.mxu2 %v4960_v45  ;;  %v4733_v33 = vld [vmem:[#allocation12 + $0x18] sm:$0xf0]  ;;  %v4860_v45 = vor.u32 %v6196_v43, %v4859_v42  ;;  %v5363_v42 = vld [vmem:[#allocation13 + $0x300] sm:$0xf] }
 0x322   :  { %v4736_v35 = vor.u32 %v6162_v32, %v4733_v33  ;;  %1924 = vmatpush.bf16.msra.mxu0 %v4892_v26  ;;  %1913 = vmatpush.bf16.msrb.mxu3 %v4732_v34  ;;  %v5619_v26 = vld [vmem:[#allocation13 + $0x500] sm:$0xf]  ;;  %v5364_v53 = vor.u32 %v6325_v44, %v5363_v42 }
 0x323   :  { %v6333_v32 = vld [vmem:[#allocation13 + $0x35c] sm:$0xf0] }
 0x324   :  { %v5907_v33 = vld [vmem:[#allocation13 + $0x740] sm:$0xf] }
 0x325   :  { %1934 = vmatpush.bf16.msra.mxu1 %v4816_v39  ;;  %1947 = vmatpush.bf16.msra.mxu2 %v4944_v57  ;;  %v4876_v39 = vor.u32 %v6200_v37, %v4875_v36  ;;  %v6413_v57 = vld [vmem:[#allocation13 + $0x5dc] sm:$0xf0]  ;;  %v5620_v37 = vor.u32 %v6389_v27, %v5619_v26 }
 0x326   :  { %v5716_v60 = vor.u32 %v6413_v57, %v5715_v56  ;;  %v6461_v34 = vld [vmem:[#allocation13 + $0x75c] sm:$0xf0] }
 0x327   :  { %1925 = vmatpush.bf16.msra.mxu0 %v4876_v39  ;;  %v5075_v36 = vld [vmem:[#allocation13 + $0xc0] sm:$0xf]  ;;  %v5908_v43 = vor.u32 %v6461_v34, %v5907_v33  ;;  %v6257_v34 = vld [vmem:[#allocation13 + $0x104] sm:$0xf] }
 0x328   :  { %v5587_v39 = vld [vmem:[#allocation13 + $0x4c0] sm:$0xf] }
 0x329   :  { %1935 = vmatpush.bf16.msra.mxu1 %v4800_v51  ;;  %1948 = vmatpush.bf16.msra.mxu2 %v4928_v5  ;;  %v5971_v5 = vld [vmem:[#allocation13 + $0x7c0] sm:$0xf] }
 0x32a   :  { %v6317_v56 = vld [vmem:[#allocation13 + $0x2dc] sm:$0xf0] }
 0x32b   :  { %1926 = vmatpush.bf16.msra.mxu0 %v4860_v45  ;;  %v5875_v45 = vld [vmem:[#allocation13 + $0x700] sm:$0xf] }
 0x32c   :  { %v5843_v57 = vld [vmem:[#allocation13 + $0x6c0] sm:$0xf] }
 0x32d   :  { %1936 = vmatpush.bf16.msra.mxu1 %v4784_v63  ;;  %1949 = vmatpush.bf16.msra.mxu2 %v4912_v17  ;;  %v5683_v63 = vld [vmem:[#allocation13 + $0x580] sm:$0xf]  ;;  %v5972_v17 = vor.u32 %v6477_v6, %v5971_v5 }
 0x32e   :  { %v6309_v5 = vld [vmem:[#allocation13 + $0x29c] sm:$0xf0] }
 0x32f   :  { %v5811_v6 = vld [vmem:[#allocation13 + $0x680] sm:$0xf] }
 0x330   :  { %v6301_v16 = vld [vmem:[#allocation13 + $0x25c] sm:$0xf0] }
 0x331   :  { %1937 = vmatpush.bf16.msra.mxu1 %v4768_v11  ;;  %1950 = vmatpush.bf16.msra.mxu2 %v4896_v30  ;;  %v5684_v11 = vor.u32 %v6405_v0, %v5683_v63  ;;  %v5395_v30 = vld [vmem:[#allocation13 + $0x340] sm:$0xf] }
 0x332   :  { %v6237_v63 = vld [vmem:[#allocation13 + $0x5c] sm:$0xf0] }
 0x333   :  { %v5523_v0 = vld [vmem:[#allocation13 + $0x440] sm:$0xf] }
 0x334   :  { %v6357_v42 = vld [vmem:[#allocation13 + $0x41c] sm:$0xf0] }
 0x335   :  { %1938 = vmatpush.bf16.msra.mxu1 %v4752_v25  ;;  %1951 = vmatpush.bf16.msra.mxu2 %v4880_v41  ;;  %v6261_v25 = vld [vmem:[#allocation13 + $0x11c] sm:$0xf0]  ;;  %v5396_v41 = vor.u32 %v6333_v32, %v5395_v30  ;;  %v5429_v32 = vld [vmem:[#allocation13 + $0x3a0] sm:$0xf0] }
 0x339   :  { %1939 = vmatpush.bf16.msra.mxu1 %v4736_v35  ;;  %1952 = vmatpush.bf16.msra.mxu2 %v4864_v47  ;;  %v5108_v35 = vor.u32 %v6261_v25, %v5107_v23  ;;  %v5076_v47 = vor.u32 %v6253_v38, %v5075_v36  ;;  %v6293_v23 = vld [vmem:[#allocation13 + $0x21c] sm:$0xf0]  ;;  %v5461_v25 = vld [vmem:[#allocation13 + $0x3e0] sm:$0xf0] }
 0x33a   :  { %v5397_v38 = vld [vmem:[#allocation13 + $0x360] sm:$0xf0] }
 0x399   :  { %v1439_v50 = vpop.f32.mrf.mxu1 }
 0x39a   :  { %v1440_v51 = vadd.f32 %v1439_v50, %v1346_v49  ;;  %v5588_v49 = vor.u32 %v6381_v40, %v5587_v39  ;;  %v6245_v50 = vld [vmem:[#allocation13 + $0x9c] sm:$0xf0] }
 0x39b   :  { %v5044_v59 = vor.u32 %v6245_v50, %v5043_v48  ;;  %v6321_v50 = vld [vmem:[#allocation13 + $0x304] sm:$0xf] }
 0x39c   :  { %v1456_v54 = vmax.f32 %v1440_v51, 0.0  ;;  %v5555_v51 = vld [vmem:[#allocation13 + $0x480] sm:$0xf] }
 0x39d   :  { %v5556_v62 = vor.u32 %v6373_v52, %v5555_v51  ;;  %v5365_v51 = vld [vmem:[#allocation13 + $0x320] sm:$0xf0] }
 0x39e   :  { %v6910_v61 = vpack.c.bf16 %v1456_v54, %v1456_v54  ;;  %v5331_v54 = vld [vmem:[#allocation13 + $0x2c0] sm:$0xf]  ;;  %v6409_v52 = vld [vmem:[#allocation13 + $0x5c4] sm:$0xf] }
 0x39f   :  { %v1452_v1 = vpop.f32.mrf.mxu2  ;;  %v5332_v2 = vor.u32 %v6317_v56, %v5331_v54  ;;  %v5717_v54 = vld [vmem:[#allocation13 + $0x5e0] sm:$0xf0]  ;;  %v6421_v56 = vld [vmem:[#allocation13 + $0x61c] sm:$0xf0] }
 0x3a0   :  { %v1453_v3 = vadd.f32 %v1452_v1, %v1347_v55  ;;  %1862 = vmatmul.bf16.vlgmr.msra.gmra.mxu3 %v6910_v61  ;;  %1888 = vmatmul.bf16.vlgmr.msrb.gmra.mxu1 %v6910_v61  ;;  %v5876_v55 = vor.u32 %v6453_v46, %v5875_v45  ;;  %v6365_v1 = vld [vmem:[#allocation13 + $0x45c] sm:$0xf0]  ;;  %v6249_v46 = vld [vmem:[#allocation13 + $0xc4] sm:$0xf] }
 0x3a1   :  { %v1441_v7 = vpop.f32.mrf.mxu1  ;;  %3520 = vmatpush.bf16.msra.mxu3 %v5204_v58  ;;  %3546 = vmatpush.bf16.msrb.mxu1 %v5716_v60  ;;  %v6445_v58 = vld [vmem:[#allocation13 + $0x6dc] sm:$0xf0] }
 0x3a2   :  { %v1457_v12 = vmax.f32 %v1453_v3, 0.0  ;;  %v5011_v60 = vld [vmem:[#allocation13 + $0x40] sm:$0xf]  ;;  %v5844_v4 = vor.u32 %v6445_v58, %v5843_v57  ;;  %v5720_v57 = vor.u32 %v6409_v52, %v5717_v54  ;;  %v6353_v52 = vld [vmem:[#allocation13 + $0x404] sm:$0xf] }
 0x3a3   :  { %v5299_v3 = vld [vmem:[#allocation13 + $0x280] sm:$0xf]  ;;  %v6425_v54 = vld [vmem:[#allocation13 + $0x644] sm:$0xf] }
 0x3a4   :  { %v6914_v18 = vpack.c.bf16 %v1457_v12, %v1457_v12  ;;  %v6437_v7 = vld [vmem:[#allocation13 + $0x69c] sm:$0xf0]  ;;  %v6281_v12 = vld [vmem:[#allocation13 + $0x1c4] sm:$0xf] }
 0x3a5   :  { %3521 = vmatpush.bf16.msra.mxu3 %v5172_v8  ;;  %3547 = vmatpush.bf16.msrb.mxu1 %v5684_v11  ;;  %v5524_v8 = vor.u32 %v6365_v1, %v5523_v0  ;;  %v5300_v11 = vor.u32 %v6309_v5, %v5299_v3  ;;  %v5812_v14 = vor.u32 %v6437_v7, %v5811_v6  ;;  %v6429_v45 = vld [vmem:[#allocation13 + $0x65c] sm:$0xf0]  ;;  %v5333_v0 = vld [vmem:[#allocation13 + $0x2e0] sm:$0xf0] }
 0x3a6   :  { %1875 = vmatmul.bf16.vlgmr.msrb.gmra.mxu0 %v6914_v18  ;;  %1901 = vmatmul.bf16.vlgmr.msrb.gmra.mxu2 %v6914_v18  ;;  %v5208_v19 = vor.u32 %v6281_v12, %v5205_v13  ;;  %v6401_v1 = vld [vmem:[#allocation13 + $0x584] sm:$0xf] }
 0x3a7   :  { %v1454_v28 = vpop.f32.mrf.mxu2  ;;  %3533 = vmatpush.bf16.msrb.mxu0 %v5460_v15  ;;  %3559 = vmatpush.bf16.msrb.mxu2 %v5972_v17  ;;  %v5267_v15 = vld [vmem:[#allocation13 + $0x240] sm:$0xf]  ;;  %v4980_v17 = vor.u32 %v6229_v10, %v4979_v9  ;;  %v6473_v5 = vld [vmem:[#allocation13 + $0x7c4] sm:$0xf] }
 0x3a8   :  { %v5268_v20 = vor.u32 %v6301_v16, %v5267_v15  ;;  %v6265_v28 = vld [vmem:[#allocation13 + $0x144] sm:$0xf] }
 0x3a9   :  { %3522 = vmatpush.bf16.msra.mxu3 %v5140_v22  ;;  %3548 = vmatpush.bf16.msrb.mxu1 %v5652_v24  ;;  %v5173_v22 = vld [vmem:[#allocation13 + $0x1a0] sm:$0xf0] }
 0x3aa   :  { %v6345_v24 = vld [vmem:[#allocation13 + $0x3c4] sm:$0xf]  ;;  %v5176_v26 = vor.u32 %v6273_v21, %v5173_v22 }
 0x3ab   :  { %3534 = vmatpush.bf16.msrb.mxu0 %v5428_v29  ;;  %3560 = vmatpush.bf16.msrb.mxu2 %v5940_v31  ;;  %v5141_v29 = vld [vmem:[#allocation13 + $0x160] sm:$0xf0]  ;;  %v5464_v30 = vor.u32 %v6345_v24, %v5461_v25 }
 0x3ac   :  { %v6337_v31 = vld [vmem:[#allocation13 + $0x384] sm:$0xf]  ;;  %v5144_v33 = vor.u32 %v6265_v28, %v5141_v29 }
 0x3ad   :  { %3523 = vmatpush.bf16.msra.mxu3 %v5108_v35  ;;  %3549 = vmatpush.bf16.msrb.mxu1 %v5620_v37  ;;  %v5109_v35 = vld [vmem:[#allocation13 + $0x120] sm:$0xf0]  ;;  %v5432_v36 = vor.u32 %v6337_v31, %v5429_v32 }
 0x3ae   :  { %v6329_v37 = vld [vmem:[#allocation13 + $0x344] sm:$0xf]  ;;  %v5112_v39 = vor.u32 %v6257_v34, %v5109_v35 }
 0x3af   :  { %3535 = vmatpush.bf16.msrb.mxu0 %v5396_v41  ;;  %3561 = vmatpush.bf16.msrb.mxu2 %v5908_v43  ;;  %v5400_v40 = vor.u32 %v6329_v37, %v5397_v38  ;;  %v5491_v41 = vld [vmem:[#allocation13 + $0x400] sm:$0xf]  ;;  %v5973_v6 = vld [vmem:[#allocation13 + $0x7e0] sm:$0xf0] }
 0x3b0   :  { %1914 = vmatmul.bf16.vlgmr.msrb.gmra.mxu3 %v6910_v61  ;;  %1940 = vmatmul.bf16.vlgmr.msra.gmra.mxu1 %v6910_v61  ;;  %v5012_v61 = vor.u32 %v6237_v63, %v5011_v60  ;;  %v5779_v43 = vld [vmem:[#allocation13 + $0x640] sm:$0xf]  ;;  %v5492_v44 = vor.u32 %v6357_v42, %v5491_v41  ;;  %v5045_v60 = vld [vmem:[#allocation13 + $0xa0] sm:$0xf0]  ;;  %v5976_v7 = vor.u32 %v6473_v5, %v5973_v6 }
 0x3b1   :  { %3524 = vmatpush.bf16.msra.mxu3 %v5076_v47  ;;  %3550 = vmatpush.bf16.msrb.mxu1 %v5588_v49  ;;  %v5077_v47 = vld [vmem:[#allocation13 + $0xe0] sm:$0xf0]  ;;  %v5780_v48 = vor.u32 %v6429_v45, %v5779_v43 }
 0x3b2   :  { %v5080_v49 = vor.u32 %v6249_v46, %v5077_v47  ;;  %v6305_v9 = vld [vmem:[#allocation13 + $0x284] sm:$0xf] }
 0x3b3   :  { %3536 = vmatpush.bf16.msrb.mxu0 %v5364_v53  ;;  %3562 = vmatpush.bf16.msrb.mxu2 %v5876_v55  ;;  %v5368_v53 = vor.u32 %v6321_v50, %v5365_v51  ;;  %v5747_v55 = vld [vmem:[#allocation13 + $0x600] sm:$0xf]  ;;  %v6393_v12 = vld [vmem:[#allocation13 + $0x544] sm:$0xf] }
 0x3b4   :  { %v5748_v58 = vor.u32 %v6421_v56, %v5747_v55  ;;  %v5653_v13 = vld [vmem:[#allocation13 + $0x560] sm:$0xf0] }
 0x3b5   :  { %3525 = vmatpush.bf16.msra.mxu3 %v5044_v59  ;;  %3551 = vmatpush.bf16.msrb.mxu1 %v5556_v62  ;;  %v6241_v59 = vld [vmem:[#allocation13 + $0x84] sm:$0xf]  ;;  %v5656_v15 = vor.u32 %v6393_v12, %v5653_v13  ;;  %v5179_v12 = vld [vmem:[#allocation13 + $0x188] sm:$0xf] }
 0x3b6   :  { %1927 = vmatmul.bf16.vlgmr.msra.gmra.mxu0 %v6914_v18  ;;  %1953 = vmatmul.bf16.vlgmr.msra.gmra.mxu2 %v6914_v18  ;;  %v5235_v18 = vld [vmem:[#allocation13 + $0x200] sm:$0xf]  ;;  %v6313_v62 = vld [vmem:[#allocation13 + $0x2c4] sm:$0xf]  ;;  %v5048_v63 = vor.u32 %v6241_v59, %v5045_v60 }
 0x3b7   :  { %3537 = vmatpush.bf16.msrb.mxu0 %v5332_v2  ;;  %3563 = vmatpush.bf16.msrb.mxu2 %v5844_v4  ;;  %v5236_v27 = vor.u32 %v6293_v23, %v5235_v18  ;;  %v5685_v2 = vld [vmem:[#allocation13 + $0x5a0] sm:$0xf0]  ;;  %v5336_v3 = vor.u32 %v6313_v62, %v5333_v0  ;;  %v6925_v62 = vld [vmem:[%s7061_s15] sm:$0xf] }
 0x3b8   :  { %v5688_v4 = vor.u32 %v6401_v1, %v5685_v2  ;;  %v6465_v16 = vld [vmem:[#allocation13 + $0x784] sm:$0xf]  ;;  %v1526_v0 = vperm.slane %v6925_v62, 0 }
 0x3b9   :  { %3526 = vmatpush.bf16.msra.mxu3 %v5012_v61  ;;  %3552 = vmatpush.bf16.msrb.mxu1 %v5524_v8  ;;  %v6233_v61 = vld [vmem:[#allocation13 + $0x44] sm:$0xf] }
 0x3ba   :  { %v5013_v8 = vld [vmem:[#allocation13 + $0x60] sm:$0xf0] }
 0x3bb   :  { %3538 = vmatpush.bf16.msrb.mxu0 %v5300_v11  ;;  %3564 = vmatpush.bf16.msrb.mxu2 %v5812_v14  ;;  %v5016_v10 = vor.u32 %v6233_v61, %v5013_v8  ;;  %v5301_v11 = vld [vmem:[#allocation13 + $0x2a0] sm:$0xf0]  ;;  %v6286_v61 = vld [vmem:[#allocation13 + $0x1e4] sm:$0xf0] }
 0x3bc   :  { %v5304_v14 = vor.u32 %v6305_v9, %v5301_v11  ;;  %v4981_v21 = vld [vmem:[#allocation13 + $0x20] sm:$0xf0] }
 0x3bd   :  { %3527 = vmatpush.bf16.msra.mxu3 %v4980_v17  ;;  %3553 = vmatpush.bf16.msrb.mxu1 %v5492_v44  ;;  %v5941_v17 = vld [vmem:[#allocation13 + $0x7a0] sm:$0xf0] }
 0x3be   :  { %v6297_v22 = vld [vmem:[#allocation13 + $0x244] sm:$0xf] }
 0x3bf   :  { %3539 = vmatpush.bf16.msrb.mxu0 %v5268_v20  ;;  %3565 = vmatpush.bf16.msrb.mxu2 %v5780_v48  ;;  %v6225_v20 = vld [vmem:[#allocation13 + $0x4] sm:$0xf] }
 0x3c0   :  { %v4984_v18 = vor.u32 %v6225_v20, %v4981_v21  ;;  %v5269_v23 = vld [vmem:[#allocation13 + $0x260] sm:$0xf0] }
 0x3c1   :  { %3572 = vmatpush.bf16.msrb.mxu3 %v5208_v19  ;;  %3598 = vmatpush.bf16.msra.mxu1 %v5720_v57  ;;  %v5944_v19 = vor.u32 %v6465_v16, %v5941_v17  ;;  %v6385_v24 = vld [vmem:[#allocation13 + $0x504] sm:$0xf]  ;;  %v5467_v16 = vld [vmem:[#allocation13 + $0x3c8] sm:$0xf] }
 0x3c2   :  { %v5621_v25 = vld [vmem:[#allocation13 + $0x520] sm:$0xf0]  ;;  %v6350_v17 = vld [vmem:[#allocation13 + $0x3e4] sm:$0xf0] }
 0x3c3   :  { %3540 = vmatpush.bf16.msrb.mxu0 %v5236_v27  ;;  %3566 = vmatpush.bf16.msrb.mxu2 %v5748_v58  ;;  %v5624_v27 = vor.u32 %v6385_v24, %v5621_v25  ;;  %v6457_v28 = vld [vmem:[#allocation13 + $0x744] sm:$0xf]  ;;  %v5147_v24 = vld [vmem:[#allocation13 + $0x148] sm:$0xf] }
 0x3c4   :  { %v5909_v29 = vld [vmem:[#allocation13 + $0x760] sm:$0xf0] }
 0x3c5   :  { %3573 = vmatpush.bf16.msrb.mxu3 %v5176_v26  ;;  %3599 = vmatpush.bf16.msra.mxu1 %v5688_v4  ;;  %v5272_v26 = vor.u32 %v6297_v22, %v5269_v23  ;;  %v6289_v31 = vld [vmem:[#allocation13 + $0x204] sm:$0xf]  ;;  %v5468_v23 = vor.u32 %v6350_v17, %v5467_v16  ;;  %v5659_v16 = vld [vmem:[#allocation13 + $0x548] sm:$0xf] }
 0x3c6   :  { %v5237_v32 = vld [vmem:[#allocation13 + $0x220] sm:$0xf0]  ;;  %v6398_v17 = vld [vmem:[#allocation13 + $0x564] sm:$0xf0] }
 0x3c7   :  { %3585 = vmatpush.bf16.msra.mxu0 %v5464_v30  ;;  %3611 = vmatpush.bf16.msra.mxu2 %v5976_v7  ;;  %v5912_v30 = vor.u32 %v6457_v28, %v5909_v29  ;;  %v6377_v34 = vld [vmem:[#allocation13 + $0x4c4] sm:$0xf]  ;;  %v5211_v7 = vld [vmem:[#allocation13 + $0x1c8] sm:$0xf]  ;;  %v1528_v29 = vperm.slane %v6925_v62, 2 }
 0x3c8   :  { %v5589_v35 = vld [vmem:[#allocation13 + $0x4e0] sm:$0xf0]  ;;  %v5212_v11 = vor.u32 %v6286_v61, %v5211_v7  ;;  %v6342_v28 = vld [vmem:[#allocation13 + $0x3a4] sm:$0xf0] }
 0x3c9   :  { %3574 = vmatpush.bf16.msrb.mxu3 %v5144_v33  ;;  %3600 = vmatpush.bf16.msra.mxu1 %v5656_v15  ;;  %v5240_v33 = vor.u32 %v6289_v31, %v5237_v32  ;;  %v5592_v37 = vor.u32 %v6377_v34, %v5589_v35  ;;  %v5877_v38 = vld [vmem:[#allocation13 + $0x720] sm:$0xf0]  ;;  %v6278_v15 = vld [vmem:[#allocation13 + $0x1a4] sm:$0xf0] }
 0x3ca   :  { %v5557_v41 = vld [vmem:[#allocation13 + $0x4a0] sm:$0xf0]  ;;  %v6262_v34 = vld [vmem:[#allocation13 + $0x124] sm:$0xf0] }
 0x3cb   :  { %3586 = vmatpush.bf16.msra.mxu0 %v5432_v36  ;;  %3612 = vmatpush.bf16.msra.mxu2 %v5944_v19  ;;  %v6449_v36 = vld [vmem:[#allocation13 + $0x704] sm:$0xf]  ;;  %v5403_v35 = vld [vmem:[#allocation13 + $0x348] sm:$0xf] }
 0x3cc   :  { %v6441_v43 = vld [vmem:[#allocation13 + $0x6c4] sm:$0xf] }
 0x3cd   :  { %3575 = vmatpush.bf16.msrb.mxu3 %v5112_v39  ;;  %3601 = vmatpush.bf16.msra.mxu1 %v5624_v27  ;;  %v5880_v39 = vor.u32 %v6449_v36, %v5877_v38  ;;  %v5845_v44 = vld [vmem:[#allocation13 + $0x6e0] sm:$0xf0]  ;;  %v5435_v27 = vld [vmem:[#allocation13 + $0x388] sm:$0xf] }
 0x3ce   :  { %v5848_v45 = vor.u32 %v6441_v43, %v5845_v44  ;;  %v6361_v46 = vld [vmem:[#allocation13 + $0x444] sm:$0xf]  ;;  %v5436_v32 = vor.u32 %v6342_v28, %v5435_v27  ;;  %v6334_v36 = vld [vmem:[#allocation13 + $0x364] sm:$0xf0] }
 0x3cf   :  { %3587 = vmatpush.bf16.msra.mxu0 %v5400_v40  ;;  %3613 = vmatpush.bf16.msra.mxu2 %v5912_v30  ;;  %v6369_v40 = vld [vmem:[#allocation13 + $0x484] sm:$0xf]  ;;  %v5404_v43 = vor.u32 %v6334_v36, %v5403_v35  ;;  %v5083_v44 = vld [vmem:[#allocation13 + $0xc8] sm:$0xf]  ;;  %v5213_v35 = vld [vmem:[#allocation13 + $0x1e8] sm:$0xf0] }
 0x3d0   :  { %v5560_v42 = vor.u32 %v6369_v40, %v5557_v41  ;;  %v5525_v47 = vld [vmem:[#allocation13 + $0x460] sm:$0xf0]  ;;  %v5275_v28 = vld [vmem:[#allocation13 + $0x248] sm:$0xf] }
 0x3d1   :  { %3576 = vmatpush.bf16.msrb.mxu3 %v5080_v49  ;;  %3602 = vmatpush.bf16.msra.mxu1 %v5592_v37  ;;  %v6433_v48 = vld [vmem:[#allocation13 + $0x684] sm:$0xf]  ;;  %v5528_v49 = vor.u32 %v6361_v46, %v5525_v47  ;;  %v6254_v46 = vld [vmem:[#allocation13 + $0xe4] sm:$0xf0] }
 0x3d2   :  { %v5813_v50 = vld [vmem:[#allocation13 + $0x6a0] sm:$0xf0]  ;;  %v5371_v47 = vld [vmem:[#allocation13 + $0x308] sm:$0xf] }
 0x3d3   :  { %3588 = vmatpush.bf16.msra.mxu0 %v5368_v53  ;;  %3614 = vmatpush.bf16.msra.mxu2 %v5880_v39  ;;  %v5816_v51 = vor.u32 %v6433_v48, %v5813_v50  ;;  %v5493_v53 = vld [vmem:[#allocation13 + $0x420] sm:$0xf0]  ;;  %v1529_v39 = vperm.slane %v6925_v62, 3  ;;  %v6326_v48 = vld [vmem:[#allocation13 + $0x324] sm:$0xf0] }
 0x3d4   :  { %v5496_v55 = vor.u32 %v6353_v52, %v5493_v53  ;;  %v5781_v56 = vld [vmem:[#allocation13 + $0x660] sm:$0xf0]  ;;  %v6414_v50 = vld [vmem:[#allocation13 + $0x5e4] sm:$0xf0] }
 0x3d5   :  { %3577 = vmatpush.bf16.msrb.mxu3 %v5048_v63  ;;  %3603 = vmatpush.bf16.msra.mxu1 %v5560_v42  ;;  %v5784_v57 = vor.u32 %v6425_v54, %v5781_v56  ;;  %v6417_v59 = vld [vmem:[#allocation13 + $0x604] sm:$0xf]  ;;  %v5084_v54 = vor.u32 %v6254_v46, %v5083_v44  ;;  %v5051_v56 = vld [vmem:[#allocation13 + $0x88] sm:$0xf] }
 0x3d6   :  { %v5749_v60 = vld [vmem:[#allocation13 + $0x620] sm:$0xf0]  ;;  %v6454_v46 = vld [vmem:[#allocation13 + $0x724] sm:$0xf0] }
 0x3d7   :  { %3589 = vmatpush.bf16.msra.mxu0 %v5336_v3  ;;  %3615 = vmatpush.bf16.msra.mxu2 %v5848_v45  ;;  %v5752_v63 = vor.u32 %v6417_v59, %v5749_v60  ;;  %v1527_v3 = vperm.slane %v6925_v62, 1  ;;  %v5339_v62 = vld [vmem:[#allocation13 + $0x2c8] sm:$0xf] }
 0x3d9   :  { %3578 = vmatpush.bf16.msrb.mxu3 %v5016_v10  ;;  %3604 = vmatpush.bf16.msra.mxu1 %v5528_v49  ;;  %v5723_v49 = vld [vmem:[#allocation13 + $0x5c8] sm:$0xf] }
 0x3da   :  { %v5724_v60 = vor.u32 %v6414_v50, %v5723_v49  ;;  %v6346_v49 = vld [vmem:[#allocation13 + $0x3cc] sm:$0xf] }
 0x3db   :  { %3590 = vmatpush.bf16.msra.mxu0 %v5304_v14  ;;  %3616 = vmatpush.bf16.msra.mxu2 %v5816_v51  ;;  %v5469_v50 = vld [vmem:[#allocation13 + $0x3e8] sm:$0xf0] }
 0x3dd   :  { %3579 = vmatpush.bf16.msrb.mxu3 %v4984_v18  ;;  %3605 = vmatpush.bf16.msra.mxu1 %v5496_v55  ;;  %v5180_v18 = vor.u32 %v6278_v15, %v5179_v12  ;;  %v5372_v55 = vor.u32 %v6326_v48, %v5371_v47  ;;  %v6310_v15 = vld [vmem:[#allocation13 + $0x2a4] sm:$0xf0]  ;;  %v6274_v47 = vld [vmem:[#allocation13 + $0x18c] sm:$0xf] }
 0x3de   :  { %v5181_v48 = vld [vmem:[#allocation13 + $0x1a8] sm:$0xf0] }
 0x3df   :  { %3591 = vmatpush.bf16.msra.mxu0 %v5272_v26  ;;  %3617 = vmatpush.bf16.msra.mxu2 %v5784_v57  ;;  %v6270_v26 = vld [vmem:[#allocation13 + $0x164] sm:$0xf0] }
 0x3e0   :  { %v5148_v31 = vor.u32 %v6270_v26, %v5147_v24  ;;  %v6246_v57 = vld [vmem:[#allocation13 + $0xa4] sm:$0xf0]  ;;  %v5660_v26 = vor.u32 %v6398_v17, %v5659_v16 }
 0x3e1   :  { %v5052_v7 = vor.u32 %v6246_v57, %v5051_v56  ;;  %v6230_v24 = vld [vmem:[#allocation13 + $0x24] sm:$0xf0]  ;;  %v5184_v56 = vor.u32 %v6274_v47, %v5181_v48  ;;  %v5472_v57 = vor.u32 %v6346_v49, %v5469_v50  ;;  %v6234_v48 = vld [vmem:[#allocation13 + $0x4c] sm:$0xf] }
 0x3e2   :  { %v5499_v17 = vld [vmem:[#allocation13 + $0x408] sm:$0xf]  ;;  %v5021_v49 = vld [vmem:[#allocation13 + $0x68] sm:$0xf0] }
 0x3e3   :  { %3592 = vmatpush.bf16.msra.mxu0 %v5240_v33  ;;  %3618 = vmatpush.bf16.msra.mxu2 %v5752_v63  ;;  %v5115_v33 = vld [vmem:[#allocation13 + $0x108] sm:$0xf] }
 0x3e4   :  { %v5116_v42 = vor.u32 %v6262_v34, %v5115_v33  ;;  %v6318_v63 = vld [vmem:[#allocation13 + $0x2e4] sm:$0xf0]  ;;  %v6282_v34 = vld [vmem:[#allocation13 + $0x1cc] sm:$0xf] }
 0x3e5   :  { %v5340_v61 = vor.u32 %v6318_v63, %v5339_v62  ;;  %v6462_v33 = vld [vmem:[#allocation13 + $0x764] sm:$0xf0]  ;;  %v5216_v44 = vor.u32 %v6282_v34, %v5213_v35  ;;  %v6266_v62 = vld [vmem:[#allocation13 + $0x14c] sm:$0xf] }
 0x3e6   :  { %v5149_v63 = vld [vmem:[#allocation13 + $0x168] sm:$0xf0]  ;;  %v6422_v35 = vld [vmem:[#allocation13 + $0x624] sm:$0xf0] }
 0x41d   :  { %v1889_v58 = vpop.f32.mrf.mxu1 }
 0x41e   :  { %v1890_v8 = vadd.f32 %v1889_v58, %v1527_v3  ;;  %v6406_v3 = vld [vmem:[#allocation13 + $0x5a4] sm:$0xf0] }
 0x423   :  { %v1863_v1 = vpop.f32.mrf.mxu3  ;;  %v1876_v2 = vpop.f32.mrf.mxu0 }
 0x424   :  { %v1864_v4 = vadd.f32 %v1863_v1, %v1526_v0  ;;  %v5691_v0 = vld [vmem:[#allocation13 + $0x588] sm:$0xf] }
 0x425   :  { %v1891_v5 = vpop.f32.mrf.mxu1 }
 0x426   :  { %v1877_v6 = vadd.f32 %v1876_v2, %v1864_v4  ;;  %v5979_v4 = vld [vmem:[#allocation13 + $0x7c8] sm:$0xf] }
 0x427   :  { %v6478_v5 = vld [vmem:[#allocation13 + $0x7e4] sm:$0xf0] }
 0x428   :  { %v1958_v9 = vmax.f32 %v1877_v6, 0.0  ;;  %v5980_v12 = vor.u32 %v6478_v5, %v5979_v4  ;;  %v5531_v4 = vld [vmem:[#allocation13 + $0x448] sm:$0xf] }
 0x429   :  { %v1902_v10 = vpop.f32.mrf.mxu2  ;;  %v6366_v5 = vld [vmem:[#allocation13 + $0x464] sm:$0xf0] }
 0x42a   :  { %v6929_v13 = vpack.c.bf16 %v1958_v9, %v1958_v9  ;;  %v1903_v14 = vadd.f32 %v1902_v10, %v1890_v8  ;;  %v5019_v8 = vld [vmem:[#allocation13 + $0x48] sm:$0xf] }
 0x42b   :  { %v1865_v19 = vpop.f32.mrf.mxu3  ;;  %v1878_v20 = vpop.f32.mrf.mxu0  ;;  %v6238_v9 = vld [vmem:[#allocation13 + $0x64] sm:$0xf0] }
 0x42c   :  { %v1959_v21 = vmax.f32 %v1903_v14, 0.0  ;;  %3528 = vmatmul.bf16.vlgmr.msra.gmra.mxu3 %v6929_v13  ;;  %v5307_v14 = vld [vmem:[#allocation13 + $0x288] sm:$0xf] }
 0x42d   :  { %3624 = vmatpush.bf16.msra.mxu3 %v5212_v11  ;;  %v1941_v22 = vpop.f32.mrf.mxu1  ;;  %v5692_v11 = vor.u32 %v6406_v3, %v5691_v0  ;;  %v5947_v19 = vld [vmem:[#allocation13 + $0x788] sm:$0xf]  ;;  %v6338_v0 = vld [vmem:[#allocation13 + $0x38c] sm:$0xf] }
 0x42e   :  { %v6932_v25 = vpack.c.bf16 %v1959_v21, %v1959_v21  ;;  %v1942_v51 = vadd.f32 %v1941_v22, %v1529_v39  ;;  %v6470_v20 = vld [vmem:[#allocation13 + $0x7a4] sm:$0xf0]  ;;  %v5020_v22 = vor.u32 %v6238_v9, %v5019_v8  ;;  %v6258_v9 = vld [vmem:[#allocation13 + $0x10c] sm:$0xf] }
 0x42f   :  { %v5948_v27 = vor.u32 %v6470_v20, %v5947_v19  ;;  %v6438_v8 = vld [vmem:[#allocation13 + $0x6a4] sm:$0xf0] }
 0x430   :  { %3541 = vmatmul.bf16.vlgmr.msrb.gmra.mxu0 %v6932_v25  ;;  %v6358_v19 = vld [vmem:[#allocation13 + $0x424] sm:$0xf0] }
 0x431   :  { %3625 = vmatpush.bf16.msra.mxu3 %v5180_v18  ;;  %3637 = vmatpush.bf16.msrb.mxu0 %v5468_v23  ;;  %v1904_v30 = vpop.f32.mrf.mxu2  ;;  %v5308_v18 = vor.u32 %v6310_v15, %v5307_v14  ;;  %v4987_v23 = vld [vmem:[#allocation13 + $0x8] sm:$0xf]  ;;  %v5405_v14 = vld [vmem:[#allocation13 + $0x368] sm:$0xf0]  ;;  %v5532_v15 = vor.u32 %v6366_v5, %v5531_v4 }
 0x432   :  { %v5627_v30 = vld [vmem:[#allocation13 + $0x508] sm:$0xf]  ;;  %v4988_v36 = vor.u32 %v6230_v24, %v4987_v23  ;;  %v6250_v23 = vld [vmem:[#allocation13 + $0xcc] sm:$0xf] }
 0x433   :  { %v1915_v37 = vpop.f32.mrf.mxu3  ;;  %v1928_v38 = vpop.f32.mrf.mxu0  ;;  %v5085_v24 = vld [vmem:[#allocation13 + $0xe8] sm:$0xf0] }
 0x434   :  { %v1916_v40 = vadd.f32 %v1915_v37, %v1528_v29  ;;  %v6302_v29 = vld [vmem:[#allocation13 + $0x264] sm:$0xf0]  ;;  %v6386_v4 = vld [vmem:[#allocation13 + $0x50c] sm:$0xf] }
 0x435   :  { %3626 = vmatpush.bf16.msra.mxu3 %v5148_v31  ;;  %3638 = vmatpush.bf16.msrb.mxu0 %v5436_v32  ;;  %v1943_v41 = vpop.f32.mrf.mxu1  ;;  %v6390_v31 = vld [vmem:[#allocation13 + $0x524] sm:$0xf0]  ;;  %v5276_v37 = vor.u32 %v6302_v29, %v5275_v28  ;;  %v6410_v28 = vld [vmem:[#allocation13 + $0x5cc] sm:$0xf] }
 0x436   :  { %v1929_v45 = vadd.f32 %v1928_v38, %v1916_v40  ;;  %v5915_v32 = vld [vmem:[#allocation13 + $0x748] sm:$0xf]  ;;  %v5628_v39 = vor.u32 %v6390_v31, %v5627_v30  ;;  %v5725_v29 = vld [vmem:[#allocation13 + $0x5e8] sm:$0xf0]  ;;  %v5500_v30 = vor.u32 %v6358_v19, %v5499_v17 }
 0x437   :  { %v5243_v38 = vld [vmem:[#allocation13 + $0x208] sm:$0xf]  ;;  %v5916_v40 = vor.u32 %v6462_v33, %v5915_v32  ;;  %v5088_v33 = vor.u32 %v6250_v23, %v5085_v24  ;;  %v5629_v5 = vld [vmem:[#allocation13 + $0x528] sm:$0xf0]  ;;  %v6279_v23 = vld [vmem:[#allocation13 + $0x1ac] sm:$0xf0] }
 0x438   :  { %v1960_v52 = vmax.f32 %v1929_v45, 0.0  ;;  %v6294_v41 = vld [vmem:[#allocation13 + $0x224] sm:$0xf0]  ;;  %v6378_v17 = vld [vmem:[#allocation13 + $0x4cc] sm:$0xf] }
 0x439   :  { %3627 = vmatpush.bf16.msra.mxu3 %v5116_v42  ;;  %3639 = vmatpush.bf16.msrb.mxu0 %v5404_v43  ;;  %v1954_v53 = vpop.f32.mrf.mxu2  ;;  %v5595_v42 = vld [vmem:[#allocation13 + $0x4c8] sm:$0xf]  ;;  %v5597_v19 = vld [vmem:[#allocation13 + $0x4e8] sm:$0xf0]  ;;  %v5475_v24 = vld [vmem:[#allocation13 + $0x3d0] sm:$0xf] }
 0x43a   :  { %v6937_v58 = vpack.c.bf16 %v1960_v52, %v1960_v52  ;;  %v1955_v59 = vadd.f32 %v1954_v53, %v1942_v51  ;;  %v6382_v43 = vld [vmem:[#allocation13 + $0x4e4] sm:$0xf0]  ;;  %v5244_v51 = vor.u32 %v6294_v41, %v5243_v38  ;;  %v5728_v38 = vor.u32 %v6410_v28, %v5725_v29  ;;  %v6402_v41 = vld [vmem:[#allocation13 + $0x58c] sm:$0xf] }
 0x43b   :  { %v1917_v1 = vpop.f32.mrf.mxu3  ;;  %v1930_v2 = vpop.f32.mrf.mxu0  ;;  %v5883_v45 = vld [vmem:[#allocation13 + $0x708] sm:$0xf]  ;;  %v5596_v52 = vor.u32 %v6382_v43, %v5595_v42  ;;  %v5693_v42 = vld [vmem:[#allocation13 + $0x5a8] sm:$0xf0]  ;;  %v5600_v28 = vor.u32 %v6378_v17, %v5597_v19  ;;  %v6407_v17 = vld [vmem:[#allocation13 + $0x5ac] sm:$0xf0] }
 0x43c   :  { %v1961_v6 = vmax.f32 %v1955_v59, 0.0  ;;  %3554 = vmatmul.bf16.vlgmr.msrb.gmra.mxu1 %v6937_v58  ;;  %3580 = vmatmul.bf16.vlgmr.msrb.gmra.mxu3 %v6929_v13  ;;  %v5884_v53 = vor.u32 %v6454_v46, %v5883_v45  ;;  %v5851_v59 = vld [vmem:[#allocation13 + $0x6c8] sm:$0xf]  ;;  %v5437_v1 = vld [vmem:[#allocation13 + $0x3a8] sm:$0xf0]  ;;  %v5696_v50 = vor.u32 %v6402_v41, %v5693_v42 }
 0x43d   :  { %3628 = vmatpush.bf16.msra.mxu3 %v5084_v54  ;;  %3640 = vmatpush.bf16.msrb.mxu0 %v5372_v55  ;;  %v5563_v54 = vld [vmem:[#allocation13 + $0x488] sm:$0xf]  ;;  %v6474_v43 = vld [vmem:[#allocation13 + $0x7cc] sm:$0xf]  ;;  %v5987_v19 = vld [vmem:[#allocation13 + $0x7d0] sm:$0xf] }
 0x43e   :  { %v6941_v10 = vpack.c.bf16 %v1961_v6, %v1961_v6  ;;  %3650 = vmatpush.bf16.msrb.mxu1 %v5724_v60  ;;  %v6374_v55 = vld [vmem:[#allocation13 + $0x4a4] sm:$0xf0]  ;;  %v5152_v6 = vor.u32 %v6266_v62, %v5149_v63  ;;  %v6226_v62 = vld [vmem:[#allocation13 + $0xc] sm:$0xf] }
 0x43f   :  { %v6446_v60 = vld [vmem:[#allocation13 + $0x6e4] sm:$0xf0]  ;;  %v5564_v2 = vor.u32 %v6374_v55, %v5563_v54  ;;  %v6394_v54 = vld [vmem:[#allocation13 + $0x54c] sm:$0xf] }
 0x440   :  { %3567 = vmatmul.bf16.vlgmr.msrb.gmra.mxu2 %v6941_v10  ;;  %3593 = vmatmul.bf16.vlgmr.msra.gmra.mxu0 %v6932_v25  ;;  %v5852_v3 = vor.u32 %v6446_v60, %v5851_v59  ;;  %v5755_v32 = vld [vmem:[#allocation13 + $0x608] sm:$0xf]  ;;  %v5661_v55 = vld [vmem:[#allocation13 + $0x568] sm:$0xf0]  ;;  %v5024_v59 = vor.u32 %v6234_v48, %v5021_v49  ;;  %v5123_v48 = vld [vmem:[#allocation13 + $0x110] sm:$0xf] }
 0x441   :  { %3629 = vmatpush.bf16.msra.mxu3 %v5052_v7  ;;  %3641 = vmatpush.bf16.msrb.mxu0 %v5340_v61  ;;  %v1956_v21 = vpop.f32.mrf.mxu2  ;;  %v5440_v7 = vor.u32 %v6338_v0, %v5437_v1  ;;  %v5819_v61 = vld [vmem:[#allocation13 + $0x688] sm:$0xf]  ;;  %v5756_v45 = vor.u32 %v6422_v35, %v5755_v32  ;;  %v4989_v63 = vld [vmem:[#allocation13 + $0x28] sm:$0xf0]  ;;  %v5664_v0 = vor.u32 %v6394_v54, %v5661_v55  ;;  %v6263_v49 = vld [vmem:[#allocation13 + $0x12c] sm:$0xf0] }
 0x442   :  { %3651 = vmatpush.bf16.msrb.mxu1 %v5692_v11  ;;  %3663 = vmatpush.bf16.msrb.mxu2 %v5980_v12  ;;  %v5117_v11 = vld [vmem:[#allocation13 + $0x128] sm:$0xf0]  ;;  %v5820_v16 = vor.u32 %v6438_v8, %v5819_v61  ;;  %v5219_v61 = vld [vmem:[#allocation13 + $0x1d0] sm:$0xf] }
 0x443   :  { %v6330_v12 = vld [vmem:[#allocation13 + $0x34c] sm:$0xf]  ;;  %v5120_v20 = vor.u32 %v6258_v9, %v5117_v11  ;;  %v6287_v8 = vld [vmem:[#allocation13 + $0x1ec] sm:$0xf0]  ;;  %v4992_v9 = vor.u32 %v6226_v62, %v4989_v63 }
 0x444   :  { %v5408_v21 = vor.u32 %v6330_v12, %v5405_v14  ;;  %v6290_v12 = vld [vmem:[#allocation13 + $0x20c] sm:$0xf]  ;;  %v5632_v14 = vor.u32 %v6386_v4, %v5629_v5  ;;  %v5091_v62 = vld [vmem:[#allocation13 + $0xd0] sm:$0xf] }
 0x445   :  { %3630 = vmatpush.bf16.msra.mxu3 %v5020_v22  ;;  %3642 = vmatpush.bf16.msrb.mxu0 %v5308_v18  ;;  %v5787_v22 = vld [vmem:[#allocation13 + $0x648] sm:$0xf]  ;;  %v5853_v35 = vld [vmem:[#allocation13 + $0x6e8] sm:$0xf0]  ;;  %v6255_v63 = vld [vmem:[#allocation13 + $0xec] sm:$0xf0] }
 0x446   :  { %3652 = vmatpush.bf16.msrb.mxu1 %v5660_v26  ;;  %3664 = vmatpush.bf16.msrb.mxu2 %v5948_v27  ;;  %v6430_v18 = vld [vmem:[#allocation13 + $0x664] sm:$0xf0]  ;;  %v6322_v26 = vld [vmem:[#allocation13 + $0x30c] sm:$0xf] }
 0x447   :  { %v5373_v27 = vld [vmem:[#allocation13 + $0x328] sm:$0xf0]  ;;  %v5788_v31 = vor.u32 %v6430_v18, %v5787_v22  ;;  %v5187_v18 = vld [vmem:[#allocation13 + $0x190] sm:$0xf] }
 0x448   :  { %v5376_v34 = vor.u32 %v6322_v26, %v5373_v27  ;;  %v5885_v22 = vld [vmem:[#allocation13 + $0x728] sm:$0xf0]  ;;  %v6351_v26 = vld [vmem:[#allocation13 + $0x3ec] sm:$0xf0]  ;;  %v5188_v32 = vor.u32 %v6279_v23, %v5187_v18 }
 0x449   :  { %3631 = vmatpush.bf16.msra.mxu3 %v4988_v36  ;;  %3643 = vmatpush.bf16.msrb.mxu0 %v5276_v37  ;;  %v6242_v36 = vld [vmem:[#allocation13 + $0x8c] sm:$0xf]  ;;  %v5027_v23 = vld [vmem:[#allocation13 + $0x50] sm:$0xf] }
 0x44a   :  { %3653 = vmatpush.bf16.msrb.mxu1 %v5628_v39  ;;  %3665 = vmatpush.bf16.msrb.mxu2 %v5916_v40  ;;  %v5053_v37 = vld [vmem:[#allocation13 + $0xa8] sm:$0xf0] }
 0x44b   :  { %v6314_v39 = vld [vmem:[#allocation13 + $0x2cc] sm:$0xf]  ;;  %v5056_v46 = vor.u32 %v6242_v36, %v5053_v37  ;;  %v5155_v36 = vld [vmem:[#allocation13 + $0x150] sm:$0xf] }
 0x44c   :  { %3606 = vmatmul.bf16.vlgmr.msra.gmra.mxu1 %v6937_v58  ;;  %3632 = vmatmul.bf16.vlgmr.msra.gmra.mxu3 %v6929_v13  ;;  %v5341_v40 = vld [vmem:[#allocation13 + $0x2e8] sm:$0xf0]  ;;  %v6271_v37 = vld [vmem:[#allocation13 + $0x16c] sm:$0xf0] }
 0x44d   :  { %3676 = vmatpush.bf16.msrb.mxu3 %v5216_v44  ;;  %3644 = vmatpush.bf16.msrb.mxu0 %v5244_v51  ;;  %v5981_v44 = vld [vmem:[#allocation13 + $0x7e8] sm:$0xf0]  ;;  %v5344_v47 = vor.u32 %v6314_v39, %v5341_v40  ;;  %v6343_v39 = vld [vmem:[#allocation13 + $0x3ac] sm:$0xf0] }
 0x44e   :  { %3654 = vmatpush.bf16.msrb.mxu1 %v5596_v52  ;;  %3666 = vmatpush.bf16.msrb.mxu2 %v5884_v53  ;;  %v5984_v51 = vor.u32 %v6474_v43, %v5981_v44  ;;  %v6306_v52 = vld [vmem:[#allocation13 + $0x28c] sm:$0xf]  ;;  %v5156_v44 = vor.u32 %v6271_v37, %v5155_v36  ;;  %v4995_v36 = vld [vmem:[#allocation13 + $0x10] sm:$0xf] }
 0x44f   :  { %v5309_v53 = vld [vmem:[#allocation13 + $0x2a8] sm:$0xf0]  ;;  %v6231_v37 = vld [vmem:[#allocation13 + $0x2c] sm:$0xf0] }
 0x450   :  { %3619 = vmatmul.bf16.vlgmr.msra.gmra.mxu2 %v6941_v10  ;;  %3645 = vmatmul.bf16.vlgmr.msrb.gmra.mxu0 %v6932_v25  ;;  %v5312_v60 = vor.u32 %v6306_v52, %v5309_v53  ;;  %v6362_v42 = vld [vmem:[#allocation13 + $0x44c] sm:$0xf] }
 0x451   :  { %3677 = vmatpush.bf16.msrb.mxu3 %v5184_v56  ;;  %3689 = vmatpush.bf16.msra.mxu0 %v5472_v57  ;;  %v6466_v56 = vld [vmem:[#allocation13 + $0x78c] sm:$0xf] }
 0x452   :  { %3655 = vmatpush.bf16.msrb.mxu1 %v5564_v2  ;;  %3667 = vmatpush.bf16.msrb.mxu2 %v5852_v3  ;;  %v5949_v57 = vld [vmem:[#allocation13 + $0x7a8] sm:$0xf0] }
 0x453   :  { %v5952_v1 = vor.u32 %v6466_v56, %v5949_v57  ;;  %v6298_v2 = vld [vmem:[#allocation13 + $0x24c] sm:$0xf]  ;;  %v5124_v56 = vor.u32 %v6263_v49, %v5123_v48  ;;  %v4996_v48 = vor.u32 %v6231_v37, %v4995_v36  ;;  %v6251_v36 = vld [vmem:[#allocation13 + $0xd4] sm:$0xf] }
 0x454   :  { %v5277_v3 = vld [vmem:[#allocation13 + $0x268] sm:$0xf0]  ;;  %v5093_v37 = vld [vmem:[#allocation13 + $0xf0] sm:$0xf0] }
 0x455   :  { %3678 = vmatpush.bf16.msrb.mxu3 %v5152_v6  ;;  %3690 = vmatpush.bf16.msra.mxu0 %v5440_v7  ;;  %v6458_v6 = vld [vmem:[#allocation13 + $0x74c] sm:$0xf]  ;;  %v5280_v11 = vor.u32 %v6298_v2, %v5277_v3  ;;  %v5731_v2 = vld [vmem:[#allocation13 + $0x5d0] sm:$0xf] }
 0x456   :  { %3656 = vmatpush.bf16.msrb.mxu1 %v5532_v15  ;;  %3668 = vmatpush.bf16.msrb.mxu2 %v5820_v16  ;;  %v5917_v7 = vld [vmem:[#allocation13 + $0x768] sm:$0xf0]  ;;  %v6415_v3 = vld [vmem:[#allocation13 + $0x5ec] sm:$0xf0] }
 0x457   :  { %v5920_v15 = vor.u32 %v6458_v6, %v5917_v7  ;;  %v5245_v16 = vld [vmem:[#allocation13 + $0x228] sm:$0xf0]  ;;  %v5092_v7 = vor.u32 %v6255_v63, %v5091_v62  ;;  %v5189_v62 = vld [vmem:[#allocation13 + $0x1b0] sm:$0xf0] }
 0x458   :  { %v5248_v27 = vor.u32 %v6290_v12, %v5245_v16  ;;  %v5533_v43 = vld [vmem:[#allocation13 + $0x468] sm:$0xf0]  ;;  %v5732_v12 = vor.u32 %v6415_v3, %v5731_v2  ;;  %v5699_v16 = vld [vmem:[#allocation13 + $0x590] sm:$0xf]  ;;  %v6347_v63 = vld [vmem:[#allocation13 + $0x3d4] sm:$0xf] }
 0x459   :  { %3679 = vmatpush.bf16.msrb.mxu3 %v5120_v20  ;;  %3691 = vmatpush.bf16.msra.mxu0 %v5408_v21  ;;  %v5220_v20 = vor.u32 %v6287_v8, %v5219_v61  ;;  %v6450_v21 = vld [vmem:[#allocation13 + $0x70c] sm:$0xf]  ;;  %v5536_v52 = vor.u32 %v6362_v42, %v5533_v43  ;;  %v5635_v42 = vld [vmem:[#allocation13 + $0x510] sm:$0xf] }
 0x45a   :  { %3657 = vmatpush.bf16.msrb.mxu1 %v5500_v30  ;;  %3669 = vmatpush.bf16.msrb.mxu2 %v5788_v31  ;;  %v5888_v29 = vor.u32 %v6450_v21, %v5885_v22  ;;  %v6370_v30 = vld [vmem:[#allocation13 + $0x48c] sm:$0xf]  ;;  %v6391_v43 = vld [vmem:[#allocation13 + $0x52c] sm:$0xf0] }
 0x45b   :  { %v5565_v31 = vld [vmem:[#allocation13 + $0x4a8] sm:$0xf0] }
 0x45c   :  { %v5568_v40 = vor.u32 %v6370_v30, %v5565_v31  ;;  %v6354_v54 = vld [vmem:[#allocation13 + $0x40c] sm:$0xf]  ;;  %v5667_v30 = vld [vmem:[#allocation13 + $0x550] sm:$0xf] }
 0x45d   :  { %3680 = vmatpush.bf16.msrb.mxu3 %v5088_v33  ;;  %3692 = vmatpush.bf16.msra.mxu0 %v5376_v34  ;;  %v5476_v33 = vor.u32 %v6351_v26, %v5475_v24  ;;  %v6442_v34 = vld [vmem:[#allocation13 + $0x6cc] sm:$0xf]  ;;  %v6239_v24 = vld [vmem:[#allocation13 + $0x6c] sm:$0xf0]  ;;  %v5700_v26 = vor.u32 %v6407_v17, %v5699_v16 }
 0x45e   :  { %3702 = vmatpush.bf16.msra.mxu1 %v5728_v38  ;;  %3670 = vmatpush.bf16.msrb.mxu2 %v5756_v45  ;;  %v5443_v38 = vld [vmem:[#allocation13 + $0x390] sm:$0xf]  ;;  %v5856_v41 = vor.u32 %v6442_v34, %v5853_v35  ;;  %v5501_v55 = vld [vmem:[#allocation13 + $0x428] sm:$0xf0]  ;;  %v5028_v34 = vor.u32 %v6239_v24, %v5027_v23  ;;  %v6259_v23 = vld [vmem:[#allocation13 + $0x114] sm:$0xf] }
 0x45f   :  { %3658 = vmatmul.bf16.vlgmr.msrb.gmra.mxu1 %v6937_v58  ;;  %v5444_v45 = vor.u32 %v6343_v39, %v5443_v38  ;;  %v5504_v4 = vor.u32 %v6354_v54, %v5501_v55  ;;  %v6418_v6 = vld [vmem:[#allocation13 + $0x60c] sm:$0xf]  ;;  %v6399_v31 = vld [vmem:[#allocation13 + $0x56c] sm:$0xf0]  ;;  %v5125_v24 = vld [vmem:[#allocation13 + $0x130] sm:$0xf0] }
 0x460   :  { %v5757_v8 = vld [vmem:[#allocation13 + $0x628] sm:$0xf0]  ;;  %v5668_v38 = vor.u32 %v6399_v31, %v5667_v30  ;;  %v5603_v54 = vld [vmem:[#allocation13 + $0x4d0] sm:$0xf] }
 0x461   :  { %3681 = vmatpush.bf16.msrb.mxu3 %v5056_v46  ;;  %3693 = vmatpush.bf16.msra.mxu0 %v5344_v47  ;;  %v6434_v46 = vld [vmem:[#allocation13 + $0x68c] sm:$0xf]  ;;  %v5760_v21 = vor.u32 %v6418_v6, %v5757_v8  ;;  %v6383_v55 = vld [vmem:[#allocation13 + $0x4ec] sm:$0xf0] }
 0x462   :  { %3703 = vmatpush.bf16.msra.mxu1 %v5696_v50  ;;  %3715 = vmatpush.bf16.msra.mxu2 %v5984_v51  ;;  %v5821_v47 = vld [vmem:[#allocation13 + $0x6a8] sm:$0xf0]  ;;  %v5411_v50 = vld [vmem:[#allocation13 + $0x350] sm:$0xf]  ;;  %v5604_v2 = vor.u32 %v6383_v55, %v5603_v54  ;;  %v5701_v54 = vld [vmem:[#allocation13 + $0x5b0] sm:$0xf0] }
 0x463   :  { %3671 = vmatmul.bf16.vlgmr.msrb.gmra.mxu2 %v6941_v10  ;;  %v6335_v51 = vld [vmem:[#allocation13 + $0x36c] sm:$0xf0]  ;;  %v5824_v53 = vor.u32 %v6434_v46, %v5821_v47  ;;  %v6283_v46 = vld [vmem:[#allocation13 + $0x1d4] sm:$0xf] }
 0x464   :  { %v5412_v57 = vor.u32 %v6335_v51, %v5411_v50  ;;  %v5221_v47 = vld [vmem:[#allocation13 + $0x1f0] sm:$0xf0]  ;;  %v5251_v50 = vld [vmem:[#allocation13 + $0x210] sm:$0xf]  ;;  %v5636_v51 = vor.u32 %v6391_v43, %v5635_v42 }
 0x465   :  { %3682 = vmatpush.bf16.msrb.mxu3 %v5024_v59  ;;  %3694 = vmatpush.bf16.msra.mxu0 %v5312_v60  ;;  %v6426_v59 = vld [vmem:[#allocation13 + $0x64c] sm:$0xf]  ;;  %v6447_v8 = vld [vmem:[#allocation13 + $0x6ec] sm:$0xf0]  ;;  %v6475_v55 = vld [vmem:[#allocation13 + $0x7d4] sm:$0xf] }
 0x466   :  { %3704 = vmatpush.bf16.msra.mxu1 %v5664_v0  ;;  %3716 = vmatpush.bf16.msra.mxu2 %v5952_v1  ;;  %v5789_v60 = vld [vmem:[#allocation13 + $0x668] sm:$0xf0]  ;;  %v5379_v0 = vld [vmem:[#allocation13 + $0x310] sm:$0xf] }
 0x467   :  { %v6327_v1 = vld [vmem:[#allocation13 + $0x32c] sm:$0xf0]  ;;  %v5792_v5 = vor.u32 %v6426_v59, %v5789_v60  ;;  %v6275_v60 = vld [vmem:[#allocation13 + $0x194] sm:$0xf] }
 0x468   :  { %v5380_v61 = vor.u32 %v6327_v1, %v5379_v0  ;;  %v6455_v59 = vld [vmem:[#allocation13 + $0x72c] sm:$0xf0]  ;;  %v5477_v0 = vld [vmem:[#allocation13 + $0x3f0] sm:$0xf0]  ;;  %v5192_v6 = vor.u32 %v6275_v60, %v5189_v62 }
 0x469   :  { %3683 = vmatpush.bf16.msrb.mxu3 %v4992_v9  ;;  %3695 = vmatpush.bf16.msra.mxu0 %v5280_v11  ;;  %v5059_v9 = vld [vmem:[#allocation13 + $0x90] sm:$0xf]  ;;  %v6235_v62 = vld [vmem:[#allocation13 + $0x54] sm:$0xf] }
 0x46a   :  { %3705 = vmatpush.bf16.msra.mxu1 %v5632_v14  ;;  %3717 = vmatpush.bf16.msra.mxu2 %v5920_v15  ;;  %v6247_v11 = vld [vmem:[#allocation13 + $0xac] sm:$0xf0] }
 0x46b   :  { %v5347_v14 = vld [vmem:[#allocation13 + $0x2d0] sm:$0xf]  ;;  %v5060_v22 = vor.u32 %v6247_v11, %v5059_v9  ;;  %v6267_v9 = vld [vmem:[#allocation13 + $0x154] sm:$0xf] }
 0x46c   :  { %3684 = vmatmul.bf16.vlgmr.msrb.gmra.mxu3 %v6929_v13  ;;  %v6319_v15 = vld [vmem:[#allocation13 + $0x2ec] sm:$0xf0]  ;;  %v5157_v11 = vld [vmem:[#allocation13 + $0x170] sm:$0xf0] }
 0x46d   :  { %3728 = vmatpush.bf16.msra.mxu3 %v5220_v20  ;;  %3696 = vmatpush.bf16.msra.mxu0 %v5248_v27  ;;  %v6479_v20 = vld [vmem:[#allocation13 + $0x7ec] sm:$0xf0]  ;;  %v5348_v18 = vor.u32 %v6319_v15, %v5347_v14  ;;  %v5445_v14 = vld [vmem:[#allocation13 + $0x3b0] sm:$0xf0] }
 0x46e   :  { %3706 = vmatpush.bf16.msra.mxu1 %v5600_v28  ;;  %3718 = vmatpush.bf16.msra.mxu2 %v5888_v29  ;;  %v5988_v27 = vor.u32 %v6479_v20, %v5987_v19  ;;  %v5315_v28 = vld [vmem:[#allocation13 + $0x290] sm:$0xf]  ;;  %v5160_v20 = vor.u32 %v6267_v9, %v5157_v11  ;;  %v6227_v9 = vld [vmem:[#allocation13 + $0x14] sm:$0xf] }
 0x46f   :  { %v6311_v29 = vld [vmem:[#allocation13 + $0x2ac] sm:$0xf0]  ;;  %v4997_v11 = vld [vmem:[#allocation13 + $0x30] sm:$0xf0] }
 0x470   :  { %3697 = vmatmul.bf16.vlgmr.msra.gmra.mxu0 %v6932_v25  ;;  %v5316_v35 = vor.u32 %v6311_v29, %v5315_v28  ;;  %v5539_v17 = vld [vmem:[#allocation13 + $0x450] sm:$0xf] }
 0x471   :  { %3729 = vmatpush.bf16.msra.mxu3 %v5188_v32  ;;  %3741 = vmatpush.bf16.msrb.mxu0 %v5476_v33  ;;  %v5955_v32 = vld [vmem:[#allocation13 + $0x790] sm:$0xf] }
 0x472   :  { %3707 = vmatpush.bf16.msra.mxu1 %v5568_v40  ;;  %3719 = vmatpush.bf16.msra.mxu2 %v5856_v41  ;;  %v6471_v33 = vld [vmem:[#allocation13 + $0x7ac] sm:$0xf0] }
 0x473   :  { %v5956_v39 = vor.u32 %v6471_v33, %v5955_v32  ;;  %v5283_v40 = vld [vmem:[#allocation13 + $0x250] sm:$0xf]  ;;  %v5128_v32 = vor.u32 %v6259_v23, %v5125_v24  ;;  %v5000_v23 = vor.u32 %v6227_v9, %v4997_v11  ;;  %v5797_v9 = vld [vmem:[#allocation13 + $0x670] sm:$0xf0]  ;;  %v5099_v11 = vld [vmem:[#allocation13 + $0xd8] sm:$0xf] }
 0x474   :  { %v6303_v41 = vld [vmem:[#allocation13 + $0x26c] sm:$0xf0] }
 0x475   :  { %3730 = vmatpush.bf16.msra.mxu3 %v5156_v44  ;;  %3742 = vmatpush.bf16.msrb.mxu0 %v5444_v45  ;;  %v5923_v44 = vld [vmem:[#allocation13 + $0x750] sm:$0xf]  ;;  %v5284_v49 = vor.u32 %v6303_v41, %v5283_v40  ;;  %v6411_v40 = vld [vmem:[#allocation13 + $0x5d4] sm:$0xf] }
 0x476   :  { %3708 = vmatpush.bf16.msra.mxu1 %v5536_v52  ;;  %3720 = vmatpush.bf16.msra.mxu2 %v5824_v53  ;;  %v6463_v45 = vld [vmem:[#allocation13 + $0x76c] sm:$0xf0]  ;;  %v5733_v41 = vld [vmem:[#allocation13 + $0x5f0] sm:$0xf0] }
 0x477   :  { %v5924_v52 = vor.u32 %v6463_v45, %v5923_v44  ;;  %v6295_v53 = vld [vmem:[#allocation13 + $0x22c] sm:$0xf0]  ;;  %v5096_v45 = vor.u32 %v6251_v36, %v5093_v37  ;;  %v6280_v36 = vld [vmem:[#allocation13 + $0x1b4] sm:$0xf0] }
 0x478   :  { %v5252_v1 = vor.u32 %v6295_v53, %v5251_v50  ;;  %v6367_v19 = vld [vmem:[#allocation13 + $0x46c] sm:$0xf0]  ;;  %v5736_v50 = vor.u32 %v6411_v40, %v5733_v41  ;;  %v6403_v53 = vld [vmem:[#allocation13 + $0x594] sm:$0xf]  ;;  %v5483_v37 = vld [vmem:[#allocation13 + $0x3d8] sm:$0xf] }
 0x479   :  { %3731 = vmatpush.bf16.msra.mxu3 %v5124_v56  ;;  %3743 = vmatpush.bf16.msrb.mxu0 %v5412_v57  ;;  %v5224_v56 = vor.u32 %v6283_v46, %v5221_v47  ;;  %v5891_v57 = vld [vmem:[#allocation13 + $0x710] sm:$0xf]  ;;  %v5540_v28 = vor.u32 %v6367_v19, %v5539_v17  ;;  %v6387_v17 = vld [vmem:[#allocation13 + $0x514] sm:$0xf] }
 0x47a   :  { %3709 = vmatpush.bf16.msra.mxu1 %v5504_v4  ;;  %3721 = vmatpush.bf16.msra.mxu2 %v5792_v5  ;;  %v5892_v3 = vor.u32 %v6455_v59, %v5891_v57  ;;  %v5571_v4 = vld [vmem:[#allocation13 + $0x490] sm:$0xf]  ;;  %v5637_v19 = vld [vmem:[#allocation13 + $0x530] sm:$0xf0] }
 0x47b   :  { %v6375_v5 = vld [vmem:[#allocation13 + $0x4ac] sm:$0xf0] }
 0x47c   :  { %v5572_v15 = vor.u32 %v6375_v5, %v5571_v4  ;;  %v5507_v30 = vld [vmem:[#allocation13 + $0x410] sm:$0xf]  ;;  %v6395_v4 = vld [vmem:[#allocation13 + $0x554] sm:$0xf] }
 0x47d   :  { %3732 = vmatpush.bf16.msra.mxu3 %v5092_v7  ;;  %3744 = vmatpush.bf16.msrb.mxu0 %v5380_v61  ;;  %v5480_v7 = vor.u32 %v6347_v63, %v5477_v0  ;;  %v5859_v61 = vld [vmem:[#allocation13 + $0x6d0] sm:$0xf]  ;;  %v5029_v63 = vld [vmem:[#allocation13 + $0x70] sm:$0xf0]  ;;  %v5704_v0 = vor.u32 %v6403_v53, %v5701_v54 }
 0x47e   :  { %3754 = vmatpush.bf16.msrb.mxu1 %v5732_v12  ;;  %3722 = vmatpush.bf16.msra.mxu2 %v5760_v21  ;;  %v6339_v12 = vld [vmem:[#allocation13 + $0x394] sm:$0xf]  ;;  %v5860_v16 = vor.u32 %v6447_v8, %v5859_v61  ;;  %v6359_v31 = vld [vmem:[#allocation13 + $0x42c] sm:$0xf0]  ;;  %v5032_v61 = vor.u32 %v6235_v62, %v5029_v63  ;;  %v5131_v62 = vld [vmem:[#allocation13 + $0x118] sm:$0xf] }
 0x47f   :  { %3710 = vmatmul.bf16.vlgmr.msra.gmra.mxu1 %v6937_v58  ;;  %v5448_v21 = vor.u32 %v6339_v12, %v5445_v14  ;;  %v5508_v42 = vor.u32 %v6359_v31, %v5507_v30  ;;  %v5763_v44 = vld [vmem:[#allocation13 + $0x610] sm:$0xf]  ;;  %v5669_v5 = vld [vmem:[#allocation13 + $0x570] sm:$0xf0]  ;;  %v6264_v63 = vld [vmem:[#allocation13 + $0x134] sm:$0xf0] }
 0x480   :  { %v6423_v47 = vld [vmem:[#allocation13 + $0x62c] sm:$0xf0]  ;;  %v5672_v12 = vor.u32 %v6395_v4, %v5669_v5  ;;  %v6379_v30 = vld [vmem:[#allocation13 + $0x4d4] sm:$0xf] }
 0x481   :  { %3733 = vmatpush.bf16.msra.mxu3 %v5060_v22  ;;  %3745 = vmatpush.bf16.msrb.mxu0 %v5348_v18  ;;  %v5827_v22 = vld [vmem:[#allocation13 + $0x690] sm:$0xf]  ;;  %v5764_v57 = vor.u32 %v6423_v47, %v5763_v44  ;;  %v5605_v31 = vld [vmem:[#allocation13 + $0x4f0] sm:$0xf0] }
 0x482   :  { %3755 = vmatpush.bf16.msrb.mxu1 %v5700_v26  ;;  %3767 = vmatpush.bf16.msrb.mxu2 %v5988_v27  ;;  %v6439_v18 = vld [vmem:[#allocation13 + $0x6ac] sm:$0xf0]  ;;  %v6331_v26 = vld [vmem:[#allocation13 + $0x354] sm:$0xf]  ;;  %v5608_v40 = vor.u32 %v6379_v30, %v5605_v31  ;;  %v6320_v30 = vld [vmem:[#allocation13 + $0x2f4] sm:$0xf0] }
 0x483   :  { %3723 = vmatmul.bf16.vlgmr.msra.gmra.mxu2 %v6941_v10  ;;  %v5413_v27 = vld [vmem:[#allocation13 + $0x370] sm:$0xf0]  ;;  %v5828_v29 = vor.u32 %v6439_v18, %v5827_v22  ;;  %v5227_v22 = vld [vmem:[#allocation13 + $0x1d8] sm:$0xf] }
 0x484   :  { %v5416_v33 = vor.u32 %v6331_v26, %v5413_v27  ;;  %v6288_v18 = vld [vmem:[#allocation13 + $0x1f4] sm:$0xf0]  ;;  %v6291_v26 = vld [vmem:[#allocation13 + $0x214] sm:$0xf]  ;;  %v5640_v27 = vor.u32 %v6387_v17, %v5637_v19 }
 0x485   :  { %3734 = vmatpush.bf16.msra.mxu3 %v5028_v34  ;;  %3746 = vmatpush.bf16.msrb.mxu0 %v5316_v35  ;;  %v5795_v34 = vld [vmem:[#allocation13 + $0x650] sm:$0xf]  ;;  %v5861_v47 = vld [vmem:[#allocation13 + $0x6f0] sm:$0xf0]  ;;  %v5739_v17 = vld [vmem:[#allocation13 + $0x5d8] sm:$0xf] }
 0x486   :  { %3756 = vmatpush.bf16.msrb.mxu1 %v5668_v38  ;;  %3768 = vmatpush.bf16.msrb.mxu2 %v5956_v39  ;;  %v6431_v35 = vld [vmem:[#allocation13 + $0x66c] sm:$0xf0]  ;;  %v6323_v38 = vld [vmem:[#allocation13 + $0x314] sm:$0xf]  ;;  %v6416_v19 = vld [vmem:[#allocation13 + $0x5f4] sm:$0xf0] }
 0x487   :  { %v5381_v39 = vld [vmem:[#allocation13 + $0x330] sm:$0xf0]  ;;  %v5796_v43 = vor.u32 %v6431_v35, %v5795_v34  ;;  %v5195_v35 = vld [vmem:[#allocation13 + $0x198] sm:$0xf] }
 0x488   :  { %v5384_v46 = vor.u32 %v6323_v38, %v5381_v39  ;;  %v5893_v34 = vld [vmem:[#allocation13 + $0x730] sm:$0xf0]  ;;  %v6352_v38 = vld [vmem:[#allocation13 + $0x3f4] sm:$0xf0]  ;;  %v5196_v44 = vor.u32 %v6280_v36, %v5195_v35  ;;  %v6968_v36 = vld [vmem:[%s7080_s10] sm:$0xff] }
 0x489   :  { %3735 = vmatpush.bf16.msra.mxu3 %v4996_v48  ;;  %3747 = vmatpush.bf16.msrb.mxu0 %v5284_v49  ;;  %v6243_v48 = vld [vmem:[#allocation13 + $0x94] sm:$0xf]  ;;  %v5707_v31 = vld [vmem:[#allocation13 + $0x598] sm:$0xf] }
 0x48a   :  { %3757 = vmatpush.bf16.msrb.mxu1 %v5636_v51  ;;  %3769 = vmatpush.bf16.msrb.mxu2 %v5924_v52  ;;  %v5061_v49 = vld [vmem:[#allocation13 + $0xb0] sm:$0xf0] }
 0x48b   :  { %v6315_v51 = vld [vmem:[#allocation13 + $0x2d4] sm:$0xf]  ;;  %v5064_v59 = vor.u32 %v6243_v48, %v5061_v49  ;;  %v5163_v48 = vld [vmem:[#allocation13 + $0x158] sm:$0xf] }
 0x48c   :  { %3736 = vmatmul.bf16.vlgmr.msra.gmra.mxu3 %v6929_v13  ;;  %v5349_v52 = vld [vmem:[#allocation13 + $0x2f0] sm:$0xf0]  ;;  %v6272_v49 = vld [vmem:[#allocation13 + $0x174] sm:$0xf0] }
 0x48d   :  { %3780 = vmatpush.bf16.msrb.mxu3 %v5224_v56  ;;  %3748 = vmatpush.bf16.msrb.mxu0 %v5252_v1  ;;  %v5989_v56 = vld [vmem:[#allocation13 + $0x7f0] sm:$0xf0]  ;;  %v5352_v60 = vor.u32 %v6315_v51, %v5349_v52  ;;  %v6344_v51 = vld [vmem:[#allocation13 + $0x3b4] sm:$0xf0] }
 0x48e   :  { %3758 = vmatpush.bf16.msrb.mxu1 %v5604_v2  ;;  %3770 = vmatpush.bf16.msrb.mxu2 %v5892_v3  ;;  %v5992_v1 = vor.u32 %v6475_v55, %v5989_v56  ;;  %v6307_v2 = vld [vmem:[#allocation13 + $0x294] sm:$0xf]  ;;  %v5164_v56 = vor.u32 %v6272_v49, %v5163_v48  ;;  %v6400_v48 = vld [vmem:[#allocation13 + $0x574] sm:$0xf0] }
 0x48f   :  { %v5317_v3 = vld [vmem:[#allocation13 + $0x2b0] sm:$0xf0]  ;;  %v5963_v49 = vld [vmem:[#allocation13 + $0x798] sm:$0xf] }
 0x490   :  { %3749 = vmatmul.bf16.vlgmr.msrb.gmra.mxu0 %v6932_v25  ;;  %v5320_v8 = vor.u32 %v6307_v2, %v5317_v3  ;;  %v6363_v54 = vld [vmem:[#allocation13 + $0x454] sm:$0xf] }
 0x491   :  { %3781 = vmatpush.bf16.msrb.mxu3 %v5192_v6  ;;  %3793 = vmatpush.bf16.msra.mxu0 %v5480_v7  ;;  %v6467_v6 = vld [vmem:[#allocation13 + $0x794] sm:$0xf] }
 0x492   :  { %3759 = vmatpush.bf16.msrb.mxu1 %v5572_v15  ;;  %3771 = vmatpush.bf16.msrb.mxu2 %v5860_v16  ;;  %v5957_v7 = vld [vmem:[#allocation13 + $0x7b0] sm:$0xf0] }
 0x493   :  { %v5960_v14 = vor.u32 %v6467_v6, %v5957_v7  ;;  %v6299_v15 = vld [vmem:[#allocation13 + $0x254] sm:$0xf]  ;;  %v5132_v6 = vor.u32 %v6264_v63, %v5131_v62  ;;  %v6304_v62 = vld [vmem:[#allocation13 + $0x274] sm:$0xf0] }
 0x494   :  { %v5285_v16 = vld [vmem:[#allocation13 + $0x270] sm:$0xf0]  ;;  %v5643_v63 = vld [vmem:[#allocation13 + $0x518] sm:$0xf] }
 0x495   :  { %3782 = vmatpush.bf16.msrb.mxu3 %v5160_v20  ;;  %3794 = vmatpush.bf16.msra.mxu0 %v5448_v21  ;;  %v6459_v20 = vld [vmem:[#allocation13 + $0x754] sm:$0xf]  ;;  %v5288_v24 = vor.u32 %v6299_v15, %v5285_v16  ;;  %v6328_v15 = vld [vmem:[#allocation13 + $0x334] sm:$0xf0] }
 0x496   :  { %3760 = vmatpush.bf16.msrb.mxu1 %v5540_v28  ;;  %3772 = vmatpush.bf16.msrb.mxu2 %v5828_v29  ;;  %v5925_v21 = vld [vmem:[#allocation13 + $0x770] sm:$0xf0] }
 0x497   :  { %v5928_v28 = vor.u32 %v6459_v20, %v5925_v21  ;;  %v5253_v29 = vld [vmem:[#allocation13 + $0x230] sm:$0xf0] }
 0x498   :  { %v5256_v39 = vor.u32 %v6291_v26, %v5253_v29  ;;  %v5541_v55 = vld [vmem:[#allocation13 + $0x470] sm:$0xf0]  ;;  %v5067_v26 = vld [vmem:[#allocation13 + $0x98] sm:$0xf] }
 0x499   :  { %3783 = vmatpush.bf16.msrb.mxu3 %v5128_v32  ;;  %3795 = vmatpush.bf16.msra.mxu0 %v5416_v33  ;;  %v5228_v32 = vor.u32 %v6288_v18, %v5227_v22  ;;  %v6451_v33 = vld [vmem:[#allocation13 + $0x714] sm:$0xf]  ;;  %v5544_v2 = vor.u32 %v6363_v54, %v5541_v55  ;;  %v5355_v29 = vld [vmem:[#allocation13 + $0x2d8] sm:$0xf] }
 0x49a   :  { %3761 = vmatpush.bf16.msrb.mxu1 %v5508_v42  ;;  %3773 = vmatpush.bf16.msrb.mxu2 %v5796_v43  ;;  %v5896_v41 = vor.u32 %v6451_v33, %v5893_v34  ;;  %v6371_v42 = vld [vmem:[#allocation13 + $0x494] sm:$0xf]  ;;  %v5995_v33 = vld [vmem:[#allocation13 + $0x7d8] sm:$0xf] }
 0x49b   :  { %v5573_v43 = vld [vmem:[#allocation13 + $0x4b0] sm:$0xf0]  ;;  %v6480_v34 = vld [vmem:[#allocation13 + $0x7f4] sm:$0xf0] }
 0x49c   :  { %v5576_v52 = vor.u32 %v6371_v42, %v5573_v43  ;;  %v6355_v4 = vld [vmem:[#allocation13 + $0x414] sm:$0xf]  ;;  %v5996_v43 = vor.u32 %v6480_v34, %v5995_v33  ;;  %v5003_v55 = vld [vmem:[#allocation13 + $0x18] sm:$0xf] }
 0x49d   :  { %3784 = vmatpush.bf16.msrb.mxu3 %v5096_v45  ;;  %3796 = vmatpush.bf16.msra.mxu0 %v5384_v46  ;;  %v5484_v45 = vor.u32 %v6352_v38, %v5483_v37  ;;  %v6443_v46 = vld [vmem:[#allocation13 + $0x6d4] sm:$0xf]  ;;  %v5356_v38 = vor.u32 %v6320_v30, %v5355_v29  ;;  %v6376_v33 = vld [vmem:[#allocation13 + $0x4b4] sm:$0xf0] }
 0x49e   :  { %3806 = vmatpush.bf16.msra.mxu1 %v5736_v50  ;;  %3774 = vmatpush.bf16.msrb.mxu2 %v5764_v57  ;;  %v5451_v50 = vld [vmem:[#allocation13 + $0x398] sm:$0xf]  ;;  %v5864_v53 = vor.u32 %v6443_v46, %v5861_v47  ;;  %v5509_v5 = vld [vmem:[#allocation13 + $0x430] sm:$0xf0] }
 0x49f   :  { %3762 = vmatmul.bf16.vlgmr.msrb.gmra.mxu1 %v6937_v58  ;;  %v5452_v57 = vor.u32 %v6344_v51, %v5451_v50  ;;  %v5512_v20 = vor.u32 %v6355_v4, %v5509_v5  ;;  %v6419_v22 = vld [vmem:[#allocation13 + $0x614] sm:$0xf]  ;;  %v5675_v46 = vld [vmem:[#allocation13 + $0x558] sm:$0xf]  ;;  %v2224_v51 = vperm.slane %v6968_v36, 0 }
 0x4a0   :  { %v6472_v50 = vld [vmem:[#allocation13 + $0x7b4] sm:$0xf0]  ;;  %v6284_v4 = vld [vmem:[#allocation13 + $0x1dc] sm:$0xf] }
 0x4a1   :  { %3785 = vmatpush.bf16.msrb.mxu3 %v5064_v59  ;;  %3797 = vmatpush.bf16.msra.mxu0 %v5352_v60  ;;  %v6435_v59 = vld [vmem:[#allocation13 + $0x694] sm:$0xf]  ;;  %v5229_v5 = vld [vmem:[#allocation13 + $0x1f8] sm:$0xf0] }
 0x4a2   :  { %3807 = vmatpush.bf16.msra.mxu1 %v5704_v0  ;;  %3819 = vmatpush.bf16.msra.mxu2 %v5992_v1  ;;  %v5829_v60 = vld [vmem:[#allocation13 + $0x6b0] sm:$0xf0]  ;;  %v5419_v0 = vld [vmem:[#allocation13 + $0x358] sm:$0xf] }
 0x4a3   :  { %3775 = vmatmul.bf16.vlgmr.msrb.gmra.mxu2 %v6941_v10  ;;  %v6336_v1 = vld [vmem:[#allocation13 + $0x374] sm:$0xf0]  ;;  %v5832_v3 = vor.u32 %v6435_v59, %v5829_v60  ;;  %v5964_v59 = vor.u32 %v6472_v50, %v5963_v49 }
 0x4a4   :  { %v5420_v7 = vor.u32 %v6336_v1, %v5419_v0  ;;  %v5291_v60 = vld [vmem:[#allocation13 + $0x258] sm:$0xf] }
 0x4a5   :  { %3786 = vmatpush.bf16.msrb.mxu3 %v5032_v61  ;;  %3798 = vmatpush.bf16.msra.mxu0 %v5320_v8  ;;  %v6427_v8 = vld [vmem:[#allocation13 + $0x654] sm:$0xf]  ;;  %v6392_v0 = vld [vmem:[#allocation13 + $0x534] sm:$0xf0] }
 0x4a6   :  { %3808 = vmatpush.bf16.msra.mxu1 %v5672_v12  ;;  %3820 = vmatpush.bf16.msra.mxu2 %v5960_v14  ;;  %v6256_v12 = vld [vmem:[#allocation13 + $0xf4] sm:$0xf0]  ;;  %v5800_v21 = vor.u32 %v6427_v8, %v5797_v9 }
 0x4a7   :  { %v5387_v14 = vld [vmem:[#allocation13 + $0x318] sm:$0xf]  ;;  %v5100_v18 = vor.u32 %v6256_v12, %v5099_v11  ;;  %v5644_v11 = vor.u32 %v6392_v0, %v5643_v63 }
 0x4a8   :  { %v5931_v1 = vld [vmem:[#allocation13 + $0x758] sm:$0xf] }
 0x4a9   :  { %3787 = vmatpush.bf16.msrb.mxu3 %v5000_v23  ;;  %3799 = vmatpush.bf16.msra.mxu0 %v5288_v24  ;;  %v5388_v23 = vor.u32 %v6328_v15, %v5387_v14  ;;  %v5765_v24 = vld [vmem:[#allocation13 + $0x630] sm:$0xf0]  ;;  %v5259_v9 = vld [vmem:[#allocation13 + $0x218] sm:$0xf] }
 0x4aa   :  { %3809 = vmatpush.bf16.msra.mxu1 %v5640_v27  ;;  %3821 = vmatpush.bf16.msra.mxu2 %v5928_v28  ;;  %v6248_v27 = vld [vmem:[#allocation13 + $0xb4] sm:$0xf0]  ;;  %v5740_v28 = vor.u32 %v6416_v19, %v5739_v17  ;;  %v5768_v35 = vor.u32 %v6419_v22, %v5765_v24  ;;  %v5232_v19 = vor.u32 %v6284_v4, %v5229_v5  ;;  %v6276_v22 = vld [vmem:[#allocation13 + $0x19c] sm:$0xf] }
 0x4ab   :  { %v5068_v37 = vor.u32 %v6248_v27, %v5067_v26  ;;  %v6296_v14 = vld [vmem:[#allocation13 + $0x234] sm:$0xf0]  ;;  %v6348_v24 = vld [vmem:[#allocation13 + $0x3dc] sm:$0xf] }
 0x4ac   :  { %3788 = vmatmul.bf16.vlgmr.msrb.gmra.mxu3 %v6929_v13  ;;  %v5611_v15 = vld [vmem:[#allocation13 + $0x4d8] sm:$0xf]  ;;  %v5485_v26 = vld [vmem:[#allocation13 + $0x3f8] sm:$0xf0]  ;;  %v5260_v27 = vor.u32 %v6296_v14, %v5259_v9 }
 0x4ad   :  { %3832 = vmatpush.bf16.msra.mxu3 %v5228_v32  ;;  %3800 = vmatpush.bf16.msra.mxu0 %v5256_v39  ;;  %v6961_v61 = vpop.f32.mrf.mxu0  ;;  %v6408_v32 = vld [vmem:[#allocation13 + $0x5b4] sm:$0xf0]  ;;  %v6252_v9 = vld [vmem:[#allocation13 + $0xdc] sm:$0xf] }
 0x4ae   :  { %3810 = vmatpush.bf16.msra.mxu1 %v5608_v40  ;;  %3822 = vmatpush.bf16.msra.mxu2 %v5896_v41  ;;  %v5035_v40 = vld [vmem:[#allocation13 + $0x58] sm:$0xf]  ;;  %v5708_v42 = vor.u32 %v6408_v32, %v5707_v31  ;;  %v6324_v14 = vld [vmem:[#allocation13 + $0x31c] sm:$0xf] }
 0x4af   :  { %v6963_v16 = vpop.f32.mrf.mxu3  ;;  %v6240_v41 = vld [vmem:[#allocation13 + $0x74] sm:$0xf0] }
 0x4b0   :  { %3801 = vmatmul.bf16.vlgmr.msra.gmra.mxu0 %v6932_v25  ;;  %v6384_v17 = vld [vmem:[#allocation13 + $0x4f4] sm:$0xf0] }
 0x4b1   :  { %3833 = vmatpush.bf16.msra.mxu3 %v5196_v44  ;;  %3845 = vmatpush.bf16.msrb.mxu0 %v5484_v45  ;;  %v5323_v44 = vld [vmem:[#allocation13 + $0x298] sm:$0xf]  ;;  %v5612_v30 = vor.u32 %v6384_v17, %v5611_v15  ;;  %v5389_v15 = vld [vmem:[#allocation13 + $0x338] sm:$0xf0] }
 0x4b2   :  { %3811 = vmatpush.bf16.msra.mxu1 %v5576_v52  ;;  %3823 = vmatpush.bf16.msra.mxu2 %v5864_v53  ;;  %v6312_v45 = vld [vmem:[#allocation13 + $0x2b4] sm:$0xf0]  ;;  %v5036_v52 = vor.u32 %v6240_v41, %v5035_v40  ;;  %v5165_v41 = vld [vmem:[#allocation13 + $0x178] sm:$0xf0] }
 0x4b3   :  { %v5324_v53 = vor.u32 %v6312_v45, %v5323_v44  ;;  %v5579_v32 = vld [vmem:[#allocation13 + $0x498] sm:$0xf]  ;;  %v2225_v44 = vperm.slane %v6968_v36, 1 }
 0x4b4   :  { %v5547_v49 = vld [vmem:[#allocation13 + $0x458] sm:$0xf] }
 0x4b5   :  { %3834 = vmatpush.bf16.msra.mxu3 %v5164_v56  ;;  %3846 = vmatpush.bf16.msrb.mxu0 %v5452_v57  ;;  %v3544_v39 = vpop.f32.mrf.mxu0  ;;  %v6232_v56 = vld [vmem:[#allocation13 + $0x34] sm:$0xf0]  ;;  %v5676_v57 = vor.u32 %v6400_v48, %v5675_v46 }
 0x4b6   :  { %3812 = vmatpush.bf16.msra.mxu1 %v5544_v2  ;;  %3824 = vmatpush.bf16.msra.mxu2 %v5832_v3  ;;  %v6464_v2 = vld [vmem:[#allocation13 + $0x774] sm:$0xf0]  ;;  %v3530_v3 = vadd.f32 %v6963_v16, %v2224_v51  ;;  %v6268_v39 = vld [vmem:[#allocation13 + $0x15c] sm:$0xf] }
 0x4b7   :  { %v3531_v47 = vpop.f32.mrf.mxu3  ;;  %v5932_v12 = vor.u32 %v6464_v2, %v5931_v1  ;;  %v5899_v16 = vld [vmem:[#allocation13 + $0x718] sm:$0xf]  ;;  %v5168_v51 = vor.u32 %v6268_v39, %v5165_v41  ;;  %v5997_v39 = vld [vmem:[#allocation13 + $0x7f8] sm:$0xf0] }
 0x4b8   :  { %v5580_v47 = vor.u32 %v6376_v33, %v5579_v32  ;;  %v6368_v50 = vld [vmem:[#allocation13 + $0x474] sm:$0xf0]  ;;  %v5357_v33 = vld [vmem:[#allocation13 + $0x2f8] sm:$0xf0] }
 0x4b9   :  { %3835 = vmatpush.bf16.msra.mxu3 %v5132_v6  ;;  %3847 = vmatpush.bf16.msrb.mxu0 %v5420_v7  ;;  %v3555_v54 = vpop.f32.mrf.mxu1  ;;  %v5004_v6 = vor.u32 %v6232_v56, %v5003_v55  ;;  %v5292_v7 = vor.u32 %v6304_v62, %v5291_v60  ;;  %v6440_v55 = vld [vmem:[#allocation13 + $0x6b4] sm:$0xf0]  ;;  %v6260_v56 = vld [vmem:[#allocation13 + $0x11c] sm:$0xf]  ;;  %v5548_v63 = vor.u32 %v6368_v50, %v5547_v49 }
 0x4ba   :  { %3813 = vmatpush.bf16.msra.mxu1 %v5512_v20  ;;  %3825 = vmatpush.bf16.msra.mxu2 %v5800_v21  ;;  %v6456_v21 = vld [vmem:[#allocation13 + $0x734] sm:$0xf0]  ;;  %v5421_v60 = vld [vmem:[#allocation13 + $0x378] sm:$0xf0] }
 0x4bb   :  { %v5900_v31 = vor.u32 %v6456_v21, %v5899_v16  ;;  %v5515_v1 = vld [vmem:[#allocation13 + $0x418] sm:$0xf]  ;;  %v5741_v16 = vld [vmem:[#allocation13 + $0x5f8] sm:$0xf0] }
 0x4bc   :  { %v6360_v2 = vld [vmem:[#allocation13 + $0x434] sm:$0xf0]  ;;  %v6308_v49 = vld [vmem:[#allocation13 + $0x29c] sm:$0xf] }
 0x4bd   :  { %3836 = vmatpush.bf16.msra.mxu3 %v5100_v18  ;;  %3848 = vmatpush.bf16.msrb.mxu0 %v5388_v23  ;;  %v6974_v8 = vpop.f32.mrf.mxu0  ;;  %v3543_v18 = vadd.f32 %v6961_v61, %v3530_v3  ;;  %v5197_v23 = vld [vmem:[#allocation13 + $0x1b8] sm:$0xf0]  ;;  %v6448_v61 = vld [vmem:[#allocation13 + $0x6f4] sm:$0xf0] }
 0x4be   :  { %3858 = vmatpush.bf16.msrb.mxu1 %v5740_v28  ;;  %3826 = vmatpush.bf16.msra.mxu2 %v5768_v35  ;;  %v5200_v34 = vor.u32 %v6276_v22, %v5197_v23  ;;  %v5488_v35 = vor.u32 %v6348_v24, %v5485_v26  ;;  %v5516_v22 = vor.u32 %v6360_v2, %v5515_v1  ;;  %v5771_v23 = vld [vmem:[#allocation13 + $0x618] sm:$0xf]  ;;  %v5325_v50 = vld [vmem:[#allocation13 + $0x2b8] sm:$0xf0] }
 0x4bf   :  { %3814 = vmatmul.bf16.vlgmr.msra.gmra.mxu1 %v6937_v58  ;;  %v6976_v20 = vpop.f32.mrf.mxu3  ;;  %v3556_v29 = vadd.f32 %v3555_v54, %v3543_v18  ;;  %v5835_v54 = vld [vmem:[#allocation13 + $0x698] sm:$0xf]  ;;  %v6300_v2 = vld [vmem:[#allocation13 + $0x25c] sm:$0xf] }
 0x4c0   :  { %v5836_v0 = vor.u32 %v6440_v55, %v5835_v54  ;;  %v6424_v24 = vld [vmem:[#allocation13 + $0x634] sm:$0xf0]  ;;  %v6468_v54 = vld [vmem:[#allocation13 + $0x79c] sm:$0xf] }
 0x4c1   :  { %3837 = vmatpush.bf16.msra.mxu3 %v5068_v37  ;;  %3849 = vmatpush.bf16.msrb.mxu0 %v5356_v38  ;;  %v3557_v28 = vpop.f32.mrf.mxu1  ;;  %v5867_v38 = vld [vmem:[#allocation13 + $0x6d8] sm:$0xf]  ;;  %v5772_v41 = vor.u32 %v6424_v24, %v5771_v23  ;;  %v5965_v55 = vld [vmem:[#allocation13 + $0x7b8] sm:$0xf0] }
 0x4c2   :  { %3859 = vmatpush.bf16.msrb.mxu1 %v5708_v42  ;;  %3871 = vmatpush.bf16.msrb.mxu2 %v5996_v43  ;;  %v6340_v42 = vld [vmem:[#allocation13 + $0x39c] sm:$0xf]  ;;  %v5868_v48 = vor.u32 %v6448_v61, %v5867_v38  ;;  %v5968_v1 = vor.u32 %v6468_v54, %v5965_v55 }
 0x4c3   :  { %3827 = vmatmul.bf16.vlgmr.msra.gmra.mxu2 %v6941_v10  ;;  %v3568_v37 = vpop.f32.mrf.mxu2  ;;  %v5453_v43 = vld [vmem:[#allocation13 + $0x3b8] sm:$0xf0] }
 0x4c4   :  { %v3569_v40 = vadd.f32 %v3568_v37, %v3556_v29  ;;  %v5069_v29 = vld [vmem:[#allocation13 + $0xb8] sm:$0xf0] }
 0x4c5   :  { %3838 = vmatpush.bf16.msra.mxu3 %v5036_v52  ;;  %3850 = vmatpush.bf16.msrb.mxu0 %v5324_v53  ;;  %v3596_v45 = vpop.f32.mrf.mxu0  ;;  %v5456_v52 = vor.u32 %v6340_v42, %v5453_v43  ;;  %v6476_v61 = vld [vmem:[#allocation13 + $0x7dc] sm:$0xf] }
 0x4c6   :  { %3860 = vmatpush.bf16.msrb.mxu1 %v5676_v57  ;;  %3872 = vmatpush.bf16.msrb.mxu2 %v5964_v59  ;;  %v6001_v46 = vmul.f32 -1.442695, %v3569_v40  ;;  %v5133_v57 = vld [vmem:[#allocation13 + $0x138] sm:$0xf0] }
 0x4c7   :  { %v3583_v53 = vpop.f32.mrf.mxu3  ;;  %v6332_v59 = vld [vmem:[#allocation13 + $0x35c] sm:$0xf]  ;;  %v5136_v3 = vor.u32 %v6260_v56, %v5133_v57 }
 0x4c8   :  { %6501 = vpow2.f32 %v6001_v46  ;;  %v5424_v4 = vor.u32 %v6332_v59, %v5421_v60  ;;  %v6236_v45 = vld [vmem:[#allocation13 + $0x5c] sm:$0xf]  ;;  %v5328_v59 = vor.u32 %v6308_v49, %v5325_v50 }
 0x4c9   :  { %3839 = vmatpush.bf16.msra.mxu3 %v5004_v6  ;;  %3851 = vmatpush.bf16.msrb.mxu0 %v5292_v7  ;;  %v3607_v62 = vpop.f32.mrf.mxu1  ;;  %v5803_v6 = vld [vmem:[#allocation13 + $0x658] sm:$0xf]  ;;  %v5677_v53 = vld [vmem:[#allocation13 + $0x578] sm:$0xf0] }
 0x4ca   :  { %3861 = vmatpush.bf16.msrb.mxu1 %v5644_v11  ;;  %3873 = vmatpush.bf16.msrb.mxu2 %v5932_v12  ;;  %v6432_v7 = vld [vmem:[#allocation13 + $0x674] sm:$0xf0]  ;;  %v3582_v11 = vadd.f32 %v6976_v20, %v2225_v44  ;;  %v5101_v12 = vld [vmem:[#allocation13 + $0xf8] sm:$0xf0] }
 0x4cb   :  { %v3570_v5 = vpop.f32.mrf.mxu2  ;;  %v5804_v18 = vor.u32 %v6432_v7, %v5803_v6  ;;  %v5104_v26 = vor.u32 %v6252_v9, %v5101_v12  ;;  %v6244_v20 = vld [vmem:[#allocation13 + $0x9c] sm:$0xf] }
 0x4cc   :  { %3840 = vmatmul.bf16.vlgmr.msra.gmra.mxu3 %v6929_v13  ;;  %v5072_v42 = vor.u32 %v6244_v20, %v5069_v29  ;;  %v5645_v5 = vld [vmem:[#allocation13 + $0x538] sm:$0xf0] }
 0x4cd   :  { %3884 = vmatpush.bf16.msrb.mxu3 %v5232_v19  ;;  %3852 = vmatpush.bf16.msrb.mxu0 %v5260_v27  ;;  %v6983_v17 = vpop.f32.mrf.mxu0  ;;  %v6412_v19 = vld [vmem:[#allocation13 + $0x5dc] sm:$0xf]  ;;  %v5392_v27 = vor.u32 %v6324_v14, %v5389_v15 }
 0x4ce   :  { %3862 = vmatpush.bf16.msrb.mxu1 %v5612_v30  ;;  %3874 = vmatpush.bf16.msrb.mxu2 %v5900_v31  ;;  %v6502_v21 = vpop.eup %6501  ;;  %v6316_v30 = vld [vmem:[#allocation13 + $0x2dc] sm:$0xf]  ;;  %v3595_v31 = vadd.f32 %v6974_v8, %v3582_v11  ;;  %v5744_v32 = vor.u32 %v6412_v19, %v5741_v16 }
 0x4cf   :  { %v6985_v28 = vpop.f32.mrf.mxu3  ;;  %v6988_v37 = vadd.f32 1.0, %v6502_v21  ;;  %v5360_v43 = vor.u32 %v6316_v30, %v5357_v33  ;;  %v5037_v8 = vld [vmem:[#allocation13 + $0x78] sm:$0xf0] }
 0x4d0   :  { %3853 = vmatmul.bf16.vlgmr.msrb.gmra.mxu0 %v6932_v25  ;;  %v3608_v40 = vadd.f32 %v3607_v62, %v3595_v31  ;;  %v5040_v57 = vor.u32 %v6236_v45, %v5037_v8  ;;  %v6228_v62 = vld [vmem:[#allocation13 + $0x1c] sm:$0xf] }
 0x4d1   :  { %3885 = vmatpush.bf16.msrb.mxu3 %v5200_v34  ;;  %3897 = vmatpush.bf16.msra.mxu0 %v5488_v35  ;;  %v6404_v34 = vld [vmem:[#allocation13 + $0x59c] sm:$0xf]  ;;  %v3609_v38 = vpop.f32.mrf.mxu1  ;;  %6503 = vrcp.f32 %v6988_v37  ;;  %vm3973_vm1 = vweird.f32 %v6988_v37 }
 0x4d2   :  { %3863 = vmatpush.bf16.msrb.mxu1 %v5580_v47  ;;  %3875 = vmatpush.bf16.msrb.mxu2 %v5868_v48  ;;  %v5709_v35 = vld [vmem:[#allocation13 + $0x5b8] sm:$0xf0]  ;;  %v6000_v47 = vor.u32 %v6476_v61, %v5997_v39 }
 0x4d3   :  { %v3620_v44 = vpop.f32.mrf.mxu2  ;;  %v5712_v46 = vor.u32 %v6404_v34, %v5709_v35  ;;  %v6460_v6 = vld [vmem:[#allocation13 + $0x75c] sm:$0xf] }
 0x4d4   :  { %v3621_v48 = vadd.f32 %v3620_v44, %v3608_v40  ;;  %v5933_v7 = vld [vmem:[#allocation13 + $0x778] sm:$0xf0]  ;;  %v2226_v40 = vperm.slane %v6968_v36, 2 }
 0x4d5   :  { %3886 = vmatpush.bf16.msrb.mxu3 %v5168_v51  ;;  %3898 = vmatpush.bf16.msra.mxu0 %v5456_v52  ;;  %v6396_v51 = vld [vmem:[#allocation13 + $0x55c] sm:$0xf]  ;;  %v3648_v52 = vpop.f32.mrf.mxu0  ;;  %v5936_v16 = vor.u32 %v6460_v6, %v5933_v7 }
 0x4d6   :  { %3864 = vmatpush.bf16.msrb.mxu1 %v5548_v63  ;;  %3876 = vmatpush.bf16.msrb.mxu2 %v5836_v0  ;;  %v6002_v56 = vmul.f32 -1.442695, %v3621_v48  ;;  %v5005_v63 = vld [vmem:[#allocation13 + $0x38] sm:$0xf0]  ;;  %v5680_v0 = vor.u32 %v6396_v51, %v5677_v53  ;;  %v3634_v50 = vadd.f32 %v6985_v28, %v2226_v40 }
 0x4d7   :  { %v3635_v60 = vpop.f32.mrf.mxu3  ;;  %v6995_v11 = vpop.eup %6503  ;;  %v5008_v12 = vor.u32 %v6228_v62, %v5005_v63  ;;  %v6292_v21 = vld [vmem:[#allocation13 + $0x21c] sm:$0xf] }
 0x4d8   :  { %6505 = vpow2.f32 %v6002_v56  ;;  %v5613_v23 = vld [vmem:[#allocation13 + $0x4f8] sm:$0xf0]  ;;  %v3969_v20 = vmul.f32 %v6995_v11, %v6988_v37  ;;  %vm3974_vm0 = vweird.f32 %v6995_v11  ;;  %v3979_v60 = vand.u32 2147483648, %v6988_v37 }
 0x4d9   :  { %3887 = vmatpush.bf16.msrb.mxu3 %v5136_v3  ;;  %3899 = vmatpush.bf16.msra.mxu0 %v5424_v4  ;;  %v5293_v3 = vld [vmem:[#allocation13 + $0x278] sm:$0xf0]  ;;  %v3647_v62 = vadd.f32 %v6983_v17, %v3634_v50  ;;  %vm7018_vm3 = vmor %vm3973_vm1, %vm3974_vm0 }
 0x4da   :  { %3865 = vmatpush.bf16.msrb.mxu1 %v5516_v22  ;;  %3877 = vmatpush.bf16.msrb.mxu2 %v5804_v18  ;;  %v6388_v4 = vld [vmem:[#allocation13 + $0x51c] sm:$0xf]  ;;  %v5296_v14 = vor.u32 %v6300_v2, %v5293_v3  ;;  %v3970_v61 = vsub.f32 1.0, %v3969_v20 }
 0x4db   :  { %v3622_v15 = vpop.f32.mrf.mxu2  ;;  %v5648_v19 = vor.u32 %v6388_v4, %v5645_v5  ;;  %v5261_v22 = vld [vmem:[#allocation13 + $0x238] sm:$0xf0] }
 0x4dc   :  { %v6993_v9 = vpop.f32.mrf.mxu1  ;;  %v6380_v18 = vld [vmem:[#allocation13 + $0x4dc] sm:$0xf]  ;;  %v5264_v30 = vor.u32 %v6292_v21, %v5261_v22 }
 0x4dd   :  { %3888 = vmatpush.bf16.msrb.mxu3 %v5104_v26  ;;  %3900 = vmatpush.bf16.msra.mxu0 %v5392_v27  ;;  %v6452_v24 = vld [vmem:[#allocation13 + $0x71c] sm:$0xf]  ;;  %v5616_v31 = vor.u32 %v6380_v18, %v5613_v23  ;;  %v3660_v5 = vadd.f32 %v6993_v9, %v3647_v62 }
 0x4de   :  { %3910 = vmatpush.bf16.msra.mxu1 %v5744_v32  ;;  %3878 = vmatpush.bf16.msrb.mxu2 %v5772_v41  ;;  %v5901_v26 = vld [vmem:[#allocation13 + $0x738] sm:$0xf0]  ;;  %v6506_v27 = vpop.eup %6505 }
 0x4df   :  { %3866 = vmatmul.bf16.vlgmr.msrb.gmra.mxu1 %v6937_v58  ;;  %v6999_v29 = vadd.f32 1.0, %v6506_v27  ;;  %v5904_v32 = vor.u32 %v6452_v24, %v5901_v26  ;;  %v6372_v33 = vld [vmem:[#allocation13 + $0x49c] sm:$0xf]  ;;  %v2227_v26 = vperm.slane %v6968_v36, 3 }
 0x4e0   :  { %v5581_v34 = vld [vmem:[#allocation13 + $0x4b8] sm:$0xf0] }
 0x4e1   :  { %3889 = vmatpush.bf16.msrb.mxu3 %v5072_v42  ;;  %3901 = vmatpush.bf16.msra.mxu0 %v5360_v43  ;;  %6507 = vrcp.f32 %v6999_v29  ;;  %v6444_v35 = vld [vmem:[#allocation13 + $0x6dc] sm:$0xf]  ;;  %v5584_v41 = vor.u32 %v6372_v33, %v5581_v34  ;;  %v3994_v28 = vand.u32 2147483648, %v6999_v29  ;;  %v3992_v2 = vand.u32 2147483647, %v6999_v29 }
 0x4e2   :  { %3911 = vmatpush.bf16.msra.mxu1 %v5712_v46  ;;  %3923 = vmatpush.bf16.msra.mxu2 %v6000_v47  ;;  %v5869_v38 = vld [vmem:[#allocation13 + $0x6f8] sm:$0xf0]  ;;  %v3971_v47 = vmul.f32 %v6995_v11, %v3970_v61  ;;  %vm3988_vm4 = vweird.f32 %v6999_v29 }
 0x4e3   :  { %3879 = vmatmul.bf16.vlgmr.msrb.gmra.mxu2 %v6941_v10  ;;  %v5872_v42 = vor.u32 %v6444_v35, %v5869_v38  ;;  %v6364_v44 = vld [vmem:[#allocation13 + $0x45c] sm:$0xf]  ;;  %v3995_v15 = vor.u32 1.1754944e-38, %v3994_v28  ;;  %vm3993_vm7 = vcmp.eq.f32.partialorder %v3992_v2, 8.507059e+37  ;;  %v2228_v28 = vperm.slane %v6968_v36, 4 }
 0x4e4   :  { %v3661_v39 = vpop.f32.mrf.mxu1  ;;  %v5549_v45 = vld [vmem:[#allocation13 + $0x478] sm:$0xf0] }
 0x4e5   :  { %3890 = vmatpush.bf16.msrb.mxu3 %v5040_v57  ;;  %3902 = vmatpush.bf16.msra.mxu0 %v5328_v59  ;;  %v6436_v8 = vld [vmem:[#allocation13 + $0x69c] sm:$0xf]  ;;  %v5552_v54 = vor.u32 %v6364_v44, %v5549_v45  ;;  %v3972_v57 = vadd.f32 %v6995_v11, %v3971_v47 }
 0x4e6   :  { %3912 = vmatpush.bf16.msra.mxu1 %v5680_v0  ;;  %3924 = vmatpush.bf16.msra.mxu2 %v5968_v1  ;;  %v3672_v43 = vpop.f32.mrf.mxu2  ;;  %v5837_v46 = vld [vmem:[#allocation13 + $0x6b8] sm:$0xf0]  ;;  %v3977_v0 = vand.u32 2147483647, %v6988_v37 }
 0x4e7   :  { %v6356_v48 = vld [vmem:[#allocation13 + $0x41c] sm:$0xf]  ;;  %v5840_v55 = vor.u32 %v6436_v8, %v5837_v46  ;;  %v3976_v37 = vsel %vm7018_vm3, %v6995_v11, %v3972_v57 }
 0x4e8   :  { %v5517_v49 = vld [vmem:[#allocation13 + $0x438] sm:$0xf0]  ;;  %vm3978_vm6 = vcmp.eq.f32.partialorder %v3977_v0, 8.507059e+37 }
 0x4e9   :  { %3891 = vmatpush.bf16.msrb.mxu3 %v5008_v12  ;;  %3903 = vmatpush.bf16.msra.mxu0 %v5296_v14  ;;  %v6428_v51 = vld [vmem:[#allocation13 + $0x65c] sm:$0xf]  ;;  %v5520_v56 = vor.u32 %v6356_v48, %v5517_v49  ;;  %v3980_v14 = vor.u32 1.1754944e-38, %v3979_v60 }
 0x4ea   :  { %3913 = vmatpush.bf16.msra.mxu1 %v5648_v19  ;;  %3925 = vmatpush.bf16.msra.mxu2 %v5936_v16  ;;  %v5805_v52 = vld [vmem:[#allocation13 + $0x678] sm:$0xf0]  ;;  %v3673_v19 = vadd.f32 %v3672_v43, %v3660_v5 }
 0x4eb   :  { %v6420_v17 = vld [vmem:[#allocation13 + $0x61c] sm:$0xf]  ;;  %v3981_v21 = vsel %vm3978_vm6, %v3980_v14, %v3976_v37 }
 0x4ec   :  { %3892 = vmatmul.bf16.vlgmr.msrb.gmra.mxu3 %v6929_v13  ;;  %v6508_v13 = vpop.eup %6507  ;;  %v5773_v7 = vld [vmem:[#allocation13 + $0x638] sm:$0xf0]  ;;  %v6003_v23 = vmul.f32 -1.442695, %v3673_v19 }
 0x4ed   :  { %3904 = vmatpush.bf16.msra.mxu0 %v5264_v30  ;;  %v3984_v53 = vmul.f32 %v6508_v13, %v6999_v29  ;;  %v3698_v63 = vpop.f32.mrf.mxu0  ;;  %vm3989_vm2 = vweird.f32 %v6508_v13  ;;  %v5776_v9 = vor.u32 %v6420_v17, %v5773_v7 }
 0x4ee   :  { %3914 = vmatpush.bf16.msra.mxu1 %v5616_v31  ;;  %3926 = vmatpush.bf16.msra.mxu2 %v5904_v32  ;;  %v3674_v3 = vpop.f32.mrf.mxu2  ;;  %vm3990_vm5 = vmor %vm3988_vm4, %vm3989_vm2  ;;  %6509 = vpow2.f32 %v6003_v23 }
 0x4ef   :  { %v3985_v59 = vsub.f32 1.0, %v3984_v53  ;;  %v3685_v6 = vpop.f32.mrf.mxu3 }
 0x4f0   :  { %3905 = vmatmul.bf16.vlgmr.msra.gmra.mxu0 %v6932_v25  ;;  %v5808_v25 = vor.u32 %v6428_v51, %v5805_v52  ;;  %v3686_v20 = vadd.f32 %v3685_v6, %v2227_v26 }
 0x4f1   :  { %v3986_v1 = vmul.f32 %v6508_v13, %v3985_v59 }
 0x4f2   :  { %3915 = vmatpush.bf16.msra.mxu1 %v5584_v41  ;;  %3927 = vmatpush.bf16.msra.mxu2 %v5872_v42  ;;  %v3699_v30 = vadd.f32 %v3698_v63, %v3686_v20 }
 0x4f3   :  { %v3987_v12 = vadd.f32 %v6508_v13, %v3986_v1 }
 0x4f4   :  { %v6510_v29 = vpop.eup %6509 }
 0x4f5   :  { %v3991_v16 = vsel %vm3990_vm5, %v6508_v13, %v3987_v12  ;;  %v3700_v11 = vpop.f32.mrf.mxu0  ;;  %v3962_v31 = vadd.f32 1.0, %v6510_v29 }
 0x4f6   :  { %3916 = vmatpush.bf16.msra.mxu1 %v5552_v54  ;;  %3928 = vmatpush.bf16.msra.mxu2 %v5840_v55  ;;  %v3996_v22 = vsel %vm3993_vm7, %v3995_v15, %v3991_v16  ;;  %v2229_v15 = vperm.slane %v6968_v36, 5 }
 0x4f7   :  { %v4088_v18 = vpack.c.bf16 %v3996_v22, %v3981_v21  ;;  %v3687_v24 = vpop.f32.mrf.mxu3  ;;  %6511 = vrcp.f32 %v3962_v31  ;;  %vm4003_vm9 = vweird.f32 %v3962_v31  ;;  %v4009_v50 = vand.u32 2147483648, %v3962_v31 }
 0x4f8   :  { %v4007_v52 = vand.u32 2147483647, %v3962_v31 }
 0x4f9   :  { %4092 = vst [vmem:[%s7083_s30] sm:$0xff] %v4088_v18  ;;  %v4010_v57 = vor.u32 1.1754944e-38, %v4009_v50 }
 0x4fa   :  { %3917 = vmatpush.bf16.msra.mxu1 %v5520_v56  ;;  %3929 = vmatpush.bf16.msra.mxu2 %v5808_v25  ;;  %vm4008_vm14 = vcmp.eq.f32.partialorder %v4007_v52, 8.507059e+37 }
 0x4fc   :  { %v3711_v27 = vpop.f32.mrf.mxu1 }
 0x4fd   :  { %3918 = vmatmul.bf16.vlgmr.msra.gmra.mxu1 %v6937_v58  ;;  %v3712_v33 = vadd.f32 %v3711_v27, %v3699_v30  ;;  %v6512_v61 = vpop.eup %6511 }
 0x4fe   :  { %3930 = vmatpush.bf16.msra.mxu2 %v5776_v9  ;;  %v3999_v42 = vmul.f32 %v6512_v61, %v3962_v31  ;;  %vm4004_vm8 = vweird.f32 %v6512_v61 }
 0x4ff   :  { %vm4005_vm11 = vmor %vm4003_vm9, %vm4004_vm8 }
 0x501   :  { %3931 = vmatmul.bf16.vlgmr.msra.gmra.mxu2 %v6941_v10  ;;  %v4000_v10 = vsub.f32 1.0, %v3999_v42 }
 0x503   :  { %v4001_v8 = vmul.f32 %v6512_v61, %v4000_v10 }
 0x504   :  { %v3713_v32 = vpop.f32.mrf.mxu1 }
 0x505   :  { %v4002_v49 = vadd.f32 %v6512_v61, %v4001_v8 }
 0x506   :  { %v3724_v58 = vpop.f32.mrf.mxu2 }
 0x507   :  { %v3725_v34 = vadd.f32 %v3724_v58, %v3712_v33  ;;  %v4006_v55 = vsel %vm4005_vm11, %v6512_v61, %v4002_v49 }
 0x508   :  { %v4011_v62 = vsel %vm4008_vm14, %v4010_v57, %v4006_v55 }
 0x509   :  { %v6004_v35 = vmul.f32 -1.442695, %v3725_v34 }
 0x50b   :  { %6513 = vpow2.f32 %v6004_v35 }
 0x50d   :  { %v3750_v38 = vpop.f32.mrf.mxu0 }
 0x50e   :  { %v3726_v39 = vpop.f32.mrf.mxu2 }
 0x50f   :  { %v3737_v40 = vpop.f32.mrf.mxu3 }
 0x510   :  { %v3738_v2 = vadd.f32 %v3737_v40, %v2228_v28 }
 0x511   :  { %v6514_v41 = vpop.eup %6513 }
 0x512   :  { %v3963_v43 = vadd.f32 1.0, %v6514_v41  ;;  %v3751_v3 = vadd.f32 %v3750_v38, %v3738_v2  ;;  %v2231_v2 = vperm.slane %v6968_v36, 7 }
 0x514   :  { %6515 = vrcp.f32 %v3963_v43  ;;  %v4024_v51 = vand.u32 2147483648, %v3963_v43  ;;  %v4022_v54 = vand.u32 2147483647, %v3963_v43  ;;  %vm4018_vm12 = vweird.f32 %v3963_v43 }
 0x515   :  { %v3752_v44 = vpop.f32.mrf.mxu0 }
 0x516   :  { %v4025_v59 = vor.u32 1.1754944e-38, %v4024_v51  ;;  %vm4023_vm15 = vcmp.eq.f32.partialorder %v4022_v54, 8.507059e+37  ;;  %v2230_v51 = vperm.slane %v6968_v36, 6 }
 0x517   :  { %v3739_v45 = vpop.f32.mrf.mxu3 }
 0x51a   :  { %v6516_v46 = vpop.eup %6515 }
 0x51b   :  { %v4014_v48 = vmul.f32 %v6516_v46, %v3963_v43  ;;  %vm4019_vm10 = vweird.f32 %v6516_v46 }
 0x51c   :  { %v3763_v47 = vpop.f32.mrf.mxu1  ;;  %vm4020_vm13 = vmor %vm4018_vm12, %vm4019_vm10 }
 0x51d   :  { %v4015_v13 = vsub.f32 1.0, %v4014_v48  ;;  %v3764_v6 = vadd.f32 %v3763_v47, %v3751_v3 }
 0x51f   :  { %v4016_v53 = vmul.f32 %v6516_v46, %v4015_v13 }
 0x521   :  { %v4017_v56 = vadd.f32 %v6516_v46, %v4016_v53 }
 0x523   :  { %v4021_v60 = vsel %vm4020_vm13, %v6516_v46, %v4017_v56 }
 0x524   :  { %v3765_v25 = vpop.f32.mrf.mxu1  ;;  %v4026_v63 = vsel %vm4023_vm15, %v4025_v59, %v4021_v60 }
 0x525   :  { %v4089_v1 = vpack.c.bf16 %v4026_v63, %v4011_v62 }
 0x526   :  { %v3776_v0 = vpop.f32.mrf.mxu2 }
 0x527   :  { %4093 = vst [vmem:[%s7083_s30 + $0x8] sm:$0xff] %v4089_v1  ;;  %v3777_v7 = vadd.f32 %v3776_v0, %v3764_v6 }
 0x529   :  { %v6005_v37 = vmul.f32 -1.442695, %v3777_v7 }
 0x52b   :  { %6517 = vpow2.f32 %v6005_v37 }
 0x52d   :  { %v3802_v4 = vpop.f32.mrf.mxu0 }
 0x52e   :  { %v3778_v5 = vpop.f32.mrf.mxu2 }
 0x52f   :  { %v3789_v17 = vpop.f32.mrf.mxu3 }
 0x530   :  { %v3790_v16 = vadd.f32 %v3789_v17, %v2229_v15 }
 0x531   :  { %v6518_v9 = vpop.eup %6517 }
 0x532   :  { %v3803_v21 = vadd.f32 %v3802_v4, %v3790_v16  ;;  %v3964_v22 = vadd.f32 1.0, %v6518_v9 }
 0x534   :  { %6519 = vrcp.f32 %v3964_v22  ;;  %vm4033_vm1 = vweird.f32 %v3964_v22  ;;  %v4039_v43 = vand.u32 2147483648, %v3964_v22  ;;  %v4037_v44 = vand.u32 2147483647, %v3964_v22 }
 0x535   :  { %v3804_v12 = vpop.f32.mrf.mxu0 }
 0x536   :  { %v4040_v48 = vor.u32 1.1754944e-38, %v4039_v43  ;;  %vm4038_vm6 = vcmp.eq.f32.partialorder %v4037_v44, 8.507059e+37 }
 0x537   :  { %v3791_v14 = vpop.f32.mrf.mxu3 }
 0x53a   :  { %v6520_v20 = vpop.eup %6519 }
 0x53b   :  { %v4029_v32 = vmul.f32 %v6520_v20, %v3964_v22  ;;  %vm4034_vm0 = vweird.f32 %v6520_v20 }
 0x53c   :  { %v3815_v19 = vpop.f32.mrf.mxu1  ;;  %vm4035_vm3 = vmor %vm4033_vm1, %vm4034_vm0 }
 0x53d   :  { %v3816_v23 = vadd.f32 %v3815_v19, %v3803_v21  ;;  %v4030_v58 = vsub.f32 1.0, %v4029_v32 }
 0x53f   :  { %v4031_v38 = vmul.f32 %v6520_v20, %v4030_v58 }
 0x541   :  { %v4032_v41 = vadd.f32 %v6520_v20, %v4031_v38 }
 0x543   :  { %v4036_v46 = vsel %vm4035_vm3, %v6520_v20, %v4032_v41 }
 0x544   :  { %v3817_v18 = vpop.f32.mrf.mxu1  ;;  %v4041_v52 = vsel %vm4038_vm6, %v4040_v48, %v4036_v46 }
 0x546   :  { %v3828_v11 = vpop.f32.mrf.mxu2 }
 0x547   :  { %v3829_v24 = vadd.f32 %v3828_v11, %v3816_v23 }
 0x549   :  { %v6006_v26 = vmul.f32 -1.442695, %v3829_v24 }
 0x54b   :  { %6521 = vpow2.f32 %v6006_v26 }
 0x54d   :  { %v3854_v27 = vpop.f32.mrf.mxu0 }
 0x54e   :  { %v3830_v29 = vpop.f32.mrf.mxu2 }
 0x54f   :  { %v3841_v30 = vpop.f32.mrf.mxu3 }
 0x550   :  { %v3842_v56 = vadd.f32 %v3841_v30, %v2230_v51 }
 0x551   :  { %v6522_v31 = vpop.eup %6521 }
 0x552   :  { %v3965_v33 = vadd.f32 1.0, %v6522_v31  ;;  %v3855_v57 = vadd.f32 %v3854_v27, %v3842_v56 }
 0x554   :  { %6523 = vrcp.f32 %v3965_v33  ;;  %v4054_v10 = vand.u32 2147483648, %v3965_v33  ;;  %v4052_v8 = vand.u32 2147483647, %v3965_v33  ;;  %vm4048_vm4 = vweird.f32 %v3965_v33 }
 0x555   :  { %v3856_v34 = vpop.f32.mrf.mxu0 }
 0x556   :  { %v4055_v49 = vor.u32 1.1754944e-38, %v4054_v10  ;;  %vm4053_vm7 = vcmp.eq.f32.partialorder %v4052_v8, 8.507059e+37 }
 0x557   :  { %v3843_v35 = vpop.f32.mrf.mxu3 }
 0x55a   :  { %v6524_v61 = vpop.eup %6523 }
 0x55b   :  { %v4044_v40 = vmul.f32 %v6524_v61, %v3965_v33  ;;  %vm4049_vm2 = vweird.f32 %v6524_v61 }
 0x55c   :  { %v3867_v39 = vpop.f32.mrf.mxu1  ;;  %vm4050_vm5 = vmor %vm4048_vm4, %vm4049_vm2 }
 0x55d   :  { %v4045_v42 = vsub.f32 1.0, %v4044_v40  ;;  %v3868_v60 = vadd.f32 %v3867_v39, %v3855_v57 }
 0x55f   :  { %v4046_v45 = vmul.f32 %v6524_v61, %v4045_v42 }
 0x561   :  { %v4047_v47 = vadd.f32 %v6524_v61, %v4046_v45 }
 0x563   :  { %v4051_v50 = vsel %vm4050_vm5, %v6524_v61, %v4047_v47 }
 0x564   :  { %v3869_v13 = vpop.f32.mrf.mxu1  ;;  %v4056_v53 = vsel %vm4053_vm7, %v4055_v49, %v4051_v50 }
 0x565   :  { %v4090_v55 = vpack.c.bf16 %v4056_v53, %v4041_v52 }
 0x566   :  { %v3880_v54 = vpop.f32.mrf.mxu2 }
 0x567   :  { %4094 = vst [vmem:[%s7083_s30 + $0x10] sm:$0xff] %v4090_v55  ;;  %v3881_v62 = vadd.f32 %v3880_v54, %v3868_v60 }
 0x569   :  { %v6007_v63 = vmul.f32 -1.442695, %v3881_v62 }
 0x56b   :  { %6525 = vpow2.f32 %v6007_v63 }
 0x56d   :  { %v3906_v59 = vpop.f32.mrf.mxu0 }
 0x56e   :  { %v3882_v25 = vpop.f32.mrf.mxu2 }
 0x56f   :  { %v3893_v28 = vpop.f32.mrf.mxu3 }
 0x570   :  { %v3894_v4 = vadd.f32 %v3893_v28, %v2231_v2 }
 0x571   :  { %v6526_v5 = vpop.eup %6525 }
 0x572   :  { %v3907_v6 = vadd.f32 %v3906_v59, %v3894_v4  ;;  %v3966_v17 = vadd.f32 1.0, %v6526_v5 }
 0x574   :  { %6527 = vrcp.f32 %v3966_v17  ;;  %vm4063_vm9 = vweird.f32 %v3966_v17  ;;  %v4069_v27 = vand.u32 2147483648, %v3966_v17  ;;  %v4067_v29 = vand.u32 2147483647, %v3966_v17 }
 0x575   :  { %v3908_v0 = vpop.f32.mrf.mxu0 }
 0x576   :  { %v4070_v58 = vor.u32 1.1754944e-38, %v4069_v27  ;;  %vm4068_vm14 = vcmp.eq.f32.partialorder %v4067_v29, 8.507059e+37 }
 0x577   :  { %v3895_v1 = vpop.f32.mrf.mxu3 }
 0x57a   :  { %v3919_v3 = vpop.f32.mrf.mxu1  ;;  %v6528_v19 = vpop.eup %6527 }
 0x57b   :  { %v3920_v37 = vadd.f32 %v3919_v3, %v3907_v6  ;;  %v4059_v21 = vmul.f32 %v6528_v19, %v3966_v17  ;;  %vm4064_vm8 = vweird.f32 %v6528_v19 }
 0x57c   :  { %vm4065_vm11 = vmor %vm4063_vm9, %vm4064_vm8 }
 0x57d   :  { %v4060_v18 = vsub.f32 1.0, %v4059_v21 }
 0x57f   :  { %v4061_v36 = vmul.f32 %v6528_v19, %v4060_v18 }
 0x581   :  { %v4062_v24 = vadd.f32 %v6528_v19, %v4061_v36 }
 0x582   :  { %v3921_v7 = vpop.f32.mrf.mxu1 }
 0x583   :  { %v4066_v32 = vsel %vm4065_vm11, %v6528_v19, %v4062_v24 }
 0x584   :  { %v3932_v12 = vpop.f32.mrf.mxu2  ;;  %v4071_v38 = vsel %vm4068_vm14, %v4070_v58, %v4066_v32 }
 0x585   :  { %v3933_v14 = vadd.f32 %v3932_v12, %v3920_v37 }
 0x587   :  { %v6008_v15 = vmul.f32 -1.442695, %v3933_v14 }
 0x589   :  { %6529 = vpow2.f32 %v6008_v15 }
 0x58c   :  { %v3934_v16 = vpop.f32.mrf.mxu2 }
 0x58f   :  { %v6530_v9 = vpop.eup %6529 }
 0x590   :  { %v3967_v22 = vadd.f32 1.0, %v6530_v9 }
 0x592   :  { %6531 = vrcp.f32 %v3967_v22  ;;  %v4084_v20 = vand.u32 2147483648, %v3967_v22  ;;  %v4082_v31 = vand.u32 2147483647, %v3967_v22  ;;  %vm4078_vm12 = vweird.f32 %v3967_v22 }
 0x594   :  { %v4085_v34 = vor.u32 1.1754944e-38, %v4084_v20  ;;  %vm4083_vm15 = vcmp.eq.f32.partialorder %v4082_v31, 8.507059e+37 }
 0x598   :  { %v6532_v23 = vpop.eup %6531 }
 0x599   :  { %v4074_v11 = vmul.f32 %v6532_v23, %v3967_v22  ;;  %vm4079_vm10 = vweird.f32 %v6532_v23 }
 0x59a   :  { %vm4080_vm13 = vmor %vm4078_vm12, %vm4079_vm10 }
 0x59b   :  { %v4075_v26 = vsub.f32 1.0, %v4074_v11 }
 0x59d   :  { %v4076_v30 = vmul.f32 %v6532_v23, %v4075_v26 }
 0x59f   :  { %v4077_v33 = vadd.f32 %v6532_v23, %v4076_v30 }
 0x5a1   :  { %v4081_v35 = vsel %vm4080_vm13, %v6532_v23, %v4077_v33 }
 0x5a2   :  { %v4086_v61 = vsel %vm4083_vm15, %v4085_v34, %v4081_v35 }
 0x5a3   :  { %v4091_v39 = vpack.c.bf16 %v4086_v61, %v4071_v38 }
 0x5a5   :  { %4095 = vst [vmem:[%s7083_s30 + $0x18] sm:$0xff] %v4091_v39 }
 0x5a6   :  { %4108 = vsyncpa [#allocation3], 1 }
 0x5a7   :  { %4109 = vsyncpa [#allocation5], 1 }
 0x5a8   :  { %4110 = vsyncpa [#allocation8], 1 }
 0x5a9   :  { %4111 = vsyncpa [#allocation11], 1 }
 0x5aa   :  { %4112 = vsyncpa [#allocation14], 1 }

</bundles_post_ra>
